<compile_context>
chip_gen: v6e
topology: v6e:2x2x1
jax: 0.10.0
libtpu: 0.0.40
codegen_flags: <defaults>
</compile_context>

<pallas_src>
import functools

import jax
import jax.numpy as jnp
import numpy as np
from jax.experimental import pallas as pl
from jax.experimental.pallas import tpu as pltpu

# Keep per-step input blocks around this size so the working set (in + out
# double-buffered + f32 temporaries) stays well under the default scoped-VMEM
# limit on every TPU generation (16 MiB on v5e).  Raise together with
# pltpu.CompilerParams(vmem_limit_bytes=...) on v6e if desired.
_MAX_BLOCK_BYTES = 1 * 1024 * 1024


def _dwconv_level_kernel(x_ref, halo_ref, w_ref, b_ref, o_ref, *, width):
    """One (batch, row-tile) block of a depthwise 3x3 conv.

    x_ref   : (TB, C)      TB = tile_rows * width tokens, row-major over (h, w)
    halo_ref: (2*width, C) previous image row | next image row (zeros at border)
    w_ref   : (9, C)       taps, index = di*3 + dj
    b_ref   : (1, C)       bias
    o_ref   : (TB, C)
    """
    w = width
    tb, c = x_ref.shape

    x = x_ref[...].astype(jnp.float32)
    halo = halo_ref[...].astype(jnp.float32)
    taps = w_ref[...].astype(jnp.float32)

    # Zero guard rows keep every shifted slice in range; the values they could
    # contribute are always column-masked anyway.
    guard = jnp.zeros((1, c), jnp.float32)
    xa = jnp.concatenate([guard, halo[:w, :], x, halo[w:, :], guard], axis=0)

    def shifted(di, dj):
        s = di * w + dj
        return xa[s:s + tb, :]

    # Group taps by column offset so each edge mask is applied once.
    center = (shifted(0, 1) * taps[1:2, :] +
              shifted(1, 1) * taps[4:5, :] +
              shifted(2, 1) * taps[7:8, :])
    left = (shifted(0, 0) * taps[0:1, :] +
            shifted(1, 0) * taps[3:4, :] +
            shifted(2, 0) * taps[6:7, :])
    right = (shifted(0, 2) * taps[2:3, :] +
             shifted(1, 2) * taps[5:6, :] +
             shifted(2, 2) * taps[8:9, :])

    col = jax.lax.broadcasted_iota(jnp.int32, (tb, c), 0) % w
    acc = center + b_ref[...].astype(jnp.float32)
    acc = acc + jnp.where(col != 0, left, 0.0)          # no left neighbour at j == 0
    acc = acc + jnp.where(col != w - 1, right, 0.0)     # no right neighbour at j == w-1

    o_ref[...] = acc.astype(o_ref.dtype)


def _pick_tile_rows(h, w, c, itemsize, max_rows=None):
    """Largest row-tile (divisor of h) whose token block fits the VMEM budget,
    preferring (th*w) % 8 == 0 so the slab can be block-indexed directly."""
    divisors = [d for d in range(1, h + 1) if h % d == 0]
    if max_rows is not None:
        capped = [d for d in divisors if d <= max_rows]
        divisors = capped or [min(divisors)]
    fit = [d for d in divisors if d * w * c * itemsize <= _MAX_BLOCK_BYTES]
    fit = fit or [min(divisors)]
    aligned = [d for d in fit if (d * w) % 8 == 0]
    return max(aligned) if aligned else max(fit)


def _dwconv_level(x, off, h, w, taps9, bias1, *, max_rows=None):
    """Depthwise 3x3 conv on the level occupying tokens [off, off + h*w) of x."""
    B, N, C = x.shape
    n_lvl = h * w
    itemsize = jnp.dtype(x.dtype).itemsize

    th = _pick_tile_rows(h, w, C, itemsize, max_rows=max_rows)
    tb = th * w
    t = h // th

    # Read straight out of the (B, N, C) slab when the level region tiles into
    # 8-aligned token blocks; otherwise (tiny levels only) fall back to a small
    # sliced copy processed as a single full-extent block.
    slab_ok = (tb % 8 == 0) and (off % tb == 0)
    if slab_ok:
        x_in = x
        blk_off = off // tb
    else:
        x_in = x[:, off:off + n_lvl, :]
        th, tb, t = h, n_lvl, 1
        blk_off = 0

    # Halo rows (previous / next image row of each row-tile); zeros at the
    # image border.  Only 2 rows per tile are gathered -- tiny HBM traffic.
    if t == 1:
        halos = jnp.zeros((B, 1, 2 * w, C), x.dtype)
    else:
        rows = np.arange(1, t)[:, None] * tb
        top_idx = (off + rows + np.arange(-w, 0)[None, :]).reshape(-1)
        bot_idx = (off + rows + np.arange(0, w)[None, :]).reshape(-1)
        top = jnp.take(x, jnp.asarray(top_idx, dtype=jnp.int32), axis=1)
        bot = jnp.take(x, jnp.asarray(bot_idx, dtype=jnp.int32), axis=1)
        top = top.reshape(B, t - 1, w, C)
        bot = bot.reshape(B, t - 1, w, C)
        zeros = jnp.zeros((B, 1, w, C), x.dtype)
        top = jnp.concatenate([zeros, top], axis=1)     # halo above tile i
        bot = jnp.concatenate([bot, zeros], axis=1)     # halo below tile i
        halos = jnp.concatenate([top, bot], axis=2).reshape(B, t, 2 * w, C)

    kernel = functools.partial(_dwconv_level_kernel, width=w)
    return pl.pallas_call(
        kernel,
        out_shape=jax.ShapeDtypeStruct((B, n_lvl, C), x.dtype),
        grid=(B, t),
        in_specs=[
            pl.BlockSpec((None, tb, C), lambda b, i: (b, blk_off + i, 0)),
            pl.BlockSpec((None, None, 2 * w, C), lambda b, i: (b, i, 0, 0)),
            pl.BlockSpec((9, C), lambda b, i: (0, 0)),
            pl.BlockSpec((1, C), lambda b, i: (0, 0)),
        ],
        out_specs=pl.BlockSpec((None, tb, C), lambda b, i: (b, i, 0)),
        compiler_params=pltpu.CompilerParams(
            dimension_semantics=("parallel", "parallel")),
    )(x_in, halos, taps9, bias1)


def dwconv_forward(x, H, W, weight_c133, bias_c, *, max_rows=None):
    """Pallas implementation of DWConv.forward for the 4-level token pyramid.

    x           : (B, N, C), N = H*W + (H//2)*(W//2) + (H//4)*(H//4) + (H//8)*(W//8)
                  (the (H//4)*(H//4) term replicates the reference module's
                  quirk, which implicitly assumes H == W).
    weight_c133 : (C, 1, 3, 3) depthwise filters (PyTorch Conv2d layout).
    bias_c      : (C,)
    """
    B, N, C = x.shape
    sizes = [(H, W), (H // 2, W // 2), (H // 4, H // 4), (H // 8, W // 8)]
    offs, total = [], 0
    for (h, w) in sizes:
        offs.append(total)
        total += h * w
    assert total == N, f"token count mismatch: {total} != {N}"

    taps9 = jnp.transpose(weight_c133[:, 0, :, :], (1, 2, 0)).reshape(9, C)
    taps9 = taps9.astype(jnp.float32)
    bias1 = bias_c.reshape(1, C).astype(jnp.float32)

    ys = [
        _dwconv_level(x, off, h, w, taps9, bias1, max_rows=max_rows)
        for (h, w), off in zip(sizes, offs)
    ]
    # TODO(synk): write the four levels into one aliased (B, N, C) slab
    # (input_output_aliases) so this concatenate pass disappears as well.
    return jnp.concatenate(ys, axis=1)


# ----------------------------- pure-jnp reference -----------------------------

def _dwconv_level_ref(x_lvl, h, w, weight_c133, bias_c):
    B, n, C = x_lvl.shape
    img = x_lvl.reshape(B, h, w, C).astype(jnp.float32)
    pad = jnp.pad(img, ((0, 0), (1, 1), (1, 1), (0, 0)))
    w_hwc = jnp.transpose(weight_c133[:, 0, :, :], (1, 2, 0)).astype(jnp.float32)
    acc = jnp.zeros((B, h, w, C), jnp.float32)
    for di in range(3):
        for dj in range(3):
            acc = acc + pad[:, di:di + h, dj:dj + w, :] * w_hwc[di, dj]
    acc = acc + bias_c.astype(jnp.float32)
    return acc.reshape(B, h * w, C).astype(x_lvl.dtype)


def dwconv_forward_ref(x, H, W, weight_c133, bias_c):
    B, N, C = x.shape
    sizes = [(H, W), (H // 2, W // 2), (H // 4, H // 4), (H // 8, W // 8)]
    ys, off = [], 0
    for (h, w) in sizes:
        ys.append(_dwconv_level_ref(x[:, off:off + h * w, :], h, w,
                                    weight_c133, bias_c))
        off += h * w
    return jnp.concatenate(ys, axis=1)


if __name__ == "__main__":
    # Small shapes consistent with the module's multi-scale token layout.
    B, C = 2, 8
    H = W = 16
    N = H * W + (H // 2) * (W // 2) + (H // 4) * (H // 4) + (H // 8) * (W // 8)  # 340

    key = jax.random.PRNGKey(0)
    kx, kw, kb = jax.random.split(key, 3)
    x = jax.random.normal(kx, (B, N, C), dtype=jnp.float32)
    weight = jax.random.normal(kw, (C, 1, 3, 3), dtype=jnp.float32) * 0.1
    bias = jax.random.normal(kb, (C,), dtype=jnp.float32) * 0.1

    fwd = jax.jit(dwconv_forward, static_argnums=(1, 2),
                  static_argnames=("max_rows",))

    out = jax.block_until_ready(fwd(x, H, W, weight, bias))
    # Force small row-tiles so the multi-tile (halo-carrying) path runs too.
    out_tiled = jax.block_until_ready(fwd(x, H, W, weight, bias, max_rows=4))
    ref = jax.block_until_ready(dwconv_forward_ref(x, H, W, weight, bias))

    assert out.shape == (B, N, C), out.shape
    err = float(jnp.max(jnp.abs(out - ref)))
    err_t = float(jnp.max(jnp.abs(out_tiled - ref)))
    assert jnp.allclose(out, ref, atol=2e-5, rtol=2e-5), err
    assert jnp.allclose(out_tiled, ref, atol=2e-5, rtol=2e-5), err_t

    print("KERNEL_OK")
</pallas_src>

<mosaic_0001>
module attributes {stable_mosaic.version = 11 : i64} {
  func.func @_dwconv_level_kernel(%arg0: i32, %arg1: i32, %arg2: memref<1x64x8xf32, #tpu.memory_space<vmem>>, %arg3: memref<1x1x16x8xf32, #tpu.memory_space<vmem>>, %arg4: memref<9x8xf32, #tpu.memory_space<vmem>>, %arg5: memref<1x8xf32, #tpu.memory_space<vmem>>, %arg6: memref<1x64x8xf32, #tpu.memory_space<vmem>>) attributes {dimension_semantics = [#tpu.dimension_semantics<parallel>, #tpu.dimension_semantics<parallel>], iteration_bounds = array<i64: 2, 1>, scalar_prefetch = 0 : i64, scratch_operands = 0 : i64, tpu.core_type = #tpu.core_type<tc>, window_params = [{transform_indices = @transform_0, window_bounds = array<i64: 1, 64, 8>}, {transform_indices = @transform_1, window_bounds = array<i64: 1, 1, 16, 8>}, {pipeline_mode = #tpu.pipeline_mode<synchronous>, transform_indices = @transform_2, window_bounds = array<i64: 9, 8>}, {pipeline_mode = #tpu.pipeline_mode<synchronous>, transform_indices = @transform_3, window_bounds = array<i64: 1, 8>}, {transform_indices = @transform_4, window_bounds = array<i64: 1, 64, 8>}]} {
    %c0 = arith.constant 0 : index
    %c0_0 = arith.constant 0 : index
    %c0_1 = arith.constant 0 : index
    %0 = vector.load %arg2[%c0, %c0_0, %c0_1] : memref<1x64x8xf32, #tpu.memory_space<vmem>>, vector<1x64x8xf32>
    %1 = vector.shape_cast %0 : vector<1x64x8xf32> to vector<64x8xf32>
    %c0_2 = arith.constant 0 : index
    %c0_3 = arith.constant 0 : index
    %c0_4 = arith.constant 0 : index
    %c0_5 = arith.constant 0 : index
    %2 = vector.load %arg3[%c0_2, %c0_3, %c0_4, %c0_5] : memref<1x1x16x8xf32, #tpu.memory_space<vmem>>, vector<1x1x16x8xf32>
    %3 = vector.shape_cast %2 : vector<1x1x16x8xf32> to vector<16x8xf32>
    %c0_6 = arith.constant 0 : index
    %c0_7 = arith.constant 0 : index
    %4 = vector.load %arg4[%c0_6, %c0_7] : memref<9x8xf32, #tpu.memory_space<vmem>>, vector<9x8xf32>
    %cst = arith.constant 0.000000e+00 : f32
    %5 = vector.broadcast %cst : f32 to vector<1x8xf32>
    %6 = vector.extract_strided_slice %3 {offsets = [0, 0], sizes = [8, 8], strides = [1, 1]} : vector<16x8xf32> to vector<8x8xf32>
    %7 = vector.extract_strided_slice %3 {offsets = [8, 0], sizes = [8, 8], strides = [1, 1]} : vector<16x8xf32> to vector<8x8xf32>
    %8 = tpu.concatenate %5, %6, %1, %7, %5 in 0 : vector<1x8xf32>, vector<8x8xf32>, vector<64x8xf32>, vector<8x8xf32>, vector<1x8xf32> -> vector<82x8xf32>
    %9 = vector.extract_strided_slice %8 {offsets = [1, 0], sizes = [64, 8], strides = [1, 1]} : vector<82x8xf32> to vector<64x8xf32>
    %10 = vector.extract_strided_slice %4 {offsets = [1, 0], sizes = [1, 8], strides = [1, 1]} : vector<9x8xf32> to vector<1x8xf32>
    %11 = vector.broadcast %10 : vector<1x8xf32> to vector<64x8xf32>
    %12 = arith.mulf %9, %11 : vector<64x8xf32>
    %13 = vector.extract_strided_slice %8 {offsets = [9, 0], sizes = [64, 8], strides = [1, 1]} : vector<82x8xf32> to vector<64x8xf32>
    %14 = vector.extract_strided_slice %4 {offsets = [4, 0], sizes = [1, 8], strides = [1, 1]} : vector<9x8xf32> to vector<1x8xf32>
    %15 = vector.broadcast %14 : vector<1x8xf32> to vector<64x8xf32>
    %16 = arith.mulf %13, %15 : vector<64x8xf32>
    %17 = arith.addf %12, %16 : vector<64x8xf32>
    %18 = vector.extract_strided_slice %8 {offsets = [17, 0], sizes = [64, 8], strides = [1, 1]} : vector<82x8xf32> to vector<64x8xf32>
    %19 = vector.extract_strided_slice %4 {offsets = [7, 0], sizes = [1, 8], strides = [1, 1]} : vector<9x8xf32> to vector<1x8xf32>
    %20 = vector.broadcast %19 : vector<1x8xf32> to vector<64x8xf32>
    %21 = arith.mulf %18, %20 : vector<64x8xf32>
    %22 = arith.addf %17, %21 : vector<64x8xf32>
    %23 = vector.extract_strided_slice %8 {offsets = [0, 0], sizes = [64, 8], strides = [1, 1]} : vector<82x8xf32> to vector<64x8xf32>
    %24 = vector.extract_strided_slice %4 {offsets = [0, 0], sizes = [1, 8], strides = [1, 1]} : vector<9x8xf32> to vector<1x8xf32>
    %25 = vector.broadcast %24 : vector<1x8xf32> to vector<64x8xf32>
    %26 = arith.mulf %23, %25 : vector<64x8xf32>
    %27 = vector.extract_strided_slice %8 {offsets = [8, 0], sizes = [64, 8], strides = [1, 1]} : vector<82x8xf32> to vector<64x8xf32>
    %28 = vector.extract_strided_slice %4 {offsets = [3, 0], sizes = [1, 8], strides = [1, 1]} : vector<9x8xf32> to vector<1x8xf32>
    %29 = vector.broadcast %28 : vector<1x8xf32> to vector<64x8xf32>
    %30 = arith.mulf %27, %29 : vector<64x8xf32>
    %31 = arith.addf %26, %30 : vector<64x8xf32>
    %32 = vector.extract_strided_slice %8 {offsets = [16, 0], sizes = [64, 8], strides = [1, 1]} : vector<82x8xf32> to vector<64x8xf32>
    %33 = vector.extract_strided_slice %4 {offsets = [6, 0], sizes = [1, 8], strides = [1, 1]} : vector<9x8xf32> to vector<1x8xf32>
    %34 = vector.broadcast %33 : vector<1x8xf32> to vector<64x8xf32>
    %35 = arith.mulf %32, %34 : vector<64x8xf32>
    %36 = arith.addf %31, %35 : vector<64x8xf32>
    %37 = vector.extract_strided_slice %8 {offsets = [2, 0], sizes = [64, 8], strides = [1, 1]} : vector<82x8xf32> to vector<64x8xf32>
    %38 = vector.extract_strided_slice %4 {offsets = [2, 0], sizes = [1, 8], strides = [1, 1]} : vector<9x8xf32> to vector<1x8xf32>
    %39 = vector.broadcast %38 : vector<1x8xf32> to vector<64x8xf32>
    %40 = arith.mulf %37, %39 : vector<64x8xf32>
    %41 = vector.extract_strided_slice %8 {offsets = [10, 0], sizes = [64, 8], strides = [1, 1]} : vector<82x8xf32> to vector<64x8xf32>
    %42 = vector.extract_strided_slice %4 {offsets = [5, 0], sizes = [1, 8], strides = [1, 1]} : vector<9x8xf32> to vector<1x8xf32>
    %43 = vector.broadcast %42 : vector<1x8xf32> to vector<64x8xf32>
    %44 = arith.mulf %41, %43 : vector<64x8xf32>
    %45 = arith.addf %40, %44 : vector<64x8xf32>
    %46 = vector.extract_strided_slice %8 {offsets = [18, 0], sizes = [64, 8], strides = [1, 1]} : vector<82x8xf32> to vector<64x8xf32>
    %47 = vector.extract_strided_slice %4 {offsets = [8, 0], sizes = [1, 8], strides = [1, 1]} : vector<9x8xf32> to vector<1x8xf32>
    %48 = vector.broadcast %47 : vector<1x8xf32> to vector<64x8xf32>
    %49 = arith.mulf %46, %48 : vector<64x8xf32>
    %50 = arith.addf %45, %49 : vector<64x8xf32>
    %51 = tpu.iota {dimensions = array<i32: 0>} : vector<64x8xi32>
    %c8_i32 = arith.constant 8 : i32
    %c0_i32 = arith.constant 0 : i32
    %52 = arith.cmpi eq, %c8_i32, %c0_i32 : i32
    %c1_i32 = arith.constant 1 : i32
    %53 = arith.select %52, %c1_i32, %c8_i32 : i32
    %54 = vector.broadcast %53 : i32 to vector<64x8xi32>
    %55 = arith.remsi %51, %54 : vector<64x8xi32>
    %c0_i32_8 = arith.constant 0 : i32
    %56 = vector.broadcast %c0_i32_8 : i32 to vector<64x8xi32>
    %57 = arith.cmpi ne, %55, %56 : vector<64x8xi32>
    %c0_i32_9 = arith.constant 0 : i32
    %58 = vector.broadcast %c0_i32_9 : i32 to vector<64x8xi32>
    %59 = arith.cmpi slt, %55, %58 : vector<64x8xi32>
    %c0_i32_10 = arith.constant 0 : i32
    %60 = arith.cmpi slt, %53, %c0_i32_10 : i32
    %61 = vector.broadcast %60 : i1 to vector<64x8xi1>
    %62 = vector.broadcast %61 : vector<64x8xi1> to vector<64x8xi1>
    %63 = arith.xori %59, %62 : vector<64x8xi1>
    %64 = arith.andi %63, %57 : vector<64x8xi1>
    %65 = vector.broadcast %53 : i32 to vector<64x8xi32>
    %66 = arith.addi %55, %65 : vector<64x8xi32>
    %67 = arith.select %64, %66, %55 : vector<64x8xi1>, vector<64x8xi32>
    %c0_11 = arith.constant 0 : index
    %c0_12 = arith.constant 0 : index
    %68 = vector.load %arg5[%c0_11, %c0_12] : memref<1x8xf32, #tpu.memory_space<vmem>>, vector<1x8xf32>
    %69 = vector.broadcast %68 : vector<1x8xf32> to vector<64x8xf32>
    %70 = arith.addf %22, %69 : vector<64x8xf32>
    %c0_i32_13 = arith.constant 0 : i32
    %71 = vector.broadcast %c0_i32_13 : i32 to vector<64x8xi32>
    %72 = arith.cmpi ne, %67, %71 : vector<64x8xi32>
    %cst_14 = arith.constant 0.000000e+00 : f32
    %73 = vector.broadcast %cst_14 : f32 to vector<64x8xf32>
    %74 = arith.select %72, %36, %73 : vector<64x8xi1>, vector<64x8xf32>
    %75 = arith.addf %70, %74 : vector<64x8xf32>
    %c7_i32 = arith.constant 7 : i32
    %76 = vector.broadcast %c7_i32 : i32 to vector<64x8xi32>
    %77 = arith.cmpi ne, %67, %76 : vector<64x8xi32>
    %cst_15 = arith.constant 0.000000e+00 : f32
    %78 = vector.broadcast %cst_15 : f32 to vector<64x8xf32>
    %79 = arith.select %77, %50, %78 : vector<64x8xi1>, vector<64x8xf32>
    %80 = arith.addf %75, %79 : vector<64x8xf32>
    %c0_16 = arith.constant 0 : index
    %c0_17 = arith.constant 0 : index
    %c0_18 = arith.constant 0 : index
    %81 = vector.load %arg6[%c0_16, %c0_17, %c0_18] : memref<1x64x8xf32, #tpu.memory_space<vmem>>, vector<1x64x8xf32>
    %82 = vector.shape_cast %81 : vector<1x64x8xf32> to vector<64x8xf32>
    %83 = vector.shape_cast %80 : vector<64x8xf32> to vector<1x64x8xf32>
    tpu.vector_store %arg6[%c0_16, %c0_17, %c0_18], %83 {strides = array<i32>} : memref<1x64x8xf32, #tpu.memory_space<vmem>>, vector<1x64x8xf32>,
    return
  }
  func.func @transform_0(%arg0: i32, %arg1: i32) -> (i32, i32, i32) {
    %c4_i32 = arith.constant 4 : i32
    %0 = arith.addi %c4_i32, %arg1 : i32
    %c0_i32 = arith.constant 0 : i32
    %c0_i32_0 = arith.constant 0 : i32
    return %arg0, %0, %c0_i32 : i32, i32, i32
  }
  func.func @transform_1(%arg0: i32, %arg1: i32) -> (i32, i32, i32, i32) {
    %c0_i32 = arith.constant 0 : i32
    %c0_i32_0 = arith.constant 0 : i32
    %c0_i32_1 = arith.constant 0 : i32
    return %arg0, %arg1, %c0_i32, %c0_i32_0 : i32, i32, i32, i32
  }
  func.func @transform_2(%arg0: i32, %arg1: i32) -> (i32, i32) {
    %c0_i32 = arith.constant 0 : i32
    %c0_i32_0 = arith.constant 0 : i32
    %c0_i32_1 = arith.constant 0 : i32
    return %c0_i32, %c0_i32_0 : i32, i32
  }
  func.func @transform_3(%arg0: i32, %arg1: i32) -> (i32, i32) {
    %c0_i32 = arith.constant 0 : i32
    %c0_i32_0 = arith.constant 0 : i32
    %c0_i32_1 = arith.constant 0 : i32
    return %c0_i32, %c0_i32_0 : i32, i32
  }
  func.func @transform_4(%arg0: i32, %arg1: i32) -> (i32, i32, i32) {
    %c0_i32 = arith.constant 0 : i32
    %c0_i32_0 = arith.constant 0 : i32
    return %arg0, %arg1, %c0_i32 : i32, i32, i32
  }
}

module attributes {stable_mosaic.version = 11 : i64} {
  func.func @_dwconv_level_kernel(%arg0: i32, %arg1: i32, %arg2: memref<1x256x8xf32, #tpu.memory_space<vmem>>, %arg3: memref<1x1x32x8xf32, #tpu.memory_space<vmem>>, %arg4: memref<9x8xf32, #tpu.memory_space<vmem>>, %arg5: memref<1x8xf32, #tpu.memory_space<vmem>>, %arg6: memref<1x256x8xf32, #tpu.memory_space<vmem>>) attributes {dimension_semantics = [#tpu.dimension_semantics<parallel>, #tpu.dimension_semantics<parallel>], iteration_bounds = array<i64: 2, 1>, scalar_prefetch = 0 : i64, scratch_operands = 0 : i64, tpu.core_type = #tpu.core_type<tc>, window_params = [{transform_indices = @transform_0, window_bounds = array<i64: 1, 256, 8>}, {transform_indices = @transform_1, window_bounds = array<i64: 1, 1, 32, 8>}, {pipeline_mode = #tpu.pipeline_mode<synchronous>, transform_indices = @transform_2, window_bounds = array<i64: 9, 8>}, {pipeline_mode = #tpu.pipeline_mode<synchronous>, transform_indices = @transform_3, window_bounds = array<i64: 1, 8>}, {transform_indices = @transform_4, window_bounds = array<i64: 1, 256, 8>}]} {
    %c0 = arith.constant 0 : index
    %c0_0 = arith.constant 0 : index
    %c0_1 = arith.constant 0 : index
    %0 = vector.load %arg2[%c0, %c0_0, %c0_1] : memref<1x256x8xf32, #tpu.memory_space<vmem>>, vector<1x256x8xf32>
    %1 = vector.shape_cast %0 : vector<1x256x8xf32> to vector<256x8xf32>
    %c0_2 = arith.constant 0 : index
    %c0_3 = arith.constant 0 : index
    %c0_4 = arith.constant 0 : index
    %c0_5 = arith.constant 0 : index
    %2 = vector.load %arg3[%c0_2, %c0_3, %c0_4, %c0_5] : memref<1x1x32x8xf32, #tpu.memory_space<vmem>>, vector<1x1x32x8xf32>
    %3 = vector.shape_cast %2 : vector<1x1x32x8xf32> to vector<32x8xf32>
    %c0_6 = arith.constant 0 : index
    %c0_7 = arith.constant 0 : index
    %4 = vector.load %arg4[%c0_6, %c0_7] : memref<9x8xf32, #tpu.memory_space<vmem>>, vector<9x8xf32>
    %cst = arith.constant 0.000000e+00 : f32
    %5 = vector.broadcast %cst : f32 to vector<1x8xf32>
    %6 = vector.extract_strided_slice %3 {offsets = [0, 0], sizes = [16, 8], strides = [1, 1]} : vector<32x8xf32> to vector<16x8xf32>
    %7 = vector.extract_strided_slice %3 {offsets = [16, 0], sizes = [16, 8], strides = [1, 1]} : vector<32x8xf32> to vector<16x8xf32>
    %8 = tpu.concatenate %5, %6, %1, %7, %5 in 0 : vector<1x8xf32>, vector<16x8xf32>, vector<256x8xf32>, vector<16x8xf32>, vector<1x8xf32> -> vector<290x8xf32>
    %9 = vector.extract_strided_slice %8 {offsets = [1, 0], sizes = [256, 8], strides = [1, 1]} : vector<290x8xf32> to vector<256x8xf32>
    %10 = vector.extract_strided_slice %4 {offsets = [1, 0], sizes = [1, 8], strides = [1, 1]} : vector<9x8xf32> to vector<1x8xf32>
    %11 = vector.broadcast %10 : vector<1x8xf32> to vector<256x8xf32>
    %12 = arith.mulf %9, %11 : vector<256x8xf32>
    %13 = vector.extract_strided_slice %8 {offsets = [17, 0], sizes = [256, 8], strides = [1, 1]} : vector<290x8xf32> to vector<256x8xf32>
    %14 = vector.extract_strided_slice %4 {offsets = [4, 0], sizes = [1, 8], strides = [1, 1]} : vector<9x8xf32> to vector<1x8xf32>
    %15 = vector.broadcast %14 : vector<1x8xf32> to vector<256x8xf32>
    %16 = arith.mulf %13, %15 : vector<256x8xf32>
    %17 = arith.addf %12, %16 : vector<256x8xf32>
    %18 = vector.extract_strided_slice %8 {offsets = [33, 0], sizes = [256, 8], strides = [1, 1]} : vector<290x8xf32> to vector<256x8xf32>
    %19 = vector.extract_strided_slice %4 {offsets = [7, 0], sizes = [1, 8], strides = [1, 1]} : vector<9x8xf32> to vector<1x8xf32>
    %20 = vector.broadcast %19 : vector<1x8xf32> to vector<256x8xf32>
    %21 = arith.mulf %18, %20 : vector<256x8xf32>
    %22 = arith.addf %17, %21 : vector<256x8xf32>
    %23 = vector.extract_strided_slice %8 {offsets = [0, 0], sizes = [256, 8], strides = [1, 1]} : vector<290x8xf32> to vector<256x8xf32>
    %24 = vector.extract_strided_slice %4 {offsets = [0, 0], sizes = [1, 8], strides = [1, 1]} : vector<9x8xf32> to vector<1x8xf32>
    %25 = vector.broadcast %24 : vector<1x8xf32> to vector<256x8xf32>
    %26 = arith.mulf %23, %25 : vector<256x8xf32>
    %27 = vector.extract_strided_slice %8 {offsets = [16, 0], sizes = [256, 8], strides = [1, 1]} : vector<290x8xf32> to vector<256x8xf32>
    %28 = vector.extract_strided_slice %4 {offsets = [3, 0], sizes = [1, 8], strides = [1, 1]} : vector<9x8xf32> to vector<1x8xf32>
    %29 = vector.broadcast %28 : vector<1x8xf32> to vector<256x8xf32>
    %30 = arith.mulf %27, %29 : vector<256x8xf32>
    %31 = arith.addf %26, %30 : vector<256x8xf32>
    %32 = vector.extract_strided_slice %8 {offsets = [32, 0], sizes = [256, 8], strides = [1, 1]} : vector<290x8xf32> to vector<256x8xf32>
    %33 = vector.extract_strided_slice %4 {offsets = [6, 0], sizes = [1, 8], strides = [1, 1]} : vector<9x8xf32> to vector<1x8xf32>
    %34 = vector.broadcast %33 : vector<1x8xf32> to vector<256x8xf32>
    %35 = arith.mulf %32, %34 : vector<256x8xf32>
    %36 = arith.addf %31, %35 : vector<256x8xf32>
    %37 = vector.extract_strided_slice %8 {offsets = [2, 0], sizes = [256, 8], strides = [1, 1]} : vector<290x8xf32> to vector<256x8xf32>
    %38 = vector.extract_strided_slice %4 {offsets = [2, 0], sizes = [1, 8], strides = [1, 1]} : vector<9x8xf32> to vector<1x8xf32>
    %39 = vector.broadcast %38 : vector<1x8xf32> to vector<256x8xf32>
    %40 = arith.mulf %37, %39 : vector<256x8xf32>
    %41 = vector.extract_strided_slice %8 {offsets = [18, 0], sizes = [256, 8], strides = [1, 1]} : vector<290x8xf32> to vector<256x8xf32>
    %42 = vector.extract_strided_slice %4 {offsets = [5, 0], sizes = [1, 8], strides = [1, 1]} : vector<9x8xf32> to vector<1x8xf32>
    %43 = vector.broadcast %42 : vector<1x8xf32> to vector<256x8xf32>
    %44 = arith.mulf %41, %43 : vector<256x8xf32>
    %45 = arith.addf %40, %44 : vector<256x8xf32>
    %46 = vector.extract_strided_slice %8 {offsets = [34, 0], sizes = [256, 8], strides = [1, 1]} : vector<290x8xf32> to vector<256x8xf32>
    %47 = vector.extract_strided_slice %4 {offsets = [8, 0], sizes = [1, 8], strides = [1, 1]} : vector<9x8xf32> to vector<1x8xf32>
    %48 = vector.broadcast %47 : vector<1x8xf32> to vector<256x8xf32>
    %49 = arith.mulf %46, %48 : vector<256x8xf32>
    %50 = arith.addf %45, %49 : vector<256x8xf32>
    %51 = tpu.iota {dimensions = array<i32: 0>} : vector<256x8xi32>
    %c16_i32 = arith.constant 16 : i32
    %c0_i32 = arith.constant 0 : i32
    %52 = arith.cmpi eq, %c16_i32, %c0_i32 : i32
    %c1_i32 = arith.constant 1 : i32
    %53 = arith.select %52, %c1_i32, %c16_i32 : i32
    %54 = vector.broadcast %53 : i32 to vector<256x8xi32>
    %55 = arith.remsi %51, %54 : vector<256x8xi32>
    %c0_i32_8 = arith.constant 0 : i32
    %56 = vector.broadcast %c0_i32_8 : i32 to vector<256x8xi32>
    %57 = arith.cmpi ne, %55, %56 : vector<256x8xi32>
    %c0_i32_9 = arith.constant 0 : i32
    %58 = vector.broadcast %c0_i32_9 : i32 to vector<256x8xi32>
    %59 = arith.cmpi slt, %55, %58 : vector<256x8xi32>
    %c0_i32_10 = arith.constant 0 : i32
    %60 = arith.cmpi slt, %53, %c0_i32_10 : i32
    %61 = vector.broadcast %60 : i1 to vector<256x8xi1>
    %62 = vector.broadcast %61 : vector<256x8xi1> to vector<256x8xi1>
    %63 = arith.xori %59, %62 : vector<256x8xi1>
    %64 = arith.andi %63, %57 : vector<256x8xi1>
    %65 = vector.broadcast %53 : i32 to vector<256x8xi32>
    %66 = arith.addi %55, %65 : vector<256x8xi32>
    %67 = arith.select %64, %66, %55 : vector<256x8xi1>, vector<256x8xi32>
    %c0_11 = arith.constant 0 : index
    %c0_12 = arith.constant 0 : index
    %68 = vector.load %arg5[%c0_11, %c0_12] : memref<1x8xf32, #tpu.memory_space<vmem>>, vector<1x8xf32>
    %69 = vector.broadcast %68 : vector<1x8xf32> to vector<256x8xf32>
    %70 = arith.addf %22, %69 : vector<256x8xf32>
    %c0_i32_13 = arith.constant 0 : i32
    %71 = vector.broadcast %c0_i32_13 : i32 to vector<256x8xi32>
    %72 = arith.cmpi ne, %67, %71 : vector<256x8xi32>
    %cst_14 = arith.constant 0.000000e+00 : f32
    %73 = vector.broadcast %cst_14 : f32 to vector<256x8xf32>
    %74 = arith.select %72, %36, %73 : vector<256x8xi1>, vector<256x8xf32>
    %75 = arith.addf %70, %74 : vector<256x8xf32>
    %c15_i32 = arith.constant 15 : i32
    %76 = vector.broadcast %c15_i32 : i32 to vector<256x8xi32>
    %77 = arith.cmpi ne, %67, %76 : vector<256x8xi32>
    %cst_15 = arith.constant 0.000000e+00 : f32
    %78 = vector.broadcast %cst_15 : f32 to vector<256x8xf32>
    %79 = arith.select %77, %50, %78 : vector<256x8xi1>, vector<256x8xf32>
    %80 = arith.addf %75, %79 : vector<256x8xf32>
    %c0_16 = arith.constant 0 : index
    %c0_17 = arith.constant 0 : index
    %c0_18 = arith.constant 0 : index
    %81 = vector.load %arg6[%c0_16, %c0_17, %c0_18] : memref<1x256x8xf32, #tpu.memory_space<vmem>>, vector<1x256x8xf32>
    %82 = vector.shape_cast %81 : vector<1x256x8xf32> to vector<256x8xf32>
    %83 = vector.shape_cast %80 : vector<256x8xf32> to vector<1x256x8xf32>
    tpu.vector_store %arg6[%c0_16, %c0_17, %c0_18], %83 {strides = array<i32>} : memref<1x256x8xf32, #tpu.memory_space<vmem>>, vector<1x256x8xf32>,
    return
  }
  func.func @transform_0(%arg0: i32, %arg1: i32) -> (i32, i32, i32) {
    %c0_i32 = arith.constant 0 : i32
    %0 = arith.addi %c0_i32, %arg1 : i32
    %c0_i32_0 = arith.constant 0 : i32
    %c0_i32_1 = arith.constant 0 : i32
    return %arg0, %0, %c0_i32_0 : i32, i32, i32
  }
  func.func @transform_1(%arg0: i32, %arg1: i32) -> (i32, i32, i32, i32) {
    %c0_i32 = arith.constant 0 : i32
    %c0_i32_0 = arith.constant 0 : i32
    %c0_i32_1 = arith.constant 0 : i32
    return %arg0, %arg1, %c0_i32, %c0_i32_0 : i32, i32, i32, i32
  }
  func.func @transform_2(%arg0: i32, %arg1: i32) -> (i32, i32) {
    %c0_i32 = arith.constant 0 : i32
    %c0_i32_0 = arith.constant 0 : i32
    %c0_i32_1 = arith.constant 0 : i32
    return %c0_i32, %c0_i32_0 : i32, i32
  }
  func.func @transform_3(%arg0: i32, %arg1: i32) -> (i32, i32) {
    %c0_i32 = arith.constant 0 : i32
    %c0_i32_0 = arith.constant 0 : i32
    %c0_i32_1 = arith.constant 0 : i32
    return %c0_i32, %c0_i32_0 : i32, i32
  }
  func.func @transform_4(%arg0: i32, %arg1: i32) -> (i32, i32, i32) {
    %c0_i32 = arith.constant 0 : i32
    %c0_i32_0 = arith.constant 0 : i32
    return %arg0, %arg1, %c0_i32 : i32, i32, i32
  }
}

module attributes {stable_mosaic.version = 11 : i64} {
  func.func @_dwconv_level_kernel(%arg0: i32, %arg1: i32, %arg2: memref<1x4x8xf32, #tpu.memory_space<vmem>>, %arg3: memref<1x1x4x8xf32, #tpu.memory_space<vmem>>, %arg4: memref<9x8xf32, #tpu.memory_space<vmem>>, %arg5: memref<1x8xf32, #tpu.memory_space<vmem>>, %arg6: memref<1x4x8xf32, #tpu.memory_space<vmem>>) attributes {dimension_semantics = [#tpu.dimension_semantics<parallel>, #tpu.dimension_semantics<parallel>], iteration_bounds = array<i64: 2, 1>, scalar_prefetch = 0 : i64, scratch_operands = 0 : i64, tpu.core_type = #tpu.core_type<tc>, window_params = [{transform_indices = @transform_0, window_bounds = array<i64: 1, 4, 8>}, {transform_indices = @transform_1, window_bounds = array<i64: 1, 1, 4, 8>}, {pipeline_mode = #tpu.pipeline_mode<synchronous>, transform_indices = @transform_2, window_bounds = array<i64: 9, 8>}, {pipeline_mode = #tpu.pipeline_mode<synchronous>, transform_indices = @transform_3, window_bounds = array<i64: 1, 8>}, {transform_indices = @transform_4, window_bounds = array<i64: 1, 4, 8>}]} {
    %c0 = arith.constant 0 : index
    %c0_0 = arith.constant 0 : index
    %c0_1 = arith.constant 0 : index
    %0 = vector.load %arg2[%c0, %c0_0, %c0_1] : memref<1x4x8xf32, #tpu.memory_space<vmem>>, vector<1x4x8xf32>
    %1 = vector.shape_cast %0 : vector<1x4x8xf32> to vector<4x8xf32>
    %c0_2 = arith.constant 0 : index
    %c0_3 = arith.constant 0 : index
    %c0_4 = arith.constant 0 : index
    %c0_5 = arith.constant 0 : index
    %2 = vector.load %arg3[%c0_2, %c0_3, %c0_4, %c0_5] : memref<1x1x4x8xf32, #tpu.memory_space<vmem>>, vector<1x1x4x8xf32>
    %3 = vector.shape_cast %2 : vector<1x1x4x8xf32> to vector<4x8xf32>
    %c0_6 = arith.constant 0 : index
    %c0_7 = arith.constant 0 : index
    %4 = vector.load %arg4[%c0_6, %c0_7] : memref<9x8xf32, #tpu.memory_space<vmem>>, vector<9x8xf32>
    %cst = arith.constant 0.000000e+00 : f32
    %5 = vector.broadcast %cst : f32 to vector<1x8xf32>
    %6 = vector.extract_strided_slice %3 {offsets = [0, 0], sizes = [2, 8], strides = [1, 1]} : vector<4x8xf32> to vector<2x8xf32>
    %7 = vector.extract_strided_slice %3 {offsets = [2, 0], sizes = [2, 8], strides = [1, 1]} : vector<4x8xf32> to vector<2x8xf32>
    %8 = tpu.concatenate %5, %6, %1, %7, %5 in 0 : vector<1x8xf32>, vector<2x8xf32>, vector<4x8xf32>, vector<2x8xf32>, vector<1x8xf32> -> vector<10x8xf32>
    %9 = vector.extract_strided_slice %8 {offsets = [1, 0], sizes = [4, 8], strides = [1, 1]} : vector<10x8xf32> to vector<4x8xf32>
    %10 = vector.extract_strided_slice %4 {offsets = [1, 0], sizes = [1, 8], strides = [1, 1]} : vector<9x8xf32> to vector<1x8xf32>
    %11 = vector.broadcast %10 : vector<1x8xf32> to vector<4x8xf32>
    %12 = arith.mulf %9, %11 : vector<4x8xf32>
    %13 = vector.extract_strided_slice %8 {offsets = [3, 0], sizes = [4, 8], strides = [1, 1]} : vector<10x8xf32> to vector<4x8xf32>
    %14 = vector.extract_strided_slice %4 {offsets = [4, 0], sizes = [1, 8], strides = [1, 1]} : vector<9x8xf32> to vector<1x8xf32>
    %15 = vector.broadcast %14 : vector<1x8xf32> to vector<4x8xf32>
    %16 = arith.mulf %13, %15 : vector<4x8xf32>
    %17 = arith.addf %12, %16 : vector<4x8xf32>
    %18 = vector.extract_strided_slice %8 {offsets = [5, 0], sizes = [4, 8], strides = [1, 1]} : vector<10x8xf32> to vector<4x8xf32>
    %19 = vector.extract_strided_slice %4 {offsets = [7, 0], sizes = [1, 8], strides = [1, 1]} : vector<9x8xf32> to vector<1x8xf32>
    %20 = vector.broadcast %19 : vector<1x8xf32> to vector<4x8xf32>
    %21 = arith.mulf %18, %20 : vector<4x8xf32>
    %22 = arith.addf %17, %21 : vector<4x8xf32>
    %23 = vector.extract_strided_slice %8 {offsets = [0, 0], sizes = [4, 8], strides = [1, 1]} : vector<10x8xf32> to vector<4x8xf32>
    %24 = vector.extract_strided_slice %4 {offsets = [0, 0], sizes = [1, 8], strides = [1, 1]} : vector<9x8xf32> to vector<1x8xf32>
    %25 = vector.broadcast %24 : vector<1x8xf32> to vector<4x8xf32>
    %26 = arith.mulf %23, %25 : vector<4x8xf32>
    %27 = vector.extract_strided_slice %8 {offsets = [2, 0], sizes = [4, 8], strides = [1, 1]} : vector<10x8xf32> to vector<4x8xf32>
    %28 = vector.extract_strided_slice %4 {offsets = [3, 0], sizes = [1, 8], strides = [1, 1]} : vector<9x8xf32> to vector<1x8xf32>
    %29 = vector.broadcast %28 : vector<1x8xf32> to vector<4x8xf32>
    %30 = arith.mulf %27, %29 : vector<4x8xf32>
    %31 = arith.addf %26, %30 : vector<4x8xf32>
    %32 = vector.extract_strided_slice %8 {offsets = [4, 0], sizes = [4, 8], strides = [1, 1]} : vector<10x8xf32> to vector<4x8xf32>
    %33 = vector.extract_strided_slice %4 {offsets = [6, 0], sizes = [1, 8], strides = [1, 1]} : vector<9x8xf32> to vector<1x8xf32>
    %34 = vector.broadcast %33 : vector<1x8xf32> to vector<4x8xf32>
    %35 = arith.mulf %32, %34 : vector<4x8xf32>
    %36 = arith.addf %31, %35 : vector<4x8xf32>
    %37 = vector.extract_strided_slice %8 {offsets = [2, 0], sizes = [4, 8], strides = [1, 1]} : vector<10x8xf32> to vector<4x8xf32>
    %38 = vector.extract_strided_slice %4 {offsets = [2, 0], sizes = [1, 8], strides = [1, 1]} : vector<9x8xf32> to vector<1x8xf32>
    %39 = vector.broadcast %38 : vector<1x8xf32> to vector<4x8xf32>
    %40 = arith.mulf %37, %39 : vector<4x8xf32>
    %41 = vector.extract_strided_slice %8 {offsets = [4, 0], sizes = [4, 8], strides = [1, 1]} : vector<10x8xf32> to vector<4x8xf32>
    %42 = vector.extract_strided_slice %4 {offsets = [5, 0], sizes = [1, 8], strides = [1, 1]} : vector<9x8xf32> to vector<1x8xf32>
    %43 = vector.broadcast %42 : vector<1x8xf32> to vector<4x8xf32>
    %44 = arith.mulf %41, %43 : vector<4x8xf32>
    %45 = arith.addf %40, %44 : vector<4x8xf32>
    %46 = vector.extract_strided_slice %8 {offsets = [6, 0], sizes = [4, 8], strides = [1, 1]} : vector<10x8xf32> to vector<4x8xf32>
    %47 = vector.extract_strided_slice %4 {offsets = [8, 0], sizes = [1, 8], strides = [1, 1]} : vector<9x8xf32> to vector<1x8xf32>
    %48 = vector.broadcast %47 : vector<1x8xf32> to vector<4x8xf32>
    %49 = arith.mulf %46, %48 : vector<4x8xf32>
    %50 = arith.addf %45, %49 : vector<4x8xf32>
    %51 = tpu.iota {dimensions = array<i32: 0>} : vector<4x8xi32>
    %c2_i32 = arith.constant 2 : i32
    %c0_i32 = arith.constant 0 : i32
    %52 = arith.cmpi eq, %c2_i32, %c0_i32 : i32
    %c1_i32 = arith.constant 1 : i32
    %53 = arith.select %52, %c1_i32, %c2_i32 : i32
    %54 = vector.broadcast %53 : i32 to vector<4x8xi32>
    %55 = arith.remsi %51, %54 : vector<4x8xi32>
    %c0_i32_8 = arith.constant 0 : i32
    %56 = vector.broadcast %c0_i32_8 : i32 to vector<4x8xi32>
    %57 = arith.cmpi ne, %55, %56 : vector<4x8xi32>
    %c0_i32_9 = arith.constant 0 : i32
    %58 = vector.broadcast %c0_i32_9 : i32 to vector<4x8xi32>
    %59 = arith.cmpi slt, %55, %58 : vector<4x8xi32>
    %c0_i32_10 = arith.constant 0 : i32
    %60 = arith.cmpi slt, %53, %c0_i32_10 : i32
    %61 = vector.broadcast %60 : i1 to vector<4x8xi1>
    %62 = vector.broadcast %61 : vector<4x8xi1> to vector<4x8xi1>
    %63 = arith.xori %59, %62 : vector<4x8xi1>
    %64 = arith.andi %63, %57 : vector<4x8xi1>
    %65 = vector.broadcast %53 : i32 to vector<4x8xi32>
    %66 = arith.addi %55, %65 : vector<4x8xi32>
    %67 = arith.select %64, %66, %55 : vector<4x8xi1>, vector<4x8xi32>
    %c0_11 = arith.constant 0 : index
    %c0_12 = arith.constant 0 : index
    %68 = vector.load %arg5[%c0_11, %c0_12] : memref<1x8xf32, #tpu.memory_space<vmem>>, vector<1x8xf32>
    %69 = vector.broadcast %68 : vector<1x8xf32> to vector<4x8xf32>
    %70 = arith.addf %22, %69 : vector<4x8xf32>
    %c0_i32_13 = arith.constant 0 : i32
    %71 = vector.broadcast %c0_i32_13 : i32 to vector<4x8xi32>
    %72 = arith.cmpi ne, %67, %71 : vector<4x8xi32>
    %cst_14 = arith.constant 0.000000e+00 : f32
    %73 = vector.broadcast %cst_14 : f32 to vector<4x8xf32>
    %74 = arith.select %72, %36, %73 : vector<4x8xi1>, vector<4x8xf32>
    %75 = arith.addf %70, %74 : vector<4x8xf32>
    %c1_i32_15 = arith.constant 1 : i32
    %76 = vector.broadcast %c1_i32_15 : i32 to vector<4x8xi32>
    %77 = arith.cmpi ne, %67, %76 : vector<4x8xi32>
    %cst_16 = arith.constant 0.000000e+00 : f32
    %78 = vector.broadcast %cst_16 : f32 to vector<4x8xf32>
    %79 = arith.select %77, %50, %78 : vector<4x8xi1>, vector<4x8xf32>
    %80 = arith.addf %75, %79 : vector<4x8xf32>
    %c0_17 = arith.constant 0 : index
    %c0_18 = arith.constant 0 : index
    %c0_19 = arith.constant 0 : index
    %81 = vector.load %arg6[%c0_17, %c0_18, %c0_19] : memref<1x4x8xf32, #tpu.memory_space<vmem>>, vector<1x4x8xf32>
    %82 = vector.shape_cast %81 : vector<1x4x8xf32> to vector<4x8xf32>
    %83 = vector.shape_cast %80 : vector<4x8xf32> to vector<1x4x8xf32>
    tpu.vector_store %arg6[%c0_17, %c0_18, %c0_19], %83 {strides = array<i32>} : memref<1x4x8xf32, #tpu.memory_space<vmem>>, vector<1x4x8xf32>,
    return
  }
  func.func @transform_0(%arg0: i32, %arg1: i32) -> (i32, i32, i32) {
    %c0_i32 = arith.constant 0 : i32
    %0 = arith.addi %c0_i32, %arg1 : i32
    %c0_i32_0 = arith.constant 0 : i32
    %c0_i32_1 = arith.constant 0 : i32
    return %arg0, %0, %c0_i32_0 : i32, i32, i32
  }
  func.func @transform_1(%arg0: i32, %arg1: i32) -> (i32, i32, i32, i32) {
    %c0_i32 = arith.constant 0 : i32
    %c0_i32_0 = arith.constant 0 : i32
    %c0_i32_1 = arith.constant 0 : i32
    return %arg0, %arg1, %c0_i32, %c0_i32_0 : i32, i32, i32, i32
  }
  func.func @transform_2(%arg0: i32, %arg1: i32) -> (i32, i32) {
    %c0_i32 = arith.constant 0 : i32
    %c0_i32_0 = arith.constant 0 : i32
    %c0_i32_1 = arith.constant 0 : i32
    return %c0_i32, %c0_i32_0 : i32, i32
  }
  func.func @transform_3(%arg0: i32, %arg1: i32) -> (i32, i32) {
    %c0_i32 = arith.constant 0 : i32
    %c0_i32_0 = arith.constant 0 : i32
    %c0_i32_1 = arith.constant 0 : i32
    return %c0_i32, %c0_i32_0 : i32, i32
  }
  func.func @transform_4(%arg0: i32, %arg1: i32) -> (i32, i32, i32) {
    %c0_i32 = arith.constant 0 : i32
    %c0_i32_0 = arith.constant 0 : i32
    return %arg0, %arg1, %c0_i32 : i32, i32, i32
  }
}

module attributes {stable_mosaic.version = 11 : i64} {
  func.func @_dwconv_level_kernel(%arg0: i32, %arg1: i32, %arg2: memref<1x16x8xf32, #tpu.memory_space<vmem>>, %arg3: memref<1x1x8x8xf32, #tpu.memory_space<vmem>>, %arg4: memref<9x8xf32, #tpu.memory_space<vmem>>, %arg5: memref<1x8xf32, #tpu.memory_space<vmem>>, %arg6: memref<1x16x8xf32, #tpu.memory_space<vmem>>) attributes {dimension_semantics = [#tpu.dimension_semantics<parallel>, #tpu.dimension_semantics<parallel>], iteration_bounds = array<i64: 2, 1>, scalar_prefetch = 0 : i64, scratch_operands = 0 : i64, tpu.core_type = #tpu.core_type<tc>, window_params = [{transform_indices = @transform_0, window_bounds = array<i64: 1, 16, 8>}, {transform_indices = @transform_1, window_bounds = array<i64: 1, 1, 8, 8>}, {pipeline_mode = #tpu.pipeline_mode<synchronous>, transform_indices = @transform_2, window_bounds = array<i64: 9, 8>}, {pipeline_mode = #tpu.pipeline_mode<synchronous>, transform_indices = @transform_3, window_bounds = array<i64: 1, 8>}, {transform_indices = @transform_4, window_bounds = array<i64: 1, 16, 8>}]} {
    %c0 = arith.constant 0 : index
    %c0_0 = arith.constant 0 : index
    %c0_1 = arith.constant 0 : index
    %0 = vector.load %arg2[%c0, %c0_0, %c0_1] : memref<1x16x8xf32, #tpu.memory_space<vmem>>, vector<1x16x8xf32>
    %1 = vector.shape_cast %0 : vector<1x16x8xf32> to vector<16x8xf32>
    %c0_2 = arith.constant 0 : index
    %c0_3 = arith.constant 0 : index
    %c0_4 = arith.constant 0 : index
    %c0_5 = arith.constant 0 : index
    %2 = vector.load %arg3[%c0_2, %c0_3, %c0_4, %c0_5] : memref<1x1x8x8xf32, #tpu.memory_space<vmem>>, vector<1x1x8x8xf32>
    %3 = vector.shape_cast %2 : vector<1x1x8x8xf32> to vector<8x8xf32>
    %c0_6 = arith.constant 0 : index
    %c0_7 = arith.constant 0 : index
    %4 = vector.load %arg4[%c0_6, %c0_7] : memref<9x8xf32, #tpu.memory_space<vmem>>, vector<9x8xf32>
    %cst = arith.constant 0.000000e+00 : f32
    %5 = vector.broadcast %cst : f32 to vector<1x8xf32>
    %6 = vector.extract_strided_slice %3 {offsets = [0, 0], sizes = [4, 8], strides = [1, 1]} : vector<8x8xf32> to vector<4x8xf32>
    %7 = vector.extract_strided_slice %3 {offsets = [4, 0], sizes = [4, 8], strides = [1, 1]} : vector<8x8xf32> to vector<4x8xf32>
    %8 = tpu.concatenate %5, %6, %1, %7, %5 in 0 : vector<1x8xf32>, vector<4x8xf32>, vector<16x8xf32>, vector<4x8xf32>, vector<1x8xf32> -> vector<26x8xf32>
    %9 = vector.extract_strided_slice %8 {offsets = [1, 0], sizes = [16, 8], strides = [1, 1]} : vector<26x8xf32> to vector<16x8xf32>
    %10 = vector.extract_strided_slice %4 {offsets = [1, 0], sizes = [1, 8], strides = [1, 1]} : vector<9x8xf32> to vector<1x8xf32>
    %11 = vector.broadcast %10 : vector<1x8xf32> to vector<16x8xf32>
    %12 = arith.mulf %9, %11 : vector<16x8xf32>
    %13 = vector.extract_strided_slice %8 {offsets = [5, 0], sizes = [16, 8], strides = [1, 1]} : vector<26x8xf32> to vector<16x8xf32>
    %14 = vector.extract_strided_slice %4 {offsets = [4, 0], sizes = [1, 8], strides = [1, 1]} : vector<9x8xf32> to vector<1x8xf32>
    %15 = vector.broadcast %14 : vector<1x8xf32> to vector<16x8xf32>
    %16 = arith.mulf %13, %15 : vector<16x8xf32>
    %17 = arith.addf %12, %16 : vector<16x8xf32>
    %18 = vector.extract_strided_slice %8 {offsets = [9, 0], sizes = [16, 8], strides = [1, 1]} : vector<26x8xf32> to vector<16x8xf32>
    %19 = vector.extract_strided_slice %4 {offsets = [7, 0], sizes = [1, 8], strides = [1, 1]} : vector<9x8xf32> to vector<1x8xf32>
    %20 = vector.broadcast %19 : vector<1x8xf32> to vector<16x8xf32>
    %21 = arith.mulf %18, %20 : vector<16x8xf32>
    %22 = arith.addf %17, %21 : vector<16x8xf32>
    %23 = vector.extract_strided_slice %8 {offsets = [0, 0], sizes = [16, 8], strides = [1, 1]} : vector<26x8xf32> to vector<16x8xf32>
    %24 = vector.extract_strided_slice %4 {offsets = [0, 0], sizes = [1, 8], strides = [1, 1]} : vector<9x8xf32> to vector<1x8xf32>
    %25 = vector.broadcast %24 : vector<1x8xf32> to vector<16x8xf32>
    %26 = arith.mulf %23, %25 : vector<16x8xf32>
    %27 = vector.extract_strided_slice %8 {offsets = [4, 0], sizes = [16, 8], strides = [1, 1]} : vector<26x8xf32> to vector<16x8xf32>
    %28 = vector.extract_strided_slice %4 {offsets = [3, 0], sizes = [1, 8], strides = [1, 1]} : vector<9x8xf32> to vector<1x8xf32>
    %29 = vector.broadcast %28 : vector<1x8xf32> to vector<16x8xf32>
    %30 = arith.mulf %27, %29 : vector<16x8xf32>
    %31 = arith.addf %26, %30 : vector<16x8xf32>
    %32 = vector.extract_strided_slice %8 {offsets = [8, 0], sizes = [16, 8], strides = [1, 1]} : vector<26x8xf32> to vector<16x8xf32>
    %33 = vector.extract_strided_slice %4 {offsets = [6, 0], sizes = [1, 8], strides = [1, 1]} : vector<9x8xf32> to vector<1x8xf32>
    %34 = vector.broadcast %33 : vector<1x8xf32> to vector<16x8xf32>
    %35 = arith.mulf %32, %34 : vector<16x8xf32>
    %36 = arith.addf %31, %35 : vector<16x8xf32>
    %37 = vector.extract_strided_slice %8 {offsets = [2, 0], sizes = [16, 8], strides = [1, 1]} : vector<26x8xf32> to vector<16x8xf32>
    %38 = vector.extract_strided_slice %4 {offsets = [2, 0], sizes = [1, 8], strides = [1, 1]} : vector<9x8xf32> to vector<1x8xf32>
    %39 = vector.broadcast %38 : vector<1x8xf32> to vector<16x8xf32>
    %40 = arith.mulf %37, %39 : vector<16x8xf32>
    %41 = vector.extract_strided_slice %8 {offsets = [6, 0], sizes = [16, 8], strides = [1, 1]} : vector<26x8xf32> to vector<16x8xf32>
    %42 = vector.extract_strided_slice %4 {offsets = [5, 0], sizes = [1, 8], strides = [1, 1]} : vector<9x8xf32> to vector<1x8xf32>
    %43 = vector.broadcast %42 : vector<1x8xf32> to vector<16x8xf32>
    %44 = arith.mulf %41, %43 : vector<16x8xf32>
    %45 = arith.addf %40, %44 : vector<16x8xf32>
    %46 = vector.extract_strided_slice %8 {offsets = [10, 0], sizes = [16, 8], strides = [1, 1]} : vector<26x8xf32> to vector<16x8xf32>
    %47 = vector.extract_strided_slice %4 {offsets = [8, 0], sizes = [1, 8], strides = [1, 1]} : vector<9x8xf32> to vector<1x8xf32>
    %48 = vector.broadcast %47 : vector<1x8xf32> to vector<16x8xf32>
    %49 = arith.mulf %46, %48 : vector<16x8xf32>
    %50 = arith.addf %45, %49 : vector<16x8xf32>
    %51 = tpu.iota {dimensions = array<i32: 0>} : vector<16x8xi32>
    %c4_i32 = arith.constant 4 : i32
    %c0_i32 = arith.constant 0 : i32
    %52 = arith.cmpi eq, %c4_i32, %c0_i32 : i32
    %c1_i32 = arith.constant 1 : i32
    %53 = arith.select %52, %c1_i32, %c4_i32 : i32
    %54 = vector.broadcast %53 : i32 to vector<16x8xi32>
    %55 = arith.remsi %51, %54 : vector<16x8xi32>
    %c0_i32_8 = arith.constant 0 : i32
    %56 = vector.broadcast %c0_i32_8 : i32 to vector<16x8xi32>
    %57 = arith.cmpi ne, %55, %56 : vector<16x8xi32>
    %c0_i32_9 = arith.constant 0 : i32
    %58 = vector.broadcast %c0_i32_9 : i32 to vector<16x8xi32>
    %59 = arith.cmpi slt, %55, %58 : vector<16x8xi32>
    %c0_i32_10 = arith.constant 0 : i32
    %60 = arith.cmpi slt, %53, %c0_i32_10 : i32
    %61 = vector.broadcast %60 : i1 to vector<16x8xi1>
    %62 = vector.broadcast %61 : vector<16x8xi1> to vector<16x8xi1>
    %63 = arith.xori %59, %62 : vector<16x8xi1>
    %64 = arith.andi %63, %57 : vector<16x8xi1>
    %65 = vector.broadcast %53 : i32 to vector<16x8xi32>
    %66 = arith.addi %55, %65 : vector<16x8xi32>
    %67 = arith.select %64, %66, %55 : vector<16x8xi1>, vector<16x8xi32>
    %c0_11 = arith.constant 0 : index
    %c0_12 = arith.constant 0 : index
    %68 = vector.load %arg5[%c0_11, %c0_12] : memref<1x8xf32, #tpu.memory_space<vmem>>, vector<1x8xf32>
    %69 = vector.broadcast %68 : vector<1x8xf32> to vector<16x8xf32>
    %70 = arith.addf %22, %69 : vector<16x8xf32>
    %c0_i32_13 = arith.constant 0 : i32
    %71 = vector.broadcast %c0_i32_13 : i32 to vector<16x8xi32>
    %72 = arith.cmpi ne, %67, %71 : vector<16x8xi32>
    %cst_14 = arith.constant 0.000000e+00 : f32
    %73 = vector.broadcast %cst_14 : f32 to vector<16x8xf32>
    %74 = arith.select %72, %36, %73 : vector<16x8xi1>, vector<16x8xf32>
    %75 = arith.addf %70, %74 : vector<16x8xf32>
    %c3_i32 = arith.constant 3 : i32
    %76 = vector.broadcast %c3_i32 : i32 to vector<16x8xi32>
    %77 = arith.cmpi ne, %67, %76 : vector<16x8xi32>
    %cst_15 = arith.constant 0.000000e+00 : f32
    %78 = vector.broadcast %cst_15 : f32 to vector<16x8xf32>
    %79 = arith.select %77, %50, %78 : vector<16x8xi1>, vector<16x8xf32>
    %80 = arith.addf %75, %79 : vector<16x8xf32>
    %c0_16 = arith.constant 0 : index
    %c0_17 = arith.constant 0 : index
    %c0_18 = arith.constant 0 : index
    %81 = vector.load %arg6[%c0_16, %c0_17, %c0_18] : memref<1x16x8xf32, #tpu.memory_space<vmem>>, vector<1x16x8xf32>
    %82 = vector.shape_cast %81 : vector<1x16x8xf32> to vector<16x8xf32>
    %83 = vector.shape_cast %80 : vector<16x8xf32> to vector<1x16x8xf32>
    tpu.vector_store %arg6[%c0_16, %c0_17, %c0_18], %83 {strides = array<i32>} : memref<1x16x8xf32, #tpu.memory_space<vmem>>, vector<1x16x8xf32>,
    return
  }
  func.func @transform_0(%arg0: i32, %arg1: i32) -> (i32, i32, i32) {
    %c20_i32 = arith.constant 20 : i32
    %0 = arith.addi %c20_i32, %arg1 : i32
    %c0_i32 = arith.constant 0 : i32
    %c0_i32_0 = arith.constant 0 : i32
    return %arg0, %0, %c0_i32 : i32, i32, i32
  }
  func.func @transform_1(%arg0: i32, %arg1: i32) -> (i32, i32, i32, i32) {
    %c0_i32 = arith.constant 0 : i32
    %c0_i32_0 = arith.constant 0 : i32
    %c0_i32_1 = arith.constant 0 : i32
    return %arg0, %arg1, %c0_i32, %c0_i32_0 : i32, i32, i32, i32
  }
  func.func @transform_2(%arg0: i32, %arg1: i32) -> (i32, i32) {
    %c0_i32 = arith.constant 0 : i32
    %c0_i32_0 = arith.constant 0 : i32
    %c0_i32_1 = arith.constant 0 : i32
    return %c0_i32, %c0_i32_0 : i32, i32
  }
  func.func @transform_3(%arg0: i32, %arg1: i32) -> (i32, i32) {
    %c0_i32 = arith.constant 0 : i32
    %c0_i32_0 = arith.constant 0 : i32
    %c0_i32_1 = arith.constant 0 : i32
    return %c0_i32, %c0_i32_0 : i32, i32
  }
  func.func @transform_4(%arg0: i32, %arg1: i32) -> (i32, i32, i32) {
    %c0_i32 = arith.constant 0 : i32
    %c0_i32_0 = arith.constant 0 : i32
    return %arg0, %arg1, %c0_i32 : i32, i32, i32
  }
}

</mosaic_0001>

<bundles_post_ra>
// kernel: dwconv_forward.7
= control target key start
LH: loop header
LB: loop body
LE: loop exit
PB: predicated region body
PF: predicated region fallthrough
CT: control target
= control target key end

     0   :  { %s562_s15 = smov 0   ;;  %s564_s16 = smov 0   ;;  %s628_s0 = inlined_call_operand.vmem [shape: f32[2,4,8], index: 0, kind: input, shape index: {}]   ;;  %s629_s1 = inlined_call_operand.vmem [shape: f32[2,1,4,8], index: 1, kind: input, shape index: {}]   ;;  %s630_s2 = inlined_call_operand.vmem [shape: f32[9,8], index: 2, kind: input, shape index: {}]   ;;  %s631_s3 = inlined_call_operand.vmem [shape: f32[1,8], index: 3, kind: input, shape index: {}]   ;;  %s632_s4 = inlined_call_operand.vmem [shape: f32[2,4,8], index: 4, kind: output, shape index: {}]  }
   0x1   :  { %s566_s17 = smov 0  }
   0x2 LB: > { %s26_s18 = sadd.s32 1, %s531_s16  ;;  %p481_p0 = scmp.ge.s32.totalorder %s535_s17, 1  ;;  %s535_s17 = sphi %s566_s17, %s14_s17   ;;  %s531_s16 = sphi %s564_s16, %s634_s16   ;;  %s527_s15 = sphi %s562_s15, %s633_s15  }
   0x3   : > { %p28_p1 = scmp.ge.s32.totalorder %s26_s18, 2  ;;  %p194_p2 = scmp.lt.s32.totalorder %s535_s17, 3 }
   0x5   : > { %s636_s18 = smov (%p28_p1, %s26_s18), 0  ;;  %p195_p3 = pnand %p481_p0, %p194_p2 }
   0x6   : > { %p231_p4 = scmp.lt.s32.totalorder (!%p195_p3), %s527_s15, 1 }
   0x7   : > { %198 = sbr.rel (%p195_p3) target bundleno = 41 (0x29), region = 36 }
   0xc   : > { %v271_v0 = vlaneseq  ;;  %s638_s15 = smov (!%p231_p4, %s527_s15), 1  ;;  %v254_v6 = vld [vmem:[%s630_s2] sm:$0xff]  ;;  %vm264_vm0 = vcmask 1040384   ;;  %vm266_vm1 = vcmask 1042432   ;;  %vm268_vm2 = vcmask 1046528  }
   0xd   : > { %s582_s19 = sshll.u32 %s638_s15, 2  ;;  %v485_v17 = vld [vmem:[%s630_s2 + $0x8] ss:$0 sm:$0xff]  ;;  %vm293_vm3 = vcmask 1043456   ;;  %v486_v52 = vld [vmem:[%s631_s3] ss:$0 sm:$0xff] }
   0xe   : > { %v580_v1 = vshrl.u32 %v271_v0, 7  ;;  %s237_s22 = scalar_lea.vmem %s628_s0, %s582_s19  ;;  %s244_s25 = scalar_lea.vmem %s629_s1, %s582_s19  ;;  %vm386_vm6 = vcmask 61441  }
   0xf   : > { %v252_v10 = vld [vmem:[%s237_s22] sm:$0xf]  ;;  %s251_s8 = scalar_lea.vmem %s632_s4, %s582_s19 }
  0x10   : > { %v273_v2 = vsub.s32 1, %v580_v1  ;;  %v278_v3 = vsub.s32 4, %v580_v1  ;;  %v287_v4 = vsub.s32 7, %v580_v1  ;;  %v301_v5 = vsub.s32 0, %v580_v1  ;;  %v253_v11 = vld [vmem:[%s244_s25] sm:$0xf] }
  0x11   : > { %v306_v7 = vsub.s32 3, %v580_v1  ;;  %v315_v8 = vsub.s32 6, %v580_v1  ;;  %v324_v9 = vsub.s32 2, %v580_v1  ;;  %v329_v13 = vsub.s32 5, %v580_v1 }
  0x12   : > { %v288_v12 = vrot.slane %v254_v6, %v287_v4  ;;  %v257_v14 = vrot.slane %v253_v11, 7  ;;  %v260_v15 = vrot.slane %v252_v10, 5  ;;  %v262_v16 = vrot.slane %v253_v11, 3 }
  0x13   : > { %v274_v18 = vrot.slane %v254_v6, %v273_v2  ;;  %v279_v19 = vrot.slane %v254_v6, %v278_v3  ;;  %v302_v20 = vrot.slane %v254_v6, %v301_v5  ;;  %v307_v21 = vrot.slane %v254_v6, %v306_v7 }
  0x14   : > { %v265_v22 = vsel %vm264_vm0, 0.0, %v257_v14  ;;  %v270_v23 = vsel %vm264_vm0, %v262_v16, 0.0  ;;  %v316_v24 = vrot.slane %v254_v6, %v315_v8  ;;  %v325_v25 = vrot.slane %v254_v6, %v324_v9 }
  0x15   : > { %v267_v26 = vsel %vm266_vm1, %v265_v22, %v260_v15  ;;  %v290_v27 = vmul.f32 %v288_v12, %v270_v23  ;;  %v330_v28 = vrot.slane %v254_v6, %v329_v13  ;;  %v341_v30 = vmul.f32 %v485_v17, %v270_v23 }
  0x16   : > { %v269_v29 = vsel %vm268_vm2, %v267_v26, %v262_v16  ;;  %v355_v31 = vand.u32 1, %v580_v1 }
  0x17   : > { %v275_v32 = vmul.f32 %v274_v18, %v269_v29  ;;  %v280_v33 = vmul.f32 %v279_v19, %v269_v29  ;;  %v289_v34 = vmul.f32 %v288_v12, %v269_v29  ;;  %v295_v35 = vrot.slane %v290_v27, 4 }
  0x18   : > { %v303_v36 = vmul.f32 %v302_v20, %v269_v29  ;;  %v308_v37 = vmul.f32 %v307_v21, %v269_v29  ;;  %v317_v38 = vmul.f32 %v316_v24, %v269_v29  ;;  %v326_v39 = vmul.f32 %v325_v25, %v269_v29 }
  0x19   : > { %v282_v40 = vrot.slane %v280_v33, 2  ;;  %v294_v41 = vrot.slane %v289_v34, 4  ;;  %v331_v42 = vmul.f32 %v330_v28, %v269_v29  ;;  %v340_v43 = vmul.f32 %v485_v17, %v269_v29 }
  0x1a   : > { %v310_v44 = vrot.slane %v308_v37, 2  ;;  %v319_v45 = vrot.slane %v317_v38, 4  ;;  %v345_v46 = vrot.slane %v341_v30, 4  ;;  %vm371_vm4 = vcmp.ne.s32.totalorder %v355_v31, 0 }
  0x1b   : > { %v284_v47 = vadd.f32 %v282_v40, %v275_v32  ;;  %v296_v48 = vsel %vm293_vm3, %v294_v41, %v295_v35  ;;  %v333_v49 = vrot.slane %v331_v42, 2  ;;  %v344_v50 = vrot.slane %v340_v43, 4 }
  0x1c   : > { %v312_v51 = vadd.f32 %v310_v44, %v303_v36  ;;  %vm377_vm5 = vcmp.ne.s32.totalorder %v355_v31, 1 }
  0x1d   : > { %v298_v53 = vadd.f32 %v296_v48, %v284_v47  ;;  %v335_v54 = vadd.f32 %v333_v49, %v326_v39  ;;  %v346_v55 = vsel %vm293_vm3, %v344_v50, %v345_v46 }
  0x1e   : > { %v321_v56 = vadd.f32 %v319_v45, %v312_v51 }
  0x1f   : > { %v348_v57 = vadd.f32 %v346_v55, %v335_v54  ;;  %v370_v58 = vadd.f32 %v486_v52, %v298_v53 }
  0x20   : > { %v372_v59 = vsel %vm371_vm4, %v321_v56, 0.0 }
  0x21   : > { %v374_v60 = vrot.slane %v372_v59, 7  ;;  %v379_v61 = vrot.slane %v348_v57, 2 }
  0x23   : > { %v376_v62 = vadd.f32 %v374_v60, %v370_v58  ;;  %v381_v63 = vsel %vm377_vm5, %v379_v61, 0.0 }
  0x24   : > { %v383_v0 = vrot.slane %v381_v63, 7 }
  0x26   : > { %v385_v1 = vadd.f32 %v383_v0, %v376_v62 }
  0x28   : > { %387 = vst.msk [vmem:[%s251_s8 - $0x1] sm:$0x1e] %vm386_vm6, %v385_v1 }
  0x29 PF: > { %s14_s17 = sadd.s32 1, %s535_s17   ;;  %s633_s15 = smov %s531_s16 }
  0x2a   : > { %p11_p5 = scmp.ge.s32.totalorder %s14_s17, 4   ;;  %s634_s16 = smov %s636_s18 }
  0x2c   :  { %13 = sbr.rel (!%p11_p5) target bundleno = 2 (0x2), region = 69 }

// kernel: dwconv_forward.5
= control target key start
LH: loop header
LB: loop body
LE: loop exit
PB: predicated region body
PF: predicated region fallthrough
CT: control target
= control target key end

     0   :  { %s1002_s15 = smov 0   ;;  %s1004_s16 = smov 0   ;;  %s1389_s0 = inlined_call_operand.vmem [shape: f32[2,340,8], index: 0, kind: input, shape index: {}]   ;;  %s1390_s1 = inlined_call_operand.vmem [shape: f32[2,1,16,8], index: 1, kind: input, shape index: {}]   ;;  %s1391_s2 = inlined_call_operand.vmem [shape: f32[9,8], index: 2, kind: input, shape index: {}]   ;;  %s1392_s3 = inlined_call_operand.vmem [shape: f32[1,8], index: 3, kind: input, shape index: {}]   ;;  %s1393_s4 = inlined_call_operand.vmem [shape: f32[2,64,8], index: 4, kind: output, shape index: {}]  }
   0x1   :  { %s1006_s17 = smov 0  }
   0x2 LB: > { %s26_s18 = sadd.s32 1, %s971_s16  ;;  %p913_p0 = scmp.ge.s32.totalorder %s975_s17, 1  ;;  %s975_s17 = sphi %s1006_s17, %s14_s17   ;;  %s971_s16 = sphi %s1004_s16, %s1411_s16   ;;  %s967_s15 = sphi %s1002_s15, %s1410_s15  }
   0x3   : > { %p28_p1 = scmp.ge.s32.totalorder %s26_s18, 2  ;;  %p211_p2 = scmp.lt.s32.totalorder %s975_s17, 3 }
   0x5   : > { %s1413_s18 = smov (%p28_p1, %s26_s18), 0  ;;  %p212_p3 = pnand %p913_p0, %p211_p2 }
   0x6   : > { %p265_p4 = scmp.lt.s32.totalorder (!%p212_p3), %s967_s15, 1 }
   0x7   : > { %215 = sbr.rel (%p212_p3) target bundleno = 95 (0x5f), region = 36 }
   0xc   : > { %v353_v0 = vlaneseq  ;;  %s1415_s15 = smov (!%p265_p4, %s967_s15), 1  ;;  %v308_v2 = vld [vmem:[%s1391_s2] sm:$0xff]  ;;  %vm321_vm0 = vcmask 1040384   ;;  %v1084_v35 = vld [vmem:[%s1391_s2 + $0x8] ss:$0 sm:$0xff]  ;;  %vm714_vm2 = vcmask 1045504  }
   0xd   : > { %s925_s21 = sshll.u32 %s1415_s15, 4  ;;  %s928_s22 = smul.u32 344, %s1415_s15  ;;  %v1125_v59 = vld [vmem:[%s1392_s3] ss:$0 sm:$0xff]  ;;  %vm789_vm4 = vcmask 64513   ;;  %vm791_vm7 = vcmask 64512  }
   0xe   : > { %v1022_v1 = vshrl.u32 %v353_v0, 7  ;;  %s287_s25 = scalar_lea.vmem %s1390_s1, %s925_s21  ;;  %s926_s8 = sshll.u32 %s1415_s15, 6 }
   0xf   : > { %v306_v11 = vld [vmem:[%s287_s25] sm:$0xff]  ;;  %v1040_v12 = vld [vmem:[%s287_s25 + $0x8] sm:$0xff]  ;;  %s924_s26 = sadd.s32 256, %s928_s22  ;;  %s1165_s11 = scalar_lea.vmem %s1393_s4, %s926_s8 }
  0x10   : > { %v355_v3 = vsub.s32 1, %v1022_v1  ;;  %v368_v4 = vsub.s32 4, %v1022_v1  ;;  %v390_v5 = vsub.s32 7, %v1022_v1  ;;  %v412_v6 = vsub.s32 0, %v1022_v1  ;;  %s1054_s29 = scalar_lea.vmem %s1389_s0, %s924_s26 }
  0x11   : > { %v424_v7 = vsub.s32 3, %v1022_v1  ;;  %v444_v8 = vsub.s32 6, %v1022_v1  ;;  %v464_v9 = vsub.s32 2, %v1022_v1  ;;  %v477_v10 = vsub.s32 5, %v1022_v1  ;;  %v298_v23 = vld [vmem:[%s1054_s29] sm:$0xff]  ;;  %v299_v24 = vld [vmem:[%s1054_s29 + $0x8] sm:$0xff] }
  0x12   : > { %v1042_v13 = vrot.slane %v308_v2, %v355_v3  ;;  %v1044_v14 = vrot.slane %v308_v2, %v368_v4  ;;  %v311_v15 = vrot.slane %v306_v11, 7  ;;  %v347_v16 = vrot.slane %v1040_v12, 7  ;;  %v300_v25 = vld [vmem:[%s1054_s29 + $0x10] sm:$0xff]  ;;  %v1076_v33 = vld [vmem:[%s1054_s29 + $0x18] sm:$0xff]  ;;  %v302_v11 = vld [vmem:[%s1054_s29 + $0x20] sm:$0xff] }
  0x13   : > { %v1047_v17 = vrot.slane %v308_v2, %v390_v5  ;;  %v1049_v18 = vrot.slane %v308_v2, %v412_v6  ;;  %v1056_v19 = vrot.slane %v308_v2, %v424_v7  ;;  %v1058_v20 = vrot.slane %v308_v2, %v444_v8 }
  0x14   : > { %v1060_v21 = vrot.slane %v308_v2, %v464_v9  ;;  %v532_v22 = vand.u32 7, %v1022_v1  ;;  %v349_v26 = vsel %vm321_vm0, 0.0, %v311_v15  ;;  %v1067_v27 = vrot.slane %v308_v2, %v477_v10 }
  0x15   : > { %v1070_v28 = vadd.s32 8, %v1022_v1  ;;  %v1073_v29 = vadd.s32 16, %v1022_v1  ;;  %v322_v30 = vrot.slane %v298_v23, 7  ;;  %v323_v31 = vrot.slane %v299_v24, 7 }
  0x16   : > { %v325_v32 = vrot.slane %v300_v25, 7  ;;  %v1079_v34 = vadd.s32 24, %v1022_v1  ;;  %v357_v36 = vmul.f32 %v1042_v13, %v349_v26  ;;  %v414_v37 = vmul.f32 %v1049_v18, %v349_v26 }
  0x17   : > { %v466_v38 = vmul.f32 %v1060_v21, %v349_v26  ;;  %vm1089_vm1 = vcmp.ne.s32.totalorder %v532_v22, 0  ;;  %v1094_v40 = vsel %vm321_vm0, %v322_v30, %v323_v31  ;;  %v350_v42 = vsel %vm321_vm0, %v311_v15, %v322_v30 }
  0x18   : > { %v1097_v41 = vsel %vm321_vm0, %v323_v31, %v325_v32  ;;  %vm1100_vm3 = vcmp.ne.s32.totalorder %v532_v22, 7  ;;  %v327_v44 = vrot.slane %v1076_v33, 7  ;;  %v370_v45 = vmul.f32 %v1044_v14, %v350_v42 }
  0x19   : > { %v392_v46 = vmul.f32 %v1047_v17, %v1094_v40  ;;  %v426_v47 = vmul.f32 %v1056_v19, %v350_v42  ;;  %v446_v48 = vmul.f32 %v1058_v20, %v1094_v40  ;;  %v467_v49 = vmul.f32 %v1060_v21, %v350_v42 }
  0x1a   : > { %v479_v50 = vmul.f32 %v1067_v27, %v350_v42  ;;  %v480_v51 = vmul.f32 %v1067_v27, %v1094_v40  ;;  %v501_v52 = vmul.f32 %v1084_v35, %v1094_v40  ;;  %v379_v53 = vadd.f32 %v370_v45, %v357_v36 }
  0x1b   : > { %v434_v54 = vadd.f32 %v426_v47, %v414_v37  ;;  %v502_v55 = vmul.f32 %v1084_v35, %v1097_v41  ;;  %v1120_v56 = vsel %vm321_vm0, %v325_v32, %v327_v44  ;;  %v358_v60 = vmul.f32 %v1042_v13, %v350_v42 }
  0x1c   : > { %v488_v57 = vadd.f32 %v479_v50, %v466_v38  ;;  %v489_v58 = vadd.f32 %v480_v51, %v467_v49  ;;  %v371_v61 = vmul.f32 %v1044_v14, %v1094_v40  ;;  %v401_v62 = vadd.f32 %v392_v46, %v379_v53 }
  0x1d   : > { %v454_v63 = vadd.f32 %v446_v48, %v434_v54  ;;  %v393_v0 = vmul.f32 %v1047_v17, %v1097_v41  ;;  %v415_v2 = vmul.f32 %v1049_v18, %v350_v42  ;;  %v427_v6 = vmul.f32 %v1056_v19, %v1094_v40 }
  0x1e   : > { %v510_v3 = vadd.f32 %v501_v52, %v488_v57  ;;  %v511_v4 = vadd.f32 %v502_v55, %v489_v58  ;;  %v380_v5 = vadd.f32 %v371_v61, %v358_v60  ;;  %v631_v7 = vadd.f32 %v1125_v59, %v401_v62  ;;  %v303_v60 = vld [vmem:[%s1054_s29 + $0x28] sm:$0xff] }
  0x1f   : > { %v648_v8 = vsel %vm1089_vm1, %v454_v63, 0.0  ;;  %v447_v9 = vmul.f32 %v1058_v20, %v1097_v41  ;;  %v468_v10 = vmul.f32 %v1060_v21, %v1094_v40  ;;  %v435_v25 = vadd.f32 %v427_v6, %v415_v2 }
  0x20   : > { %v664_v15 = vrot.slane %v648_v8, 7  ;;  %v715_v22 = vrot.slane %v510_v3, 2  ;;  %v716_v23 = vrot.slane %v511_v4, 2  ;;  %v402_v24 = vadd.f32 %v393_v0, %v380_v5 }
  0x21   : > { %v481_v26 = vmul.f32 %v1067_v27, %v1097_v41  ;;  %v503_v30 = vmul.f32 %v1084_v35, %v1120_v56  ;;  %v539_v31 = vand.u32 7, %v1070_v28  ;;  %v329_v37 = vrot.slane %v302_v11, 7  ;;  %v305_v11 = vld [vmem:[%s1054_s29 + $0x38] sm:$0xff] }
  0x22   : > { %v688_v32 = vadd.f32 %v664_v15, %v631_v7  ;;  %v717_v33 = vsel %vm714_vm2, %v715_v22, %v716_v23  ;;  %v632_v36 = vadd.f32 %v1125_v59, %v402_v24  ;;  %v455_v39 = vadd.f32 %v447_v9, %v435_v25 }
  0x23   : > { %v740_v38 = vsel %vm1100_vm3, %v717_v33, 0.0  ;;  %v490_v42 = vadd.f32 %v481_v26, %v468_v10  ;;  %vm641_vm5 = vcmp.ne.s32.totalorder %v539_v31, 0  ;;  %vm1153_vm6 = vcmp.ne.s32.totalorder %v539_v31, 7 }
  0x24   : > { %v756_v45 = vrot.slane %v740_v38, 7  ;;  %v1158_v28 = vsel %vm321_vm0, %v327_v44, %v329_v37  ;;  %v359_v47 = vmul.f32 %v1042_v13, %v1094_v40  ;;  %v649_v48 = vsel %vm641_vm5, %v455_v39, 0.0 }
  0x25   : > { %v512_v43 = vadd.f32 %v503_v30, %v490_v42  ;;  %v372_v49 = vmul.f32 %v1044_v14, %v1097_v41  ;;  %v394_v44 = vmul.f32 %v1047_v17, %v1120_v56  ;;  %v665_v51 = vrot.slane %v649_v48, 7 }
  0x26   : > { %v780_v50 = vadd.f32 %v756_v45, %v688_v32  ;;  %v416_v52 = vmul.f32 %v1049_v18, %v1094_v40  ;;  %v428_v53 = vmul.f32 %v1056_v19, %v1097_v41  ;;  %v448_v57 = vmul.f32 %v1058_v20, %v1120_v56 }
  0x27   : > { %v718_v54 = vrot.slane %v512_v43, 2  ;;  %v381_v55 = vadd.f32 %v372_v49, %v359_v47  ;;  %v469_v58 = vmul.f32 %v1060_v21, %v1097_v41  ;;  %v666_v61 = vsel %vm321_vm0, %v664_v15, %v665_v51 }
  0x28   : > { %790 = vst.msk [vmem:[%s1165_s11 - $0x1] sm:$0xfe] %vm789_vm4, %v780_v50  ;;  %v436_v62 = vadd.f32 %v428_v53, %v416_v52  ;;  %v482_v40 = vmul.f32 %v1067_v27, %v1120_v56  ;;  %v504_v63 = vmul.f32 %v1084_v35, %v1158_v28  ;;  %v689_v0 = vadd.f32 %v666_v61, %v632_v36 }
  0x29   : > { %v719_v2 = vsel %vm714_vm2, %v716_v23, %v718_v54  ;;  %v403_v3 = vadd.f32 %v394_v44, %v381_v55  ;;  %v546_v4 = vand.u32 7, %v1073_v29  ;;  %v331_v8 = vrot.slane %v303_v60, 7 }
  0x2a   : > { %v741_v5 = vsel %vm1153_vm6, %v719_v2, 0.0  ;;  %v456_v6 = vadd.f32 %v448_v57, %v436_v62  ;;  %v491_v7 = vadd.f32 %v482_v40, %v469_v58  ;;  %v360_v23 = vmul.f32 %v1042_v13, %v1097_v41 }
  0x2b   : > { %v757_v9 = vrot.slane %v741_v5, 7  ;;  %v633_v10 = vadd.f32 %v1125_v59, %v403_v3  ;;  %vm642_vm8 = vcmp.ne.s32.totalorder %v546_v4, 0  ;;  %vm1192_vm9 = vcmp.ne.s32.totalorder %v546_v4, 7 }
  0x2c   : > { %v513_v15 = vadd.f32 %v504_v63, %v491_v7  ;;  %v650_v22 = vsel %vm642_vm8, %v456_v6, 0.0  ;;  %v1197_v29 = vsel %vm321_vm0, %v329_v37, %v331_v8  ;;  %v373_v26 = vmul.f32 %v1044_v14, %v1120_v56 }
  0x2d   : > { %v758_v24 = vsel %vm321_vm0, %v756_v45, %v757_v9  ;;  %v667_v25 = vrot.slane %v650_v22, 7  ;;  %v395_v30 = vmul.f32 %v1047_v17, %v1158_v28  ;;  %v417_v33 = vmul.f32 %v1049_v18, %v1097_v41  ;;  %v304_v45 = vld [vmem:[%s1054_s29 + $0x30] sm:$0xff] }
  0x2e   : > { %v781_v31 = vadd.f32 %v758_v24, %v689_v0  ;;  %v720_v32 = vrot.slane %v513_v15, 2  ;;  %v429_v36 = vmul.f32 %v1056_v19, %v1120_v56  ;;  %v382_v38 = vadd.f32 %v373_v26, %v360_v23 }
  0x2f   : > { %v668_v37 = vsel %vm321_vm0, %v665_v51, %v667_v25  ;;  %v449_v39 = vmul.f32 %v1058_v20, %v1158_v28  ;;  %v470_v42 = vmul.f32 %v1060_v21, %v1120_v56  ;;  %v483_v41 = vmul.f32 %v1067_v27, %v1158_v28 }
  0x30   : > { %792 = vst.msk [vmem:[%s1165_s11 + $0x7] sm:$0xff] %vm791_vm7, %v781_v31  ;;  %v690_v46 = vadd.f32 %v668_v37, %v633_v10  ;;  %v721_v47 = vsel %vm714_vm2, %v718_v54, %v720_v32  ;;  %v437_v43 = vadd.f32 %v429_v36, %v417_v33  ;;  %v404_v49 = vadd.f32 %v395_v30, %v382_v38 }
  0x31   : > { %v742_v48 = vsel %vm1192_vm9, %v721_v47, 0.0  ;;  %v505_v44 = vmul.f32 %v1084_v35, %v1197_v29  ;;  %v553_v50 = vand.u32 7, %v1079_v34  ;;  %v492_v53 = vadd.f32 %v483_v41, %v470_v42 }
  0x32   : > { %v759_v51 = vrot.slane %v742_v48, 7  ;;  %v457_v52 = vadd.f32 %v449_v39, %v437_v43  ;;  %v333_v55 = vrot.slane %v304_v45, 7  ;;  %v634_v57 = vadd.f32 %v1125_v59, %v404_v49 }
  0x33   : > { %vm643_vm10 = vcmp.ne.s32.totalorder %v553_v50, 0  ;;  %vm1227_vm11 = vcmp.ne.s32.totalorder %v553_v50, 7  ;;  %v361_v58 = vmul.f32 %v1042_v13, %v1120_v56  ;;  %v514_v61 = vadd.f32 %v505_v44, %v492_v53 }
  0x34   : > { %v760_v60 = vsel %vm321_vm0, %v757_v9, %v759_v51  ;;  %v651_v34 = vsel %vm643_vm10, %v457_v52, 0.0  ;;  %v1235_v62 = vsel %vm321_vm0, %v331_v8, %v333_v55  ;;  %v374_v0 = vmul.f32 %v1044_v14, %v1158_v28 }
  0x35   : > { %v782_v40 = vadd.f32 %v760_v60, %v690_v46  ;;  %v669_v63 = vrot.slane %v651_v34, 7  ;;  %v396_v2 = vmul.f32 %v1047_v17, %v1197_v29  ;;  %v722_v3 = vrot.slane %v514_v61, 2 }
  0x36   : > { %v418_v4 = vmul.f32 %v1049_v18, %v1120_v56  ;;  %v430_v5 = vmul.f32 %v1056_v19, %v1158_v28  ;;  %v450_v6 = vmul.f32 %v1058_v20, %v1197_v29  ;;  %v383_v8 = vadd.f32 %v374_v0, %v361_v58 }
  0x37   : > { %793 = vst.msk [vmem:[%s1165_s11 + $0xf] sm:$0xff] %vm791_vm7, %v782_v40  ;;  %v670_v7 = vsel %vm321_vm0, %v667_v25, %v669_v63  ;;  %v471_v9 = vmul.f32 %v1060_v21, %v1158_v28  ;;  %v484_v10 = vmul.f32 %v1067_v27, %v1197_v29  ;;  %v723_v56 = vsel %vm714_vm2, %v720_v32, %v722_v3 }
  0x38   : > { %v691_v15 = vadd.f32 %v670_v7, %v634_v57  ;;  %v438_v22 = vadd.f32 %v430_v5, %v418_v4  ;;  %v506_v23 = vmul.f32 %v1084_v35, %v1235_v62  ;;  %v743_v24 = vsel %vm1227_vm11, %v723_v56, 0.0 }
  0x39   : > { %v405_v26 = vadd.f32 %v396_v2, %v383_v8  ;;  %v493_v25 = vadd.f32 %v484_v10, %v471_v9  ;;  %v524_v30 = vadd.s32 32, %v1022_v1  ;;  %v761_v31 = vrot.slane %v743_v24, 7 }
  0x3a   : > { %v458_v33 = vadd.f32 %v450_v6, %v438_v22  ;;  %v335_v36 = vrot.slane %v305_v11, 7  ;;  %v362_v37 = vmul.f32 %v1042_v13, %v1158_v28  ;;  %v375_v42 = vmul.f32 %v1044_v14, %v1197_v29 }
  0x3b   : > { %v515_v38 = vadd.f32 %v506_v23, %v493_v25  ;;  %v560_v32 = vand.u32 7, %v524_v30  ;;  %v635_v39 = vadd.f32 %v1125_v59, %v405_v26  ;;  %v762_v45 = vsel %vm321_vm0, %v759_v51, %v761_v31 }
  0x3c   : > { %v1268_v46 = vsel %vm321_vm0, %v333_v55, %v335_v36  ;;  %v397_v47 = vmul.f32 %v1047_v17, %v1235_v62  ;;  %v419_v43 = vmul.f32 %v1049_v18, %v1158_v28  ;;  %v783_v41 = vadd.f32 %v762_v45, %v691_v15 }
  0x3d   : > { %vm644_vm12 = vcmp.ne.s32.totalorder %v560_v32, 0  ;;  %vm1274_vm13 = vcmp.ne.s32.totalorder %v560_v32, 7  ;;  %v724_v49 = vrot.slane %v515_v38, 2  ;;  %v384_v50 = vadd.f32 %v375_v42, %v362_v37 }
  0x3e   : > { %v652_v44 = vsel %vm644_vm12, %v458_v33, 0.0  ;;  %v431_v51 = vmul.f32 %v1056_v19, %v1197_v29  ;;  %v451_v52 = vmul.f32 %v1058_v20, %v1235_v62  ;;  %794 = vst.msk [vmem:[%s1165_s11 + $0x17] sm:$0xff] %vm791_vm7, %v783_v41  ;;  %v472_v55 = vmul.f32 %v1060_v21, %v1197_v29 }
  0x3f   : > { %v671_v53 = vrot.slane %v652_v44, 7  ;;  %v725_v28 = vsel %vm714_vm2, %v722_v3, %v724_v49  ;;  %v485_v57 = vmul.f32 %v1067_v27, %v1235_v62  ;;  %v406_v58 = vadd.f32 %v397_v47, %v384_v50 }
  0x40   : > { %v744_v54 = vsel %vm1274_vm13, %v725_v28, 0.0  ;;  %v439_v60 = vadd.f32 %v431_v51, %v419_v43  ;;  %v507_v61 = vmul.f32 %v1084_v35, %v1268_v46  ;;  %v525_v2 = vadd.s32 40, %v1022_v1 }
  0x41   : > { %v672_v34 = vsel %vm321_vm0, %v669_v63, %v671_v53  ;;  %v763_v40 = vrot.slane %v744_v54, 7  ;;  %v494_v0 = vadd.f32 %v485_v57, %v472_v55  ;;  %v636_v5 = vadd.f32 %v1125_v59, %v406_v58 }
  0x42   : > { %v692_v3 = vadd.f32 %v672_v34, %v635_v39  ;;  %v459_v4 = vadd.f32 %v451_v52, %v439_v60  ;;  %v1299_v6 = vsel %vm321_vm0, %v335_v36, %v347_v16  ;;  %v567_v9 = vand.u32 7, %v525_v2 }
  0x43   : > { %v764_v7 = vsel %vm321_vm0, %v761_v31, %v763_v40  ;;  %v516_v8 = vadd.f32 %v507_v61, %v494_v0  ;;  %v363_v63 = vmul.f32 %v1042_v13, %v1197_v29  ;;  %v376_v11 = vmul.f32 %v1044_v14, %v1235_v62 }
  0x44   : > { %v784_v10 = vadd.f32 %v764_v7, %v692_v3  ;;  %v398_v15 = vmul.f32 %v1047_v17, %v1268_v46  ;;  %v420_v56 = vmul.f32 %v1049_v18, %v1197_v29  ;;  %vm645_vm14 = vcmp.ne.s32.totalorder %v567_v9, 0 }
  0x45   : > { %vm1310_vm15 = vcmp.ne.s32.totalorder %v567_v9, 7  ;;  %v726_v23 = vrot.slane %v516_v8, 2  ;;  %v432_v24 = vmul.f32 %v1056_v19, %v1235_v62  ;;  %v653_v26 = vsel %vm645_vm14, %v459_v4, 0.0 }
  0x46   : > { %795 = vst.msk [vmem:[%s1165_s11 + $0x1f] sm:$0xff] %vm791_vm7, %v784_v10  ;;  %v385_v25 = vadd.f32 %v376_v11, %v363_v63  ;;  %v452_v30 = vmul.f32 %v1058_v20, %v1268_v46  ;;  %v473_v31 = vmul.f32 %v1060_v21, %v1235_v62  ;;  %v673_v29 = vrot.slane %v653_v26, 7 }
  0x47   : > { %v727_v33 = vsel %vm714_vm2, %v724_v49, %v726_v23  ;;  %v440_v36 = vadd.f32 %v432_v24, %v420_v56  ;;  %v486_v37 = vmul.f32 %v1067_v27, %v1268_v46  ;;  %v508_v39 = vmul.f32 %v1084_v35, %v1299_v6 }
  0x48   : > { %v745_v38 = vsel %vm1310_vm15, %v727_v33, 0.0  ;;  %v407_v32 = vadd.f32 %v398_v15, %v385_v25  ;;  %v526_v42 = vadd.s32 48, %v1022_v1  ;;  %v674_v45 = vsel %vm321_vm0, %v671_v53, %v673_v29 }
  0x49   : > { %v765_v47 = vrot.slane %v745_v38, 7  ;;  %v460_v43 = vadd.f32 %v452_v30, %v440_v36  ;;  %v495_v41 = vadd.f32 %v486_v37, %v473_v31  ;;  %v693_v48 = vadd.f32 %v674_v45, %v636_v5 }
  0x4a   : > { %v574_v49 = vand.u32 7, %v526_v42  ;;  %v637_v44 = vadd.f32 %v1125_v59, %v407_v32  ;;  %v352_v50 = vsel %vm321_vm0, %v347_v16, 0.0  ;;  %v364_v28 = vmul.f32 %v1042_v13, %v1235_v62 }
  0x4b   : > { %v766_v51 = vsel %vm321_vm0, %v763_v40, %v765_v47  ;;  %v517_v52 = vadd.f32 %v508_v39, %v495_v41  ;;  %v377_v53 = vmul.f32 %v1044_v14, %v1268_v46  ;;  %v399_v12 = vmul.f32 %v1047_v17, %v1299_v6 }
  0x4c   : > { %v785_v55 = vadd.f32 %v766_v51, %v693_v48  ;;  %vm646_vm1 = vcmp.ne.s32.totalorder %v574_v49, 0  ;;  %vm1340_vm3 = vcmp.ne.s32.totalorder %v574_v49, 7  ;;  %v421_v60 = vmul.f32 %v1049_v18, %v1235_v62 }
  0x4d   : > { %v654_v54 = vsel %vm646_vm1, %v460_v43, 0.0  ;;  %v728_v16 = vrot.slane %v517_v52, 2  ;;  %v386_v58 = vadd.f32 %v377_v53, %v364_v28  ;;  %v433_v34 = vmul.f32 %v1056_v19, %v1268_v46 }
  0x4e   : > { %796 = vst.msk [vmem:[%s1165_s11 + $0x27] sm:$0xff] %vm791_vm7, %v785_v55  ;;  %v675_v61 = vrot.slane %v654_v54, 7  ;;  %v453_v40 = vmul.f32 %v1058_v20, %v1299_v6  ;;  %v474_v0 = vmul.f32 %v1060_v21, %v1268_v46  ;;  %v487_v3 = vmul.f32 %v1067_v27, %v1299_v6 }
  0x4f   : > { %v729_v2 = vsel %vm714_vm2, %v726_v23, %v728_v16  ;;  %v509_v4 = vmul.f32 %v1084_v35, %v352_v50  ;;  %v441_v5 = vadd.f32 %v433_v34, %v421_v60  ;;  %v527_v19 = vadd.s32 56, %v1022_v1 }
  0x50   : > { %v676_v18 = vsel %vm321_vm0, %v673_v29, %v675_v61  ;;  %v746_v62 = vsel %vm1340_vm3, %v729_v2, 0.0  ;;  %v408_v8 = vadd.f32 %v399_v12, %v386_v58  ;;  %v496_v21 = vadd.f32 %v487_v3, %v474_v0 }
  0x51   : > { %v694_v7 = vadd.f32 %v676_v18, %v637_v44  ;;  %v767_v20 = vrot.slane %v746_v62, 7  ;;  %v461_v9 = vadd.f32 %v453_v40, %v441_v5  ;;  %v581_v63 = vand.u32 7, %v527_v19 }
  0x52   : > { %v365_v27 = vmul.f32 %v1042_v13, %v1268_v46  ;;  %v378_v35 = vmul.f32 %v1044_v14, %v1299_v6  ;;  %v518_v11 = vadd.f32 %v509_v4, %v496_v21  ;;  %v400_v15 = vmul.f32 %v1047_v17, %v352_v50 }
  0x53   : > { %v768_v10 = vsel %vm321_vm0, %v765_v47, %v767_v20  ;;  %vm647_vm4 = vcmp.ne.s32.totalorder %v581_v63, 0  ;;  %v638_v22 = vadd.f32 %v1125_v59, %v408_v8  ;;  %vm704_vm5 = vcmp.ne.s32.totalorder %v581_v63, 7 }
  0x54   : > { %v786_v56 = vadd.f32 %v768_v10, %v694_v7  ;;  %v387_v1 = vadd.f32 %v378_v35, %v365_v27  ;;  %v655_v23 = vsel %vm647_vm4, %v461_v9, 0.0  ;;  %v730_v24 = vrot.slane %v518_v11, 2 }
  0x55   : > { %v677_v13 = vrot.slane %v655_v23, 7  ;;  %vm799_vm6 = vcmask 57344  }
  0x56   : > { %797 = vst.msk [vmem:[%s1165_s11 + $0x2f] sm:$0xff] %vm791_vm7, %v786_v56  ;;  %v409_v46 = vadd.f32 %v400_v15, %v387_v1  ;;  %v731_v14 = vsel %vm714_vm2, %v728_v16, %v730_v24 }
  0x57   : > { %v678_v6 = vsel %vm321_vm0, %v675_v61, %v677_v13  ;;  %v747_v26 = vsel %vm704_vm5, %v731_v14, 0.0 }
  0x58   : > { %v639_v17 = vadd.f32 %v1125_v59, %v409_v46  ;;  %v695_v25 = vadd.f32 %v678_v6, %v638_v22  ;;  %v769_v30 = vrot.slane %v747_v26, 7 }
  0x5a   : > { %v696_v31 = vadd.f32 %v677_v13, %v639_v17  ;;  %v770_v29 = vsel %vm321_vm0, %v767_v20, %v769_v30 }
  0x5b   : > { %v787_v33 = vadd.f32 %v770_v29, %v695_v25 }
  0x5c   : > { %v788_v36 = vadd.f32 %v769_v30, %v696_v31 }
  0x5d   : > { %798 = vst.msk [vmem:[%s1165_s11 + $0x37] sm:$0xff] %vm791_vm7, %v787_v33 }
  0x5e   : > { %800 = vst.msk [vmem:[%s1165_s11 + $0x3f] sm:$0x1] %vm799_vm6, %v788_v36 }
  0x5f PF: > { %s14_s17 = sadd.s32 1, %s975_s17   ;;  %s1410_s15 = smov %s971_s16 }
  0x60   : > { %p11_p5 = scmp.ge.s32.totalorder %s14_s17, 4   ;;  %s1411_s16 = smov %s1413_s18 }
  0x62   :  { %13 = sbr.rel (!%p11_p5) target bundleno = 2 (0x2), region = 69 }

// kernel: dwconv_forward.6
= control target key start
LH: loop header
LB: loop body
LE: loop exit
PB: predicated region body
PF: predicated region fallthrough
CT: control target
= control target key end

     0   :  { %s701_s15 = smov 0   ;;  %s703_s16 = smov 0   ;;  %s815_s0 = inlined_call_operand.vmem [shape: f32[2,340,8], index: 0, kind: input, shape index: {}]   ;;  %s816_s1 = inlined_call_operand.vmem [shape: f32[2,1,8,8], index: 1, kind: input, shape index: {}]   ;;  %s817_s2 = inlined_call_operand.vmem [shape: f32[9,8], index: 2, kind: input, shape index: {}]   ;;  %s818_s3 = inlined_call_operand.vmem [shape: f32[1,8], index: 3, kind: input, shape index: {}]   ;;  %s819_s4 = inlined_call_operand.vmem [shape: f32[2,16,8], index: 4, kind: output, shape index: {}]  }
   0x1   :  { %s705_s17 = smov 0  }
   0x2 LB: > { %s26_s18 = sadd.s32 1, %s670_s16  ;;  %p614_p0 = scmp.ge.s32.totalorder %s674_s17, 1  ;;  %s674_s17 = sphi %s705_s17, %s14_s17   ;;  %s670_s16 = sphi %s703_s16, %s825_s16   ;;  %s666_s15 = sphi %s701_s15, %s824_s15  }
   0x3   : > { %p28_p1 = scmp.ge.s32.totalorder %s26_s18, 2  ;;  %p209_p2 = scmp.lt.s32.totalorder %s674_s17, 3 }
   0x5   : > { %s827_s18 = smov (%p28_p1, %s26_s18), 0  ;;  %p210_p3 = pnand %p614_p0, %p209_p2 }
   0x6   : > { %p261_p4 = scmp.lt.s32.totalorder (!%p210_p3), %s666_s15, 1 }
   0x7   : > { %213 = sbr.rel (%p210_p3) target bundleno = 51 (0x33), region = 36 }
   0xc   : > { %v314_v0 = vlaneseq  ;;  %s829_s15 = smov (!%p261_p4, %s666_s15), 1  ;;  %vm309_vm0 = vcmask 1040384   ;;  %v295_v8 = vld [vmem:[%s817_s2] sm:$0xff]  ;;  %vm302_vm1 = vcmask 1044480   ;;  %v619_v18 = vld [vmem:[%s817_s2 + $0x8] ss:$0 sm:$0xff] }
   0xd   : > { %s616_s19 = sshll.u32 %s829_s15, 3  ;;  %s627_s20 = smul.u32 344, %s829_s15  ;;  %vm331_vm2 = vcmask 1043456   ;;  %v620_v62 = vld [vmem:[%s818_s3] ss:$0 sm:$0xff]  ;;  %vm481_vm4 = vcmask 1045504  }
   0xe   : > { %v721_v1 = vshrl.u32 %v314_v0, 7  ;;  %s281_s23 = scalar_lea.vmem %s816_s1, %s616_s19  ;;  %s625_s8 = sshll.u32 %s829_s15, 4  ;;  %vm502_vm8 = vcmask 64513   ;;  %vm504_vm9 = vcmask 64512   ;;  %vm506_vm10 = vcmask 57344  }
   0xf   : > { %v294_v5 = vld [vmem:[%s281_s23] sm:$0xff]  ;;  %s624_s24 = sadd.s32 320, %s627_s20  ;;  %s290_s11 = scalar_lea.vmem %s819_s4, %s625_s8 }
  0x10   : > { %v316_v2 = vsub.s32 1, %v721_v1  ;;  %v323_v3 = vsub.s32 4, %v721_v1  ;;  %v345_v4 = vsub.s32 7, %v721_v1  ;;  %v355_v6 = vsub.s32 0, %v721_v1  ;;  %s268_s29 = scalar_lea.vmem %s815_s0, %s624_s24 }
  0x11   : > { %v361_v7 = vsub.s32 3, %v721_v1  ;;  %v298_v9 = vrot.slane %v294_v5, 7  ;;  %v380_v10 = vsub.s32 6, %v721_v1  ;;  %v388_v11 = vsub.s32 2, %v721_v1  ;;  %v292_v16 = vld [vmem:[%s268_s29] sm:$0xff]  ;;  %v293_v17 = vld [vmem:[%s268_s29 + $0x8] sm:$0xff] }
  0x12   : > { %v395_v12 = vsub.s32 5, %v721_v1  ;;  %v742_v13 = vrot.slane %v295_v8, %v316_v2  ;;  %v431_v14 = vand.u32 3, %v721_v1  ;;  %v746_v15 = vadd.s32 8, %v721_v1 }
  0x13   : > { %v310_v19 = vsel %vm309_vm0, 0.0, %v298_v9  ;;  %v324_v20 = vrot.slane %v295_v8, %v323_v3  ;;  %v752_v21 = vrot.slane %v295_v8, %v345_v4  ;;  %v755_v22 = vsel %vm309_vm0, %v298_v9, 0.0 }
  0x14   : > { %v303_v23 = vrot.slane %v292_v16, 3  ;;  %v304_v24 = vrot.slane %v293_v17, 3  ;;  %v356_v25 = vrot.slane %v295_v8, %v355_v6  ;;  %v362_v26 = vrot.slane %v295_v8, %v361_v7 }
  0x15   : > { %v381_v27 = vrot.slane %v295_v8, %v380_v10  ;;  %v389_v28 = vrot.slane %v295_v8, %v388_v11  ;;  %v396_v29 = vrot.slane %v295_v8, %v395_v12  ;;  %vm761_vm3 = vcmp.ne.s32.totalorder %v431_v14, 0 }
  0x16   : > { %v305_v30 = vsel %vm302_vm1, %v303_v23, %v304_v24  ;;  %v311_v31 = vsel %vm302_vm1, %v310_v19, %v303_v23  ;;  %v420_v33 = vmul.f32 %v619_v18, %v755_v22  ;;  %v438_v34 = vand.u32 3, %v746_v15 }
  0x17   : > { %v312_v35 = vsel %vm302_vm1, %v304_v24, %v298_v9  ;;  %v318_v36 = vmul.f32 %v742_v13, %v311_v31  ;;  %v325_v37 = vmul.f32 %v324_v20, %v311_v31  ;;  %v326_v38 = vmul.f32 %v324_v20, %v305_v30 }
  0x18   : > { %v347_v39 = vmul.f32 %v752_v21, %v305_v30  ;;  %v357_v40 = vmul.f32 %v356_v25, %v311_v31  ;;  %v363_v41 = vmul.f32 %v362_v26, %v311_v31  ;;  %v364_v42 = vmul.f32 %v362_v26, %v305_v30 }
  0x19   : > { %v332_v43 = vrot.slane %v325_v37, 4  ;;  %v333_v44 = vrot.slane %v326_v38, 4  ;;  %v382_v45 = vmul.f32 %v381_v27, %v305_v30  ;;  %v390_v46 = vmul.f32 %v389_v28, %v311_v31 }
  0x1a   : > { %v369_v47 = vrot.slane %v363_v41, 4  ;;  %v370_v48 = vrot.slane %v364_v42, 4  ;;  %v397_v49 = vmul.f32 %v396_v29, %v311_v31  ;;  %v398_v50 = vmul.f32 %v396_v29, %v305_v30 }
  0x1b   : > { %v334_v51 = vsel %vm331_vm2, %v332_v43, %v333_v44  ;;  %v391_v52 = vmul.f32 %v389_v28, %v305_v30  ;;  %v399_v53 = vmul.f32 %v396_v29, %v312_v35  ;;  %v418_v54 = vmul.f32 %v619_v18, %v305_v30 }
  0x1c   : > { %v340_v55 = vadd.f32 %v334_v51, %v318_v36  ;;  %v371_v56 = vsel %vm331_vm2, %v369_v47, %v370_v48  ;;  %v403_v57 = vrot.slane %v397_v49, 4  ;;  %v404_v58 = vrot.slane %v398_v50, 4 }
  0x1d   : > { %v376_v59 = vadd.f32 %v371_v56, %v357_v40  ;;  %v406_v60 = vrot.slane %v399_v53, 4  ;;  %v419_v61 = vmul.f32 %v619_v18, %v312_v35  ;;  %v327_v63 = vmul.f32 %v324_v20, %v312_v35 }
  0x1e   : > { %v350_v0 = vadd.f32 %v347_v39, %v340_v55  ;;  %v405_v2 = vsel %vm331_vm2, %v403_v57, %v404_v58  ;;  %v319_v3 = vmul.f32 %v742_v13, %v305_v30  ;;  %v348_v4 = vmul.f32 %v752_v21, %v312_v35 }
  0x1f   : > { %v384_v5 = vadd.f32 %v382_v45, %v376_v59  ;;  %v407_v6 = vsel %vm331_vm2, %v404_v58, %v406_v60  ;;  %v411_v7 = vadd.f32 %v405_v2, %v390_v46  ;;  %v335_v8 = vrot.slane %v327_v63, 4 }
  0x20   : > { %v412_v9 = vadd.f32 %v407_v6, %v391_v52  ;;  %v458_v10 = vadd.f32 %v620_v62, %v350_v0  ;;  %v358_v11 = vmul.f32 %v356_v25, %v305_v30  ;;  %v365_v12 = vmul.f32 %v362_v26, %v312_v35 }
  0x21   : > { %v421_v16 = vadd.f32 %v418_v54, %v411_v7  ;;  %v463_v17 = vsel %vm761_vm3, %v384_v5, 0.0  ;;  %v336_v18 = vsel %vm331_vm2, %v333_v44, %v335_v8  ;;  %v392_v19 = vmul.f32 %v389_v28, %v312_v35 }
  0x22   : > { %v422_v20 = vadd.f32 %v419_v61, %v412_v9  ;;  %v467_v23 = vrot.slane %v463_v17, 7  ;;  %v341_v24 = vadd.f32 %v336_v18, %v319_v3  ;;  %v372_v29 = vrot.slane %v365_v12, 4 }
  0x23   : > { %v482_v31 = vrot.slane %v421_v16, 2  ;;  %v383_v36 = vmul.f32 %v381_v27, %v312_v35  ;;  %v413_v37 = vadd.f32 %v406_v60, %v392_v19  ;;  %vm784_vm5 = vcmp.ne.s32.totalorder %v431_v14, 3 }
  0x24   : > { %v483_v26 = vrot.slane %v422_v20, 2  ;;  %v373_v30 = vsel %vm331_vm2, %v370_v48, %v372_v29  ;;  %v349_v28 = vmul.f32 %v752_v21, %v755_v22  ;;  %v351_v32 = vadd.f32 %v348_v4, %v341_v24 }
  0x25   : > { %v377_v38 = vadd.f32 %v373_v30, %v358_v11  ;;  %v423_v39 = vadd.f32 %v420_v33, %v413_v37  ;;  %v320_v40 = vmul.f32 %v742_v13, %v312_v35  ;;  %v473_v27 = vadd.f32 %v467_v23, %v458_v10 }
  0x26   : > { %v484_v41 = vsel %vm481_vm4, %v482_v31, %v483_v26  ;;  %vm462_vm6 = vcmp.ne.s32.totalorder %v438_v34, 0  ;;  %vm477_vm7 = vcmp.ne.s32.totalorder %v438_v34, 3  ;;  %v459_v13 = vadd.f32 %v620_v62, %v351_v32 }
  0x27   : > { %v489_v1 = vsel %vm784_vm5, %v484_v41, 0.0  ;;  %v385_v14 = vadd.f32 %v383_v36, %v377_v38  ;;  %v485_v21 = vrot.slane %v423_v39, 2  ;;  %v342_v22 = vadd.f32 %v335_v8, %v320_v40 }
  0x28   : > { %v493_v42 = vrot.slane %v489_v1, 7 }
  0x29   : > { %v464_v33 = vsel %vm462_vm6, %v385_v14, 0.0  ;;  %v486_v35 = vsel %vm481_vm4, %v483_v26, %v485_v21  ;;  %v352_v43 = vadd.f32 %v349_v28, %v342_v22 }
  0x2a   : > { %v499_v44 = vadd.f32 %v493_v42, %v473_v27  ;;  %v468_v15 = vrot.slane %v464_v33, 7  ;;  %v490_v34 = vsel %vm477_vm7, %v486_v35, 0.0 }
  0x2b   : > { %v494_v45 = vrot.slane %v490_v34, 7  ;;  %v460_v46 = vadd.f32 %v620_v62, %v352_v43 }
  0x2c   : > { %503 = vst.msk [vmem:[%s290_s11 - $0x1] sm:$0xfe] %vm502_vm8, %v499_v44  ;;  %v469_v47 = vsel %vm309_vm0, %v467_v23, %v468_v15 }
  0x2d   : > { %v474_v48 = vadd.f32 %v469_v47, %v459_v13  ;;  %v495_v49 = vsel %vm309_vm0, %v493_v42, %v494_v45  ;;  %v475_v50 = vadd.f32 %v468_v15, %v460_v46 }
  0x2f   : > { %v500_v51 = vadd.f32 %v495_v49, %v474_v48  ;;  %v501_v52 = vadd.f32 %v494_v45, %v475_v50 }
  0x31   : > { %505 = vst.msk [vmem:[%s290_s11 + $0x7] sm:$0xff] %vm504_vm9, %v500_v51 }
  0x32   : > { %507 = vst.msk [vmem:[%s290_s11 + $0xf] sm:$0x1] %vm506_vm10, %v501_v52 }
  0x33 PF: > { %s14_s17 = sadd.s32 1, %s674_s17   ;;  %s824_s15 = smov %s670_s16 }
  0x34   : > { %p11_p5 = scmp.ge.s32.totalorder %s14_s17, 4   ;;  %s825_s16 = smov %s827_s18 }
  0x36   :  { %13 = sbr.rel (!%p11_p5) target bundleno = 2 (0x2), region = 69 }

// kernel: dwconv_forward.4
= control target key start
LH: loop header
LB: loop body
LE: loop exit
PB: predicated region body
PF: predicated region fallthrough
CT: control target
= control target key end

     0   :  { %s2278_s15 = smov 0   ;;  %s2280_s16 = smov 0   ;;  %s3435_s0 = inlined_call_operand.vmem [shape: f32[2,340,8], index: 0, kind: input, shape index: {}]   ;;  %s3436_s1 = inlined_call_operand.vmem [shape: f32[2,1,32,8], index: 1, kind: input, shape index: {}]   ;;  %s3437_s2 = inlined_call_operand.vmem [shape: f32[9,8], index: 2, kind: input, shape index: {}]   ;;  %s3438_s3 = inlined_call_operand.vmem [shape: f32[1,8], index: 3, kind: input, shape index: {}]   ;;  %s3439_s4 = inlined_call_operand.vmem [shape: f32[2,256,8], index: 4, kind: output, shape index: {}]  }
   0x1   :  { %s2282_s17 = smov 0  }
   0x2 LB: > { %s26_s18 = sadd.s32 1, %s2247_s16  ;;  %p2190_p0 = scmp.ge.s32.totalorder %s2251_s17, 1  ;;  %s2251_s17 = sphi %s2282_s17, %s14_s17   ;;  %s2247_s16 = sphi %s2280_s16, %s3471_s16   ;;  %s2243_s15 = sphi %s2278_s15, %s3470_s15  }
   0x3   : > { %p28_p1 = scmp.ge.s32.totalorder %s26_s18, 2  ;;  %p207_p2 = scmp.lt.s32.totalorder %s2251_s17, 3 }
   0x5   : > { %s3473_s18 = smov (%p28_p1, %s26_s18), 0  ;;  %p208_p3 = pnand %p2190_p0, %p207_p2 }
   0x6   : > { %p259_p4 = scmp.lt.s32.totalorder (!%p208_p3), %s2243_s15, 1 }
   0x7   : > { %211 = sbr.rel (%p208_p3) target bundleno = 273 (0x111), region = 36 }
   0xc   : > { %v478_v0 = vlaneseq  ;;  %s3475_s15 = smov (!%p259_p4, %s2243_s15), 1  ;;  %v327_v2 = vld [vmem:[%s3437_s2] sm:$0xff]  ;;  %vm331_vm0 = vcmask 1040384   ;;  %v2352_v34 = vld [vmem:[%s3437_s2 + $0x8] ss:$0 sm:$0xff]  ;;  %vm1751_vm1 = vcmask 1045504  }
   0xd   : > { %s2202_s21 = smul.u32 344, %s3475_s15  ;;  %s2200_s22 = sshll.u32 %s3475_s15, 5  ;;  %v2389_v54 = vld [vmem:[%s3438_s3] ss:$0 sm:$0xff]  ;;  %vm2042_vm3 = vcmask 64513   ;;  %vm2044_vm4 = vcmask 64512  }
   0xe   : > { %v2298_v1 = vshrl.u32 %v478_v0, 7  ;;  %s2312_s25 = scalar_lea.vmem %s3436_s1, %s2200_s22  ;;  %s2201_s7 = sshll.u32 %s3475_s15, 8 }
   0xf   : > { %s2321_s28 = scalar_lea.vmem %s3435_s0, %s2202_s21  ;;  %v323_v11 = vld [vmem:[%s2312_s25] sm:$0xff]  ;;  %v324_v12 = vld [vmem:[%s2312_s25 + $0x8] sm:$0xff]  ;;  %v2326_v13 = vld [vmem:[%s2312_s25 + $0x10] sm:$0xff]  ;;  %s2433_s10 = scalar_lea.vmem %s3439_s4, %s2201_s7 }
  0x10   : > { %v480_v3 = vsub.s32 1, %v2298_v1  ;;  %v517_v4 = vsub.s32 4, %v2298_v1  ;;  %v587_v5 = vsub.s32 7, %v2298_v1  ;;  %v657_v6 = vsub.s32 0, %v2298_v1  ;;  %v291_v18 = vld [vmem:[%s2321_s28] sm:$0xff]  ;;  %v292_v19 = vld [vmem:[%s2321_s28 + $0x8] sm:$0xff] }
  0x11   : > { %v693_v7 = vsub.s32 3, %v2298_v1  ;;  %v761_v8 = vsub.s32 6, %v2298_v1  ;;  %v829_v9 = vsub.s32 2, %v2298_v1  ;;  %v866_v10 = vsub.s32 5, %v2298_v1  ;;  %v293_v20 = vld [vmem:[%s2321_s28 + $0x10] sm:$0xff]  ;;  %v294_v25 = vld [vmem:[%s2321_s28 + $0x18] sm:$0xff] }
  0x12   : > { %v2328_v14 = vrot.slane %v327_v2, %v480_v3  ;;  %v2330_v15 = vrot.slane %v327_v2, %v517_v4  ;;  %v2332_v16 = vrot.slane %v327_v2, %v587_v5  ;;  %v2334_v17 = vrot.slane %v327_v2, %v657_v6  ;;  %v295_v43 = vld [vmem:[%s2321_s28 + $0x20] sm:$0xff] }
  0x13   : > { %v332_v21 = vrot.slane %v323_v11, 7  ;;  %v333_v22 = vrot.slane %v324_v12, 7  ;;  %v468_v23 = vrot.slane %v2326_v13, 7  ;;  %v2340_v24 = vrot.slane %v327_v2, %v693_v7 }
  0x14   : > { %v370_v26 = vrot.slane %v291_v18, 7  ;;  %v371_v27 = vrot.slane %v292_v19, 7  ;;  %v373_v28 = vrot.slane %v293_v20, 7  ;;  %v2343_v29 = vrot.slane %v327_v2, %v761_v8  ;;  %v296_v18 = vld [vmem:[%s2321_s28 + $0x28] sm:$0xff] }
  0x15   : > { %v334_v30 = vsel %vm331_vm0, %v332_v21, %v333_v22  ;;  %v375_v31 = vrot.slane %v294_v25, 7  ;;  %v474_v32 = vsel %vm331_vm0, 0.0, %v332_v21  ;;  %v2347_v33 = vrot.slane %v327_v2, %v829_v9 }
  0x16   : > { %v2355_v35 = vsel %vm331_vm0, %v370_v26, %v371_v27  ;;  %v2358_v36 = vsel %vm331_vm0, %v371_v27, %v373_v28  ;;  %v2361_v37 = vsel %vm331_vm0, %v333_v22, %v370_v26  ;;  %v482_v38 = vmul.f32 %v2328_v14, %v474_v32 }
  0x17   : > { %v2365_v39 = vsel %vm331_vm0, %v373_v28, %v375_v31  ;;  %v519_v40 = vmul.f32 %v2330_v15, %v2361_v37  ;;  %v589_v41 = vmul.f32 %v2332_v16, %v2358_v36  ;;  %v659_v42 = vmul.f32 %v2334_v17, %v474_v32 }
  0x18   : > { %v695_v44 = vmul.f32 %v2340_v24, %v2361_v37  ;;  %v763_v45 = vmul.f32 %v2343_v29, %v2358_v36  ;;  %v831_v46 = vmul.f32 %v2347_v33, %v474_v32  ;;  %v832_v47 = vmul.f32 %v2347_v33, %v334_v30 }
  0x19   : > { %v552_v48 = vadd.f32 %v519_v40, %v482_v38  ;;  %v2379_v49 = vrot.slane %v327_v2, %v866_v10  ;;  %v938_v50 = vmul.f32 %v2352_v34, %v2358_v36  ;;  %v939_v51 = vmul.f32 %v2352_v34, %v2365_v39 }
  0x1a   : > { %v727_v52 = vadd.f32 %v695_v44, %v659_v42  ;;  %v1041_v53 = vand.u32 15, %v2298_v1  ;;  %v377_v55 = vrot.slane %v295_v43, 7  ;;  %v483_v56 = vmul.f32 %v2328_v14, %v334_v30 }
  0x1b   : > { %v622_v57 = vadd.f32 %v589_v41, %v552_v48  ;;  %v868_v58 = vmul.f32 %v2379_v49, %v2361_v37  ;;  %v869_v59 = vmul.f32 %v2379_v49, %v2355_v35  ;;  %v520_v60 = vmul.f32 %v2330_v15, %v2355_v35 }
  0x1c   : > { %v795_v61 = vadd.f32 %v763_v45, %v727_v52  ;;  %vm1461_vm2 = vcmp.ne.s32.totalorder %v1041_v53, 0  ;;  %v2399_v62 = vsel %vm331_vm0, %v375_v31, %v377_v55  ;;  %v590_v63 = vmul.f32 %v2332_v16, %v2365_v39 }
  0x1d   : > { %v901_v0 = vadd.f32 %v868_v58, %v831_v46  ;;  %v902_v2 = vadd.f32 %v869_v59, %v832_v47  ;;  %v1428_v3 = vadd.f32 %v2389_v54, %v622_v57  ;;  %v553_v4 = vadd.f32 %v520_v60, %v483_v56  ;;  %v297_v58 = vld [vmem:[%s2321_s28 + $0x30] sm:$0xff] }
  0x1e   : > { %v1493_v5 = vsel %vm1461_vm2, %v795_v61, 0.0  ;;  %v660_v6 = vmul.f32 %v2334_v17, %v334_v30  ;;  %v696_v7 = vmul.f32 %v2340_v24, %v2355_v35  ;;  %v764_v8 = vmul.f32 %v2343_v29, %v2365_v39 }
  0x1f   : > { %v971_v9 = vadd.f32 %v938_v50, %v901_v0  ;;  %v972_v10 = vadd.f32 %v939_v51, %v902_v2  ;;  %v1557_v11 = vrot.slane %v1493_v5, 7  ;;  %v623_v12 = vadd.f32 %v590_v63, %v553_v4 }
  0x20   : > { %v728_v19 = vadd.f32 %v696_v7, %v660_v6  ;;  %v833_v20 = vmul.f32 %v2347_v33, %v2361_v37  ;;  %v870_v21 = vmul.f32 %v2379_v49, %v2358_v36  ;;  %v940_v22 = vmul.f32 %v2352_v34, %v2399_v62 }
  0x21   : > { %v1653_v25 = vadd.f32 %v1557_v11, %v1428_v3  ;;  %v1752_v26 = vrot.slane %v971_v9, 2  ;;  %v1753_v27 = vrot.slane %v972_v10, 2  ;;  %v1006_v28 = vadd.s32 8, %v2298_v1 }
  0x22   : > { %v2418_v30 = vadd.f32 %v764_v8, %v728_v19  ;;  %v903_v31 = vadd.f32 %v870_v21, %v833_v20  ;;  %v1429_v32 = vadd.f32 %v2389_v54, %v623_v12  ;;  %v379_v38 = vrot.slane %v296_v18, 7 }
  0x23   : > { %v1754_v40 = vsel %vm1751_vm1, %v1752_v26, %v1753_v27  ;;  %v1048_v41 = vand.u32 15, %v1006_v28  ;;  %v484_v42 = vmul.f32 %v2328_v14, %v2361_v37  ;;  %v521_v43 = vmul.f32 %v2330_v15, %v2358_v36 }
  0x24   : > { %v1913_v44 = vrot.slane %v1754_v40, 7  ;;  %v973_v45 = vadd.f32 %v940_v22, %v903_v31  ;;  %v1558_v46 = vrot.slane %v2418_v30, 7  ;;  %v2428_v47 = vsel %vm331_vm0, %v377_v55, %v379_v38  ;;  %v298_v31 = vld [vmem:[%s2321_s28 + $0x38] sm:$0xff] }
  0x25   : > { %vm2435_vm5 = vcmp.ne.s32.totalorder %v1048_v41, 15  ;;  %v554_v50 = vadd.f32 %v521_v43, %v484_v42  ;;  %v591_v51 = vmul.f32 %v2332_v16, %v2399_v62  ;;  %v661_v52 = vmul.f32 %v2334_v17, %v2361_v37 }
  0x26   : > { %v2009_v53 = vadd.f32 %v1913_v44, %v1653_v25  ;;  %v1559_v55 = vsel %vm331_vm0, %v1557_v11, %v1558_v46  ;;  %v1755_v56 = vrot.slane %v973_v45, 2  ;;  %v697_v57 = vmul.f32 %v2340_v24, %v2358_v36 }
  0x27   : > { %v1654_v59 = vadd.f32 %v1559_v55, %v1429_v32  ;;  %v624_v60 = vadd.f32 %v591_v51, %v554_v50  ;;  %v765_v61 = vmul.f32 %v2343_v29, %v2399_v62  ;;  %v834_v63 = vmul.f32 %v2347_v33, %v2355_v35 }
  0x28   : > { %2043 = vst.msk [vmem:[%s2433_s10 - $0x1] sm:$0xfe] %vm2042_vm3, %v2009_v53  ;;  %v1756_v37 = vsel %vm1751_vm1, %v1753_v27, %v1755_v56  ;;  %v729_v0 = vadd.f32 %v697_v57, %v661_v52  ;;  %v871_v2 = vmul.f32 %v2379_v49, %v2365_v39  ;;  %v941_v3 = vmul.f32 %v2352_v34, %v2428_v47 }
  0x29   : > { %v1850_v4 = vsel %vm2435_vm5, %v1756_v37, 0.0  ;;  %v1007_v5 = vadd.s32 16, %v2298_v1  ;;  %v1430_v6 = vadd.f32 %v2389_v54, %v624_v60  ;;  %v381_v7 = vrot.slane %v297_v58, 7 }
  0x2a   : > { %v1914_v8 = vrot.slane %v1850_v4, 7  ;;  %v797_v9 = vadd.f32 %v765_v61, %v729_v0  ;;  %v904_v10 = vadd.f32 %v871_v2, %v834_v63  ;;  %v485_v11 = vmul.f32 %v2328_v14, %v2355_v35 }
  0x2b   : > { %v1055_v12 = vand.u32 15, %v1007_v5  ;;  %v2465_v18 = vsel %vm331_vm0, %v379_v38, %v381_v7  ;;  %v522_v19 = vmul.f32 %v2330_v15, %v2365_v39  ;;  %v592_v20 = vmul.f32 %v2332_v16, %v2428_v47 }
  0x2c   : > { %v1915_v21 = vsel %vm331_vm0, %v1913_v44, %v1914_v8  ;;  %v974_v22 = vadd.f32 %v941_v3, %v904_v10  ;;  %v662_v25 = vmul.f32 %v2334_v17, %v2355_v35  ;;  %v698_v26 = vmul.f32 %v2340_v24, %v2365_v39 }
  0x2d   : > { %v2010_v27 = vadd.f32 %v1915_v21, %v1654_v59  ;;  %vm1463_vm6 = vcmp.ne.s32.totalorder %v1055_v12, 0  ;;  %v555_v28 = vadd.f32 %v522_v19, %v485_v11  ;;  %v766_v30 = vmul.f32 %v2343_v29, %v2428_v47 }
  0x2e   : > { %v1495_v32 = vsel %vm1463_vm6, %v797_v9, 0.0  ;;  %v1757_v38 = vrot.slane %v974_v22, 2  ;;  %v730_v40 = vadd.f32 %v698_v26, %v662_v25  ;;  %v835_v41 = vmul.f32 %v2347_v33, %v2358_v36  ;;  %v299_v9 = vld [vmem:[%s2321_s28 + $0x40] sm:$0xff] }
  0x2f   : > { %2045 = vst.msk [vmem:[%s2433_s10 + $0x7] sm:$0xff] %vm2044_vm4, %v2010_v27  ;;  %v1560_v42 = vrot.slane %v1495_v32, 7  ;;  %v625_v35 = vadd.f32 %v592_v20, %v555_v28  ;;  %v872_v43 = vmul.f32 %v2379_v49, %v2399_v62  ;;  %v942_v44 = vmul.f32 %v2352_v34, %v2465_v18 }
  0x30   : > { %v1758_v45 = vsel %vm1751_vm1, %v1755_v56, %v1757_v38  ;;  %v2488_v48 = vadd.f32 %v766_v30, %v730_v40  ;;  %v1008_v50 = vadd.s32 24, %v2298_v1  ;;  %v383_v51 = vrot.slane %v298_v31, 7 }
  0x31   : > { %v1561_v52 = vsel %vm331_vm0, %v1558_v46, %v1560_v42  ;;  %v1916_v53 = vrot.slane %v1758_v45, 7  ;;  %v905_v55 = vadd.f32 %v872_v43, %v835_v41  ;;  %v1431_v57 = vadd.f32 %v2389_v54, %v625_v35 }
  0x32   : > { %v1655_v58 = vadd.f32 %v1561_v52, %v1430_v6  ;;  %v1062_v59 = vand.u32 15, %v1008_v50  ;;  %v1562_v60 = vrot.slane %v2488_v48, 7  ;;  %v2495_v61 = vsel %vm331_vm0, %v381_v7, %v383_v51 }
  0x33   : > { %v1917_v56 = vsel %vm331_vm0, %v1914_v8, %v1916_v53  ;;  %v975_v63 = vadd.f32 %v942_v44, %v905_v55  ;;  %v486_v37 = vmul.f32 %v2328_v14, %v2358_v36  ;;  %v523_v46 = vmul.f32 %v2330_v15, %v2399_v62 }
  0x34   : > { %v2011_v0 = vadd.f32 %v1917_v56, %v1655_v58  ;;  %v1563_v2 = vsel %vm331_vm0, %v1560_v42, %v1562_v60  ;;  %vm2503_vm7 = vcmp.ne.s32.totalorder %v1062_v59, 15  ;;  %v593_v4 = vmul.f32 %v2332_v16, %v2465_v18  ;;  %v300_v59 = vld [vmem:[%s2321_s28 + $0x48] sm:$0xff] }
  0x35   : > { %v1656_v5 = vadd.f32 %v1563_v2, %v1431_v57  ;;  %v1759_v6 = vrot.slane %v975_v63, 2  ;;  %v556_v7 = vadd.f32 %v523_v46, %v486_v37  ;;  %v663_v8 = vmul.f32 %v2334_v17, %v2358_v36 }
  0x36   : > { %2046 = vst.msk [vmem:[%s2433_s10 + $0xf] sm:$0xff] %vm2044_vm4, %v2011_v0  ;;  %v699_v10 = vmul.f32 %v2340_v24, %v2399_v62  ;;  %v767_v11 = vmul.f32 %v2343_v29, %v2465_v18  ;;  %v836_v12 = vmul.f32 %v2347_v33, %v2365_v39  ;;  %v873_v19 = vmul.f32 %v2379_v49, %v2428_v47 }
  0x37   : > { %v1760_v20 = vsel %vm1751_vm1, %v1757_v38, %v1759_v6  ;;  %v626_v21 = vadd.f32 %v593_v4, %v556_v7  ;;  %v943_v36 = vmul.f32 %v2352_v34, %v2495_v61  ;;  %v1009_v22 = vadd.s32 32, %v2298_v1 }
  0x38   : > { %v1852_v25 = vsel %vm2503_vm7, %v1760_v20, 0.0  ;;  %v731_v26 = vadd.f32 %v699_v10, %v663_v8  ;;  %v906_v27 = vadd.f32 %v873_v19, %v836_v12  ;;  %v385_v28 = vrot.slane %v299_v9, 7 }
  0x39   : > { %v1918_v30 = vrot.slane %v1852_v25, 7  ;;  %v1069_v31 = vand.u32 15, %v1009_v22  ;;  %v1432_v32 = vadd.f32 %v2389_v54, %v626_v21  ;;  %v487_v40 = vmul.f32 %v2328_v14, %v2365_v39 }
  0x3a   : > { %v799_v38 = vadd.f32 %v767_v11, %v731_v26  ;;  %v976_v41 = vadd.f32 %v943_v36, %v906_v27  ;;  %v2532_v42 = vsel %vm331_vm0, %v383_v51, %v385_v28  ;;  %v524_v35 = vmul.f32 %v2330_v15, %v2428_v47 }
  0x3b   : > { %v1919_v43 = vsel %vm331_vm0, %v1916_v53, %v1918_v30  ;;  %vm1465_vm8 = vcmp.ne.s32.totalorder %v1069_v31, 0  ;;  %v594_v44 = vmul.f32 %v2332_v16, %v2495_v61  ;;  %v664_v45 = vmul.f32 %v2334_v17, %v2365_v39  ;;  %v301_v31 = vld [vmem:[%s2321_s28 + $0x50] sm:$0xff] }
  0x3c   : > { %v2012_v48 = vadd.f32 %v1919_v43, %v1656_v5  ;;  %v1497_v50 = vsel %vm1465_vm8, %v799_v38, 0.0  ;;  %v1761_v52 = vrot.slane %v976_v41, 2  ;;  %v557_v55 = vadd.f32 %v524_v35, %v487_v40 }
  0x3d   : > { %v1564_v57 = vrot.slane %v1497_v50, 7  ;;  %v700_v51 = vmul.f32 %v2340_v24, %v2428_v47  ;;  %v768_v58 = vmul.f32 %v2343_v29, %v2495_v61  ;;  %v837_v53 = vmul.f32 %v2347_v33, %v2399_v62 }
  0x3e   : > { %2047 = vst.msk [vmem:[%s2433_s10 + $0x17] sm:$0xff] %vm2044_vm4, %v2012_v48  ;;  %v1762_v56 = vsel %vm1751_vm1, %v1759_v6, %v1761_v52  ;;  %v627_v39 = vadd.f32 %v594_v44, %v557_v55  ;;  %v874_v63 = vmul.f32 %v2379_v49, %v2465_v18  ;;  %v944_v37 = vmul.f32 %v2352_v34, %v2532_v42 }
  0x3f   : > { %v1565_v46 = vsel %vm331_vm0, %v1562_v60, %v1564_v57  ;;  %v1920_v0 = vrot.slane %v1762_v56, 7  ;;  %v732_v2 = vadd.f32 %v700_v51, %v664_v45  ;;  %v1010_v3 = vadd.s32 40, %v2298_v1 }
  0x40   : > { %v1657_v4 = vadd.f32 %v1565_v46, %v1432_v32  ;;  %v907_v5 = vadd.f32 %v874_v63, %v837_v53  ;;  %v1433_v7 = vadd.f32 %v2389_v54, %v627_v39  ;;  %v387_v8 = vrot.slane %v300_v59, 7 }
  0x41   : > { %v1921_v6 = vsel %vm331_vm0, %v1918_v30, %v1920_v0  ;;  %v800_v9 = vadd.f32 %v768_v58, %v732_v2  ;;  %v1076_v10 = vand.u32 15, %v1010_v3  ;;  %v488_v11 = vmul.f32 %v2328_v14, %v2399_v62 }
  0x42   : > { %v2013_v12 = vadd.f32 %v1921_v6, %v1657_v4  ;;  %v977_v60 = vadd.f32 %v944_v37, %v907_v5  ;;  %v2562_v19 = vsel %vm331_vm0, %v385_v28, %v387_v8  ;;  %v525_v20 = vmul.f32 %v2330_v15, %v2465_v18 }
  0x43   : > { %v1566_v21 = vrot.slane %v800_v9, 7  ;;  %vm2566_vm9 = vcmp.ne.s32.totalorder %v1076_v10, 15  ;;  %v595_v22 = vmul.f32 %v2332_v16, %v2532_v42  ;;  %v665_v25 = vmul.f32 %v2334_v17, %v2399_v62  ;;  %v302_v9 = vld [vmem:[%s2321_s28 + $0x58] sm:$0xff] }
  0x44   : > { %2048 = vst.msk [vmem:[%s2433_s10 + $0x1f] sm:$0xff] %vm2044_vm4, %v2013_v12  ;;  %v1763_v26 = vrot.slane %v977_v60, 2  ;;  %v558_v27 = vadd.f32 %v525_v20, %v488_v11  ;;  %v701_v28 = vmul.f32 %v2340_v24, %v2465_v18  ;;  %v769_v30 = vmul.f32 %v2343_v29, %v2532_v42 }
  0x45   : > { %v1567_v32 = vsel %vm331_vm0, %v1564_v57, %v1566_v21  ;;  %v838_v40 = vmul.f32 %v2347_v33, %v2428_v47  ;;  %v875_v38 = vmul.f32 %v2379_v49, %v2495_v61  ;;  %v945_v62 = vmul.f32 %v2352_v34, %v2562_v19 }
  0x46   : > { %v1658_v41 = vadd.f32 %v1567_v32, %v1433_v7  ;;  %v1764_v35 = vsel %vm1751_vm1, %v1761_v52, %v1763_v26  ;;  %v628_v43 = vadd.f32 %v595_v22, %v558_v27  ;;  %v733_v44 = vadd.f32 %v701_v28, %v665_v25 }
  0x47   : > { %v1854_v45 = vsel %vm2566_vm9, %v1764_v35, 0.0  ;;  %v908_v48 = vadd.f32 %v875_v38, %v838_v40  ;;  %v1011_v50 = vadd.s32 48, %v2298_v1  ;;  %v389_v55 = vrot.slane %v301_v31, 7 }
  0x48   : > { %v1922_v57 = vrot.slane %v1854_v45, 7  ;;  %v801_v51 = vadd.f32 %v769_v30, %v733_v44  ;;  %v1434_v58 = vadd.f32 %v2389_v54, %v628_v43  ;;  %v489_v53 = vmul.f32 %v2328_v14, %v2428_v47 }
  0x49   : > { %v978_v59 = vadd.f32 %v945_v62, %v908_v48  ;;  %v1083_v56 = vand.u32 15, %v1011_v50  ;;  %v2596_v52 = vsel %vm331_vm0, %v387_v8, %v389_v55  ;;  %v526_v39 = vmul.f32 %v2330_v15, %v2495_v61 }
  0x4a   : > { %v1923_v63 = vsel %vm331_vm0, %v1920_v0, %v1922_v57  ;;  %v596_v37 = vmul.f32 %v2332_v16, %v2562_v19  ;;  %v666_v46 = vmul.f32 %v2334_v17, %v2428_v47  ;;  %v702_v2 = vmul.f32 %v2340_v24, %v2495_v61 }
  0x4b   : > { %v2014_v3 = vadd.f32 %v1923_v63, %v1658_v41  ;;  %vm1467_vm10 = vcmp.ne.s32.totalorder %v1083_v56, 0  ;;  %v1765_v4 = vrot.slane %v978_v59, 2  ;;  %v559_v5 = vadd.f32 %v526_v39, %v489_v53 }
  0x4c   : > { %v1499_v7 = vsel %vm1467_vm10, %v801_v51, 0.0  ;;  %v734_v8 = vadd.f32 %v702_v2, %v666_v46  ;;  %v770_v6 = vmul.f32 %v2343_v29, %v2562_v19  ;;  %v839_v0 = vmul.f32 %v2347_v33, %v2465_v18  ;;  %v303_v51 = vld [vmem:[%s2321_s28 + $0x60] sm:$0xff] }
  0x4d   : > { %2049 = vst.msk [vmem:[%s2433_s10 + $0x27] sm:$0xff] %vm2044_vm4, %v2014_v3  ;;  %v1568_v10 = vrot.slane %v1499_v7, 7  ;;  %v1766_v47 = vsel %vm1751_vm1, %v1763_v26, %v1765_v4  ;;  %v629_v11 = vadd.f32 %v596_v37, %v559_v5  ;;  %v876_v12 = vmul.f32 %v2379_v49, %v2532_v42 }
  0x4e   : > { %v1924_v60 = vrot.slane %v1766_v47, 7  ;;  %v2617_v20 = vadd.f32 %v770_v6, %v734_v8  ;;  %v946_v36 = vmul.f32 %v2352_v34, %v2596_v52  ;;  %v1012_v22 = vadd.s32 56, %v2298_v1 }
  0x4f   : > { %v1569_v25 = vsel %vm331_vm0, %v1566_v21, %v1568_v10  ;;  %v909_v27 = vadd.f32 %v876_v12, %v839_v0  ;;  %v1435_v28 = vadd.f32 %v2389_v54, %v629_v11  ;;  %v391_v30 = vrot.slane %v302_v9, 7 }
  0x50   : > { %v1659_v31 = vadd.f32 %v1569_v25, %v1434_v58  ;;  %v1925_v26 = vsel %vm331_vm0, %v1922_v57, %v1924_v60  ;;  %v1090_v32 = vand.u32 15, %v1012_v22  ;;  %v1570_v40 = vrot.slane %v2617_v20, 7 }
  0x51   : > { %v979_v38 = vadd.f32 %v946_v36, %v909_v27  ;;  %v2627_v62 = vsel %vm331_vm0, %v389_v55, %v391_v30  ;;  %v490_v41 = vmul.f32 %v2328_v14, %v2465_v18  ;;  %v527_v21 = vmul.f32 %v2330_v15, %v2532_v42 }
  0x52   : > { %v2015_v35 = vadd.f32 %v1925_v26, %v1659_v31  ;;  %v1571_v43 = vsel %vm331_vm0, %v1568_v10, %v1570_v40  ;;  %vm2634_vm11 = vcmp.ne.s32.totalorder %v1090_v32, 15  ;;  %v597_v45 = vmul.f32 %v2332_v16, %v2596_v52  ;;  %v304_v26 = vld [vmem:[%s2321_s28 + $0x68] sm:$0xff] }
  0x53   : > { %v1660_v48 = vadd.f32 %v1571_v43, %v1435_v28  ;;  %v1767_v50 = vrot.slane %v979_v38, 2  ;;  %v560_v55 = vadd.f32 %v527_v21, %v490_v41  ;;  %v667_v57 = vmul.f32 %v2334_v17, %v2465_v18 }
  0x54   : > { %2050 = vst.msk [vmem:[%s2433_s10 + $0x2f] sm:$0xff] %vm2044_vm4, %v2015_v35  ;;  %v703_v58 = vmul.f32 %v2340_v24, %v2532_v42  ;;  %v771_v53 = vmul.f32 %v2343_v29, %v2596_v52  ;;  %v840_v59 = vmul.f32 %v2347_v33, %v2495_v61  ;;  %v877_v56 = vmul.f32 %v2379_v49, %v2562_v19 }
  0x55   : > { %v1768_v39 = vsel %vm1751_vm1, %v1765_v4, %v1767_v50  ;;  %v630_v63 = vadd.f32 %v597_v45, %v560_v55  ;;  %v947_v18 = vmul.f32 %v2352_v34, %v2627_v62  ;;  %v1013_v37 = vadd.s32 64, %v2298_v1 }
  0x56   : > { %v1856_v46 = vsel %vm2634_vm11, %v1768_v39, 0.0  ;;  %v735_v2 = vadd.f32 %v703_v58, %v667_v57  ;;  %v910_v3 = vadd.f32 %v877_v56, %v840_v59  ;;  %v393_v5 = vrot.slane %v303_v51, 7 }
  0x57   : > { %v1926_v7 = vrot.slane %v1856_v46, 7  ;;  %v1097_v8 = vand.u32 15, %v1013_v37  ;;  %v1436_v6 = vadd.f32 %v2389_v54, %v630_v63  ;;  %v491_v0 = vmul.f32 %v2328_v14, %v2495_v61 }
  0x58   : > { %v803_v4 = vadd.f32 %v771_v53, %v735_v2  ;;  %v980_v9 = vadd.f32 %v947_v18, %v910_v3  ;;  %v2663_v10 = vsel %vm331_vm0, %v391_v30, %v393_v5  ;;  %v528_v47 = vmul.f32 %v2330_v15, %v2562_v19 }
  0x59   : > { %v1927_v11 = vsel %vm331_vm0, %v1924_v60, %v1926_v7  ;;  %vm1469_vm12 = vcmp.ne.s32.totalorder %v1097_v8, 0  ;;  %v598_v12 = vmul.f32 %v2332_v16, %v2627_v62  ;;  %v668_v20 = vmul.f32 %v2334_v17, %v2495_v61  ;;  %v305_v8 = vld [vmem:[%s2321_s28 + $0x70] sm:$0xff] }
  0x5a   : > { %v2016_v36 = vadd.f32 %v1927_v11, %v1660_v48  ;;  %v1501_v22 = vsel %vm1469_vm12, %v803_v4, 0.0  ;;  %v1769_v25 = vrot.slane %v980_v9, 2  ;;  %v561_v27 = vadd.f32 %v528_v47, %v491_v0 }
  0x5b   : > { %v1572_v28 = vrot.slane %v1501_v22, 7  ;;  %v704_v30 = vmul.f32 %v2340_v24, %v2562_v19  ;;  %v772_v31 = vmul.f32 %v2343_v29, %v2627_v62  ;;  %v841_v60 = vmul.f32 %v2347_v33, %v2532_v42 }
  0x5c   : > { %2051 = vst.msk [vmem:[%s2433_s10 + $0x37] sm:$0xff] %vm2044_vm4, %v2016_v36  ;;  %v1770_v32 = vsel %vm1751_vm1, %v1767_v50, %v1769_v25  ;;  %v631_v61 = vadd.f32 %v598_v12, %v561_v27  ;;  %v878_v38 = vmul.f32 %v2379_v49, %v2596_v52  ;;  %v948_v41 = vmul.f32 %v2352_v34, %v2663_v10 }
  0x5d   : > { %v1573_v21 = vsel %vm331_vm0, %v1570_v40, %v1572_v28  ;;  %v1928_v35 = vrot.slane %v1770_v32, 7  ;;  %v736_v43 = vadd.f32 %v704_v30, %v668_v20  ;;  %v1014_v44 = vadd.s32 72, %v2298_v1 }
  0x5e   : > { %v1661_v45 = vadd.f32 %v1573_v21, %v1436_v6  ;;  %v911_v48 = vadd.f32 %v878_v38, %v841_v60  ;;  %v1437_v55 = vadd.f32 %v2389_v54, %v631_v61  ;;  %v395_v57 = vrot.slane %v304_v26, 7 }
  0x5f   : > { %v1929_v50 = vsel %vm331_vm0, %v1926_v7, %v1928_v35  ;;  %v804_v51 = vadd.f32 %v772_v31, %v736_v43  ;;  %v1104_v58 = vand.u32 15, %v1014_v44  ;;  %v492_v53 = vmul.f32 %v2328_v14, %v2532_v42 }
  0x60   : > { %v2017_v59 = vadd.f32 %v1929_v50, %v1661_v45  ;;  %v981_v40 = vadd.f32 %v948_v41, %v911_v48  ;;  %v2693_v56 = vsel %vm331_vm0, %v393_v5, %v395_v57  ;;  %v529_v39 = vmul.f32 %v2330_v15, %v2596_v52 }
  0x61   : > { %v1574_v63 = vrot.slane %v804_v51, 7  ;;  %vm2697_vm13 = vcmp.ne.s32.totalorder %v1104_v58, 15  ;;  %v599_v37 = vmul.f32 %v2332_v16, %v2663_v10  ;;  %v669_v46 = vmul.f32 %v2334_v17, %v2532_v42  ;;  %v306_v51 = vld [vmem:[%s2321_s28 + $0x78] sm:$0xff] }
  0x62   : > { %2052 = vst.msk [vmem:[%s2433_s10 + $0x3f] sm:$0xff] %vm2044_vm4, %v2017_v59  ;;  %v1771_v2 = vrot.slane %v981_v40, 2  ;;  %v562_v3 = vadd.f32 %v529_v39, %v492_v53  ;;  %v705_v5 = vmul.f32 %v2340_v24, %v2596_v52  ;;  %v773_v7 = vmul.f32 %v2343_v29, %v2663_v10 }
  0x63   : > { %v1575_v6 = vsel %vm331_vm0, %v1572_v28, %v1574_v63  ;;  %v842_v0 = vmul.f32 %v2347_v33, %v2562_v19  ;;  %v879_v4 = vmul.f32 %v2379_v49, %v2627_v62  ;;  %v949_v42 = vmul.f32 %v2352_v34, %v2693_v56 }
  0x64   : > { %v1662_v9 = vadd.f32 %v1575_v6, %v1437_v55  ;;  %v1772_v47 = vsel %vm1751_vm1, %v1769_v25, %v1771_v2  ;;  %v632_v11 = vadd.f32 %v599_v37, %v562_v3  ;;  %v737_v12 = vadd.f32 %v705_v5, %v669_v46 }
  0x65   : > { %v1858_v20 = vsel %vm2697_vm13, %v1772_v47, 0.0  ;;  %v912_v36 = vadd.f32 %v879_v4, %v842_v0  ;;  %v1015_v22 = vadd.s32 80, %v2298_v1  ;;  %v397_v27 = vrot.slane %v305_v8, 7 }
  0x66   : > { %v1930_v28 = vrot.slane %v1858_v20, 7  ;;  %v805_v30 = vadd.f32 %v773_v7, %v737_v12  ;;  %v1438_v31 = vadd.f32 %v2389_v54, %v632_v11  ;;  %v493_v60 = vmul.f32 %v2328_v14, %v2562_v19 }
  0x67   : > { %v982_v26 = vadd.f32 %v949_v42, %v912_v36  ;;  %v1111_v32 = vand.u32 15, %v1015_v22  ;;  %v2727_v25 = vsel %vm331_vm0, %v395_v57, %v397_v27  ;;  %v530_v61 = vmul.f32 %v2330_v15, %v2627_v62 }
  0x68   : > { %v1931_v38 = vsel %vm331_vm0, %v1928_v35, %v1930_v28  ;;  %v600_v41 = vmul.f32 %v2332_v16, %v2693_v56  ;;  %v670_v21 = vmul.f32 %v2334_v17, %v2562_v19  ;;  %v706_v43 = vmul.f32 %v2340_v24, %v2627_v62 }
  0x69   : > { %v2018_v44 = vadd.f32 %v1931_v38, %v1662_v9  ;;  %vm1471_vm14 = vcmp.ne.s32.totalorder %v1111_v32, 0  ;;  %v1773_v45 = vrot.slane %v982_v26, 2  ;;  %v563_v48 = vadd.f32 %v530_v61, %v493_v60 }
  0x6a   : > { %v1503_v55 = vsel %vm1471_vm14, %v805_v30, 0.0  ;;  %v738_v57 = vadd.f32 %v706_v43, %v670_v21  ;;  %v774_v50 = vmul.f32 %v2343_v29, %v2693_v56  ;;  %v843_v35 = vmul.f32 %v2347_v33, %v2596_v52  ;;  %v307_v30 = vld [vmem:[%s2321_s28 + $0x80] sm:$0xff] }
  0x6b   : > { %2053 = vst.msk [vmem:[%s2433_s10 + $0x47] sm:$0xff] %vm2044_vm4, %v2018_v44  ;;  %v1576_v58 = vrot.slane %v1503_v55, 7  ;;  %v1774_v19 = vsel %vm1751_vm1, %v1771_v2, %v1773_v45  ;;  %v633_v53 = vadd.f32 %v600_v41, %v563_v48  ;;  %v880_v59 = vmul.f32 %v2379_v49, %v2663_v10 }
  0x6c   : > { %v1932_v40 = vrot.slane %v1774_v19, 7  ;;  %v2748_v39 = vadd.f32 %v774_v50, %v738_v57  ;;  %v950_v18 = vmul.f32 %v2352_v34, %v2727_v25  ;;  %v1016_v37 = vadd.s32 88, %v2298_v1 }
  0x6d   : > { %v1577_v46 = vsel %vm331_vm0, %v1574_v63, %v1576_v58  ;;  %v913_v3 = vadd.f32 %v880_v59, %v843_v35  ;;  %v1439_v5 = vadd.f32 %v2389_v54, %v633_v53  ;;  %v399_v7 = vrot.slane %v306_v51, 7 }
  0x6e   : > { %v1663_v8 = vadd.f32 %v1577_v46, %v1438_v31  ;;  %v1933_v2 = vsel %vm331_vm0, %v1930_v28, %v1932_v40  ;;  %v1118_v6 = vand.u32 15, %v1016_v37  ;;  %v1578_v0 = vrot.slane %v2748_v39, 7 }
  0x6f   : > { %v983_v4 = vadd.f32 %v950_v18, %v913_v3  ;;  %v2758_v42 = vsel %vm331_vm0, %v397_v27, %v399_v7  ;;  %v494_v9 = vmul.f32 %v2328_v14, %v2596_v52  ;;  %v531_v63 = vmul.f32 %v2330_v15, %v2663_v10 }
  0x70   : > { %v2019_v47 = vadd.f32 %v1933_v2, %v1663_v8  ;;  %v1579_v11 = vsel %vm331_vm0, %v1576_v58, %v1578_v0  ;;  %vm2765_vm15 = vcmp.ne.s32.totalorder %v1118_v6, 15  ;;  %v601_v20 = vmul.f32 %v2332_v16, %v2727_v25  ;;  %v308_v2 = vld [vmem:[%s2321_s28 + $0x88] sm:$0xff] }
  0x71   : > { %v1664_v36 = vadd.f32 %v1579_v11, %v1439_v5  ;;  %v1775_v22 = vrot.slane %v983_v4, 2  ;;  %v564_v27 = vadd.f32 %v531_v63, %v494_v9  ;;  %v671_v28 = vmul.f32 %v2334_v17, %v2596_v52 }
  0x72   : > { %2054 = vst.msk [vmem:[%s2433_s10 + $0x4f] sm:$0xff] %vm2044_vm4, %v2019_v47  ;;  %v707_v31 = vmul.f32 %v2340_v24, %v2663_v10  ;;  %v775_v60 = vmul.f32 %v2343_v29, %v2727_v25  ;;  %v844_v26 = vmul.f32 %v2347_v33, %v2627_v62  ;;  %v881_v32 = vmul.f32 %v2379_v49, %v2693_v56 }
  0x73   : > { %v1776_v61 = vsel %vm1751_vm1, %v1773_v45, %v1775_v22  ;;  %v634_v38 = vadd.f32 %v601_v20, %v564_v27  ;;  %v951_v52 = vmul.f32 %v2352_v34, %v2758_v42  ;;  %v1017_v41 = vadd.s32 96, %v2298_v1 }
  0x74   : > { %v1860_v21 = vsel %vm2765_vm15, %v1776_v61, 0.0  ;;  %v739_v43 = vadd.f32 %v707_v31, %v671_v28  ;;  %v914_v44 = vadd.f32 %v881_v32, %v844_v26  ;;  %v401_v48 = vrot.slane %v307_v30, 7 }
  0x75   : > { %v1934_v55 = vrot.slane %v1860_v21, 7  ;;  %v1125_v57 = vand.u32 15, %v1017_v41  ;;  %v1440_v50 = vadd.f32 %v2389_v54, %v634_v38  ;;  %v495_v35 = vmul.f32 %v2328_v14, %v2627_v62 }
  0x76   : > { %v807_v45 = vadd.f32 %v775_v60, %v739_v43  ;;  %v984_v51 = vadd.f32 %v951_v52, %v914_v44  ;;  %v2794_v58 = vsel %vm331_vm0, %v399_v7, %v401_v48  ;;  %v532_v19 = vmul.f32 %v2330_v15, %v2693_v56 }
  0x77   : > { %v1935_v53 = vsel %vm331_vm0, %v1932_v40, %v1934_v55  ;;  %vm1473_vm2 = vcmp.ne.s32.totalorder %v1125_v57, 0  ;;  %v602_v59 = vmul.f32 %v2332_v16, %v2758_v42  ;;  %v672_v39 = vmul.f32 %v2334_v17, %v2627_v62  ;;  %v309_v57 = vld [vmem:[%s2321_s28 + $0x90] sm:$0xff] }
  0x78   : > { %v2020_v18 = vadd.f32 %v1935_v53, %v1664_v36  ;;  %v1505_v37 = vsel %vm1473_vm2, %v807_v45, 0.0  ;;  %v1777_v46 = vrot.slane %v984_v51, 2  ;;  %v565_v3 = vadd.f32 %v532_v19, %v495_v35 }
  0x79   : > { %v1580_v5 = vrot.slane %v1505_v37, 7  ;;  %v708_v7 = vmul.f32 %v2340_v24, %v2693_v56  ;;  %v776_v8 = vmul.f32 %v2343_v29, %v2758_v42  ;;  %v845_v40 = vmul.f32 %v2347_v33, %v2663_v10 }
  0x7a   : > { %2055 = vst.msk [vmem:[%s2433_s10 + $0x57] sm:$0xff] %vm2044_vm4, %v2020_v18  ;;  %v1778_v6 = vsel %vm1751_vm1, %v1775_v22, %v1777_v46  ;;  %v635_v62 = vadd.f32 %v602_v59, %v565_v3  ;;  %v882_v4 = vmul.f32 %v2379_v49, %v2727_v25  ;;  %v952_v9 = vmul.f32 %v2352_v34, %v2794_v58 }
  0x7b   : > { %v1581_v63 = vsel %vm331_vm0, %v1578_v0, %v1580_v5  ;;  %v1936_v47 = vrot.slane %v1778_v6, 7  ;;  %v740_v11 = vadd.f32 %v708_v7, %v672_v39  ;;  %v1018_v12 = vadd.s32 104, %v2298_v1 }
  0x7c   : > { %v1665_v20 = vadd.f32 %v1581_v63, %v1440_v50  ;;  %v915_v36 = vadd.f32 %v882_v4, %v845_v40  ;;  %v1441_v27 = vadd.f32 %v2389_v54, %v635_v62  ;;  %v403_v28 = vrot.slane %v308_v2, 7 }
  0x7d   : > { %v1937_v22 = vsel %vm331_vm0, %v1934_v55, %v1936_v47  ;;  %v808_v30 = vadd.f32 %v776_v8, %v740_v11  ;;  %v1132_v31 = vand.u32 15, %v1018_v12  ;;  %v496_v60 = vmul.f32 %v2328_v14, %v2663_v10 }
  0x7e   : > { %v2021_v26 = vadd.f32 %v1937_v22, %v1665_v20  ;;  %v985_v0 = vadd.f32 %v952_v9, %v915_v36  ;;  %v2824_v32 = vsel %vm331_vm0, %v401_v48, %v403_v28  ;;  %v533_v61 = vmul.f32 %v2330_v15, %v2727_v25 }
  0x7f   : > { %v1582_v38 = vrot.slane %v808_v30, 7  ;;  %vm2828_vm3 = vcmp.ne.s32.totalorder %v1132_v31, 15  ;;  %v603_v41 = vmul.f32 %v2332_v16, %v2794_v58  ;;  %v673_v21 = vmul.f32 %v2334_v17, %v2663_v10  ;;  %v310_v30 = vld [vmem:[%s2321_s28 + $0x98] sm:$0xff] }
  0x80   : > { %2056 = vst.msk [vmem:[%s2433_s10 + $0x5f] sm:$0xff] %vm2044_vm4, %v2021_v26  ;;  %v1779_v43 = vrot.slane %v985_v0, 2  ;;  %v566_v44 = vadd.f32 %v533_v61, %v496_v60  ;;  %v709_v48 = vmul.f32 %v2340_v24, %v2727_v25  ;;  %v777_v55 = vmul.f32 %v2343_v29, %v2794_v58 }
  0x81   : > { %v1583_v50 = vsel %vm331_vm0, %v1580_v5, %v1582_v38  ;;  %v846_v35 = vmul.f32 %v2347_v33, %v2693_v56  ;;  %v883_v45 = vmul.f32 %v2379_v49, %v2758_v42  ;;  %v953_v10 = vmul.f32 %v2352_v34, %v2824_v32 }
  0x82   : > { %v1666_v51 = vadd.f32 %v1583_v50, %v1441_v27  ;;  %v1780_v19 = vsel %vm1751_vm1, %v1777_v46, %v1779_v43  ;;  %v636_v53 = vadd.f32 %v603_v41, %v566_v44  ;;  %v741_v59 = vadd.f32 %v709_v48, %v673_v21 }
  0x83   : > { %v1862_v39 = vsel %vm2828_vm3, %v1780_v19, 0.0  ;;  %v916_v18 = vadd.f32 %v883_v45, %v846_v35  ;;  %v1019_v37 = vadd.s32 112, %v2298_v1  ;;  %v405_v3 = vrot.slane %v309_v57, 7 }
  0x84   : > { %v1938_v5 = vrot.slane %v1862_v39, 7  ;;  %v809_v7 = vadd.f32 %v777_v55, %v741_v59  ;;  %v1442_v8 = vadd.f32 %v2389_v54, %v636_v53  ;;  %v497_v40 = vmul.f32 %v2328_v14, %v2693_v56 }
  0x85   : > { %v986_v2 = vadd.f32 %v953_v10, %v916_v18  ;;  %v1139_v6 = vand.u32 15, %v1019_v37  ;;  %v2858_v46 = vsel %vm331_vm0, %v403_v28, %v405_v3  ;;  %v534_v62 = vmul.f32 %v2330_v15, %v2758_v42 }
  0x86   : > { %v1939_v4 = vsel %vm331_vm0, %v1936_v47, %v1938_v5  ;;  %v604_v9 = vmul.f32 %v2332_v16, %v2824_v32  ;;  %v674_v63 = vmul.f32 %v2334_v17, %v2693_v56  ;;  %v710_v11 = vmul.f32 %v2340_v24, %v2758_v42 }
  0x87   : > { %v2022_v12 = vadd.f32 %v1939_v4, %v1666_v51  ;;  %vm1475_vm5 = vcmp.ne.s32.totalorder %v1139_v6, 0  ;;  %v1781_v20 = vrot.slane %v986_v2, 2  ;;  %v567_v36 = vadd.f32 %v534_v62, %v497_v40 }
  0x88   : > { %v1507_v27 = vsel %vm1475_vm5, %v809_v7, 0.0  ;;  %v742_v28 = vadd.f32 %v710_v11, %v674_v63  ;;  %v778_v22 = vmul.f32 %v2343_v29, %v2824_v32  ;;  %v847_v47 = vmul.f32 %v2347_v33, %v2727_v25 }
  0x89   : > { %2057 = vst.msk [vmem:[%s2433_s10 + $0x67] sm:$0xff] %vm2044_vm4, %v2022_v12  ;;  %v1584_v31 = vrot.slane %v1507_v27, 7  ;;  %v1782_v56 = vsel %vm1751_vm1, %v1779_v43, %v1781_v20  ;;  %v637_v60 = vadd.f32 %v604_v9, %v567_v36  ;;  %v884_v26 = vmul.f32 %v2379_v49, %v2794_v58 }
  0x8a   : > { %v1940_v0 = vrot.slane %v1782_v56, 7  ;;  %v2879_v61 = vadd.f32 %v778_v22, %v742_v28  ;;  %v954_v52 = vmul.f32 %v2352_v34, %v2858_v46  ;;  %v1020_v41 = vadd.s32 120, %v2298_v1 }
  0x8b   : > { %v1585_v21 = vsel %vm331_vm0, %v1582_v38, %v1584_v31  ;;  %v917_v44 = vadd.f32 %v884_v26, %v847_v47  ;;  %v1443_v48 = vadd.f32 %v2389_v54, %v637_v60  ;;  %v407_v55 = vrot.slane %v310_v30, 7 }
  0x8c   : > { %v1667_v57 = vadd.f32 %v1585_v21, %v1442_v8  ;;  %v1941_v43 = vsel %vm331_vm0, %v1938_v5, %v1940_v0  ;;  %v1146_v50 = vand.u32 15, %v1020_v41  ;;  %v1586_v35 = vrot.slane %v2879_v61, 7 }
  0x8d   : > { %v987_v45 = vadd.f32 %v954_v52, %v917_v44  ;;  %v2889_v10 = vsel %vm331_vm0, %v405_v3, %v407_v55  ;;  %v498_v34 = vmul.f32 %v2328_v14, %v2727_v25  ;;  %v535_v38 = vmul.f32 %v2330_v15, %v2794_v58  ;;  %v311_v3 = vld [vmem:[%s2321_s28 + $0xa0] sm:$0xff] }
  0x8e   : > { %v2023_v54 = vadd.f32 %v1941_v43, %v1667_v57  ;;  %v1587_v51 = vsel %vm331_vm0, %v1584_v31, %v1586_v35  ;;  %vm2896_vm6 = vcmp.ne.s32.totalorder %v1146_v50, 15  ;;  %v605_v53 = vmul.f32 %v2332_v16, %v2858_v46  ;;  %v312_v43 = vld [vmem:[%s2321_s28 + $0xa8] sm:$0xff] }
  0x8f   : > { %v1668_v59 = vadd.f32 %v1587_v51, %v1443_v48  ;;  %v1783_v39 = vrot.slane %v987_v45, 2  ;;  %v568_v18 = vadd.f32 %v535_v38, %v498_v34  ;;  %v675_v37 = vmul.f32 %v2334_v17, %v2727_v25  ;;  %v2919_v25 = vld [vmem:[%s3437_s2 + $0x8] ss:$0 sm:$0xff] }
  0x90   : > { %2058 = vst.msk [vmem:[%s2433_s10 + $0x6f] sm:$0xff] %vm2044_vm4, %v2023_v54  ;;  %v711_v5 = vmul.f32 %v2340_v24, %v2794_v58  ;;  %v779_v7 = vmul.f32 %v2343_v29, %v2858_v46  ;;  %v848_v8 = vmul.f32 %v2347_v33, %v2758_v42  ;;  %v885_v40 = vmul.f32 %v2379_v49, %v2824_v32 }
  0x91   : > { %v1784_v2 = vsel %vm1751_vm1, %v1781_v20, %v1783_v39  ;;  %v638_v6 = vadd.f32 %v605_v53, %v568_v18  ;;  %v955_v62 = vmul.f32 %v2919_v25, %v2889_v10  ;;  %v1021_v4 = vadd.s32 128, %v2298_v1  ;;  %v2929_v20 = vld [vmem:[%s3438_s3] ss:$0 sm:$0xff] }
  0x92   : > { %v1864_v9 = vsel %vm2896_vm6, %v1784_v2, 0.0  ;;  %v743_v63 = vadd.f32 %v711_v5, %v675_v37  ;;  %v918_v11 = vadd.f32 %v885_v40, %v848_v8  ;;  %v409_v12 = vrot.slane %v311_v3, 7 }
  0x93   : > { %v1942_v36 = vrot.slane %v1864_v9, 7  ;;  %v1153_v27 = vand.u32 15, %v1021_v4  ;;  %v1444_v28 = vadd.f32 %v2929_v20, %v638_v6  ;;  %v499_v22 = vmul.f32 %v2328_v14, %v2758_v42 }
  0x94   : > { %v811_v47 = vadd.f32 %v779_v7, %v743_v63  ;;  %v988_v30 = vadd.f32 %v955_v62, %v918_v11  ;;  %v2935_v31 = vsel %vm331_vm0, %v407_v55, %v409_v12  ;;  %v536_v56 = vmul.f32 %v2330_v15, %v2824_v32 }
  0x95   : > { %v1943_v60 = vsel %vm331_vm0, %v1940_v0, %v1942_v36  ;;  %vm1477_vm7 = vcmp.ne.s32.totalorder %v1153_v27, 0  ;;  %v606_v26 = vmul.f32 %v2332_v16, %v2889_v10  ;;  %v676_v61 = vmul.f32 %v2334_v17, %v2758_v42  ;;  %v313_v27 = vld [vmem:[%s2321_s28 + $0xb0] sm:$0xff] }
  0x96   : > { %v2024_v52 = vadd.f32 %v1943_v60, %v1668_v59  ;;  %v1509_v41 = vsel %vm1477_vm7, %v811_v47, 0.0  ;;  %v1785_v21 = vrot.slane %v988_v30, 2  ;;  %v569_v44 = vadd.f32 %v536_v56, %v499_v22 }
  0x97   : > { %v1588_v48 = vrot.slane %v1509_v41, 7  ;;  %v712_v55 = vmul.f32 %v2340_v24, %v2824_v32  ;;  %v780_v57 = vmul.f32 %v2343_v29, %v2889_v10  ;;  %v849_v0 = vmul.f32 %v2347_v33, %v2794_v58 }
  0x98   : > { %2059 = vst.msk [vmem:[%s2433_s10 + $0x77] sm:$0xff] %vm2044_vm4, %v2024_v52  ;;  %v1786_v50 = vsel %vm1751_vm1, %v1783_v39, %v1785_v21  ;;  %v639_v42 = vadd.f32 %v606_v26, %v569_v44  ;;  %v886_v45 = vmul.f32 %v2379_v49, %v2858_v46  ;;  %v956_v34 = vmul.f32 %v2919_v25, %v2935_v31 }
  0x99   : > { %v1589_v38 = vsel %vm331_vm0, %v1586_v35, %v1588_v48  ;;  %v1944_v54 = vrot.slane %v1786_v50, 7  ;;  %v744_v51 = vadd.f32 %v712_v55, %v676_v61  ;;  %v1022_v19 = vadd.s32 136, %v2298_v1 }
  0x9a   : > { %v1669_v53 = vadd.f32 %v1589_v38, %v1444_v28  ;;  %v919_v59 = vadd.f32 %v886_v45, %v849_v0  ;;  %v1445_v18 = vadd.f32 %v2929_v20, %v639_v42  ;;  %v411_v37 = vrot.slane %v312_v43, 7 }
  0x9b   : > { %v1945_v39 = vsel %vm331_vm0, %v1942_v36, %v1944_v54  ;;  %v812_v3 = vadd.f32 %v780_v57, %v744_v51  ;;  %v1160_v5 = vand.u32 15, %v1022_v19  ;;  %v500_v7 = vmul.f32 %v2328_v14, %v2794_v58 }
  0x9c   : > { %v2025_v8 = vadd.f32 %v1945_v39, %v1669_v53  ;;  %v989_v35 = vadd.f32 %v956_v34, %v919_v59  ;;  %v2965_v40 = vsel %vm331_vm0, %v409_v12, %v411_v37  ;;  %v537_v2 = vmul.f32 %v2330_v15, %v2858_v46 }
  0x9d   : > { %v1590_v6 = vrot.slane %v812_v3, 7  ;;  %vm2969_vm8 = vcmp.ne.s32.totalorder %v1160_v5, 15  ;;  %v607_v4 = vmul.f32 %v2332_v16, %v2935_v31  ;;  %v677_v9 = vmul.f32 %v2334_v17, %v2794_v58  ;;  %v314_v3 = vld [vmem:[%s2321_s28 + $0xb8] sm:$0xff] }
  0x9e   : > { %2060 = vst.msk [vmem:[%s2433_s10 + $0x7f] sm:$0xff] %vm2044_vm4, %v2025_v8  ;;  %v1787_v63 = vrot.slane %v989_v35, 2  ;;  %v570_v11 = vadd.f32 %v537_v2, %v500_v7  ;;  %v713_v12 = vmul.f32 %v2340_v24, %v2858_v46  ;;  %v781_v36 = vmul.f32 %v2343_v29, %v2935_v31 }
  0x9f   : > { %v1591_v28 = vsel %vm331_vm0, %v1588_v48, %v1590_v6  ;;  %v850_v22 = vmul.f32 %v2347_v33, %v2824_v32  ;;  %v887_v47 = vmul.f32 %v2379_v49, %v2889_v10  ;;  %v957_v58 = vmul.f32 %v2919_v25, %v2965_v40 }
  0xa0   : > { %v1670_v30 = vadd.f32 %v1591_v28, %v1445_v18  ;;  %v1788_v56 = vsel %vm1751_vm1, %v1785_v21, %v1787_v63  ;;  %v640_v60 = vadd.f32 %v607_v4, %v570_v11  ;;  %v745_v26 = vadd.f32 %v713_v12, %v677_v9 }
  0xa1   : > { %v1866_v61 = vsel %vm2969_vm8, %v1788_v56, 0.0  ;;  %v920_v52 = vadd.f32 %v887_v47, %v850_v22  ;;  %v1023_v41 = vadd.s32 144, %v2298_v1  ;;  %v413_v44 = vrot.slane %v313_v27, 7 }
  0xa2   : > { %v1946_v48 = vrot.slane %v1866_v61, 7  ;;  %v813_v55 = vadd.f32 %v781_v36, %v745_v26  ;;  %v1446_v57 = vadd.f32 %v2929_v20, %v640_v60  ;;  %v501_v0 = vmul.f32 %v2328_v14, %v2824_v32 }
  0xa3   : > { %v990_v43 = vadd.f32 %v957_v58, %v920_v52  ;;  %v1167_v50 = vand.u32 15, %v1023_v41  ;;  %v2999_v21 = vsel %vm331_vm0, %v411_v37, %v413_v44  ;;  %v538_v42 = vmul.f32 %v2330_v15, %v2889_v10 }
  0xa4   : > { %v1947_v45 = vsel %vm331_vm0, %v1944_v54, %v1946_v48  ;;  %v608_v34 = vmul.f32 %v2332_v16, %v2965_v40  ;;  %v678_v38 = vmul.f32 %v2334_v17, %v2824_v32  ;;  %v714_v51 = vmul.f32 %v2340_v24, %v2889_v10 }
  0xa5   : > { %v2026_v19 = vadd.f32 %v1947_v45, %v1670_v30  ;;  %vm1479_vm9 = vcmp.ne.s32.totalorder %v1167_v50, 0  ;;  %v1789_v53 = vrot.slane %v990_v43, 2  ;;  %v571_v59 = vadd.f32 %v538_v42, %v501_v0 }
  0xa6   : > { %v1511_v18 = vsel %vm1479_vm9, %v813_v55, 0.0  ;;  %v746_v37 = vadd.f32 %v714_v51, %v678_v38  ;;  %v782_v39 = vmul.f32 %v2343_v29, %v2965_v40  ;;  %v851_v54 = vmul.f32 %v2347_v33, %v2858_v46  ;;  %v315_v55 = vld [vmem:[%s2321_s28 + $0xc0] sm:$0xff] }
  0xa7   : > { %2061 = vst.msk [vmem:[%s2433_s10 + $0x87] sm:$0xff] %vm2044_vm4, %v2026_v19  ;;  %v1592_v5 = vrot.slane %v1511_v18, 7  ;;  %v1790_v32 = vsel %vm1751_vm1, %v1787_v63, %v1789_v53  ;;  %v641_v7 = vadd.f32 %v608_v34, %v571_v59  ;;  %v888_v8 = vmul.f32 %v2379_v49, %v2935_v31 }
  0xa8   : > { %v1948_v35 = vrot.slane %v1790_v32, 7  ;;  %v3020_v2 = vadd.f32 %v782_v39, %v746_v37  ;;  %v958_v62 = vmul.f32 %v2919_v25, %v2999_v21  ;;  %v1024_v4 = vadd.s32 152, %v2298_v1 }
  0xa9   : > { %v1593_v9 = vsel %vm331_vm0, %v1590_v6, %v1592_v5  ;;  %v921_v11 = vadd.f32 %v888_v8, %v851_v54  ;;  %v1447_v12 = vadd.f32 %v2929_v20, %v641_v7  ;;  %v415_v36 = vrot.slane %v314_v3, 7 }
  0xaa   : > { %v1671_v27 = vadd.f32 %v1593_v9, %v1446_v57  ;;  %v1949_v63 = vsel %vm331_vm0, %v1946_v48, %v1948_v35  ;;  %v1174_v28 = vand.u32 15, %v1024_v4  ;;  %v1594_v22 = vrot.slane %v3020_v2, 7 }
  0xab   : > { %v991_v47 = vadd.f32 %v958_v62, %v921_v11  ;;  %v3030_v58 = vsel %vm331_vm0, %v413_v44, %v415_v36  ;;  %v502_v30 = vmul.f32 %v2328_v14, %v2858_v46  ;;  %v539_v6 = vmul.f32 %v2330_v15, %v2935_v31 }
  0xac   : > { %v2027_v56 = vadd.f32 %v1949_v63, %v1671_v27  ;;  %v1595_v60 = vsel %vm331_vm0, %v1592_v5, %v1594_v22  ;;  %vm3037_vm10 = vcmp.ne.s32.totalorder %v1174_v28, 15  ;;  %v609_v61 = vmul.f32 %v2332_v16, %v2999_v21  ;;  %v316_v63 = vld [vmem:[%s2321_s28 + $0xc8] sm:$0xff] }
  0xad   : > { %v1672_v52 = vadd.f32 %v1595_v60, %v1447_v12  ;;  %v1791_v41 = vrot.slane %v991_v47, 2  ;;  %v572_v44 = vadd.f32 %v539_v6, %v502_v30  ;;  %v679_v48 = vmul.f32 %v2334_v17, %v2858_v46 }
  0xae   : > { %2062 = vst.msk [vmem:[%s2433_s10 + $0x8f] sm:$0xff] %vm2044_vm4, %v2027_v56  ;;  %v715_v57 = vmul.f32 %v2340_v24, %v2935_v31  ;;  %v783_v0 = vmul.f32 %v2343_v29, %v2999_v21  ;;  %v852_v43 = vmul.f32 %v2347_v33, %v2889_v10  ;;  %v889_v50 = vmul.f32 %v2379_v49, %v2965_v40 }
  0xaf   : > { %v1792_v42 = vsel %vm1751_vm1, %v1789_v53, %v1791_v41  ;;  %v642_v45 = vadd.f32 %v609_v61, %v572_v44  ;;  %v959_v46 = vmul.f32 %v2919_v25, %v3030_v58  ;;  %v1025_v34 = vadd.s32 160, %v2298_v1 }
  0xb0   : > { %v1868_v38 = vsel %vm3037_vm10, %v1792_v42, 0.0  ;;  %v747_v51 = vadd.f32 %v715_v57, %v679_v48  ;;  %v922_v19 = vadd.f32 %v889_v50, %v852_v43  ;;  %v417_v59 = vrot.slane %v315_v55, 7 }
  0xb1   : > { %v1950_v18 = vrot.slane %v1868_v38, 7  ;;  %v1181_v37 = vand.u32 15, %v1025_v34  ;;  %v1448_v39 = vadd.f32 %v2929_v20, %v642_v45  ;;  %v503_v54 = vmul.f32 %v2328_v14, %v2889_v10 }
  0xb2   : > { %v815_v53 = vadd.f32 %v783_v0, %v747_v51  ;;  %v992_v3 = vadd.f32 %v959_v46, %v922_v19  ;;  %v3066_v5 = vsel %vm331_vm0, %v415_v36, %v417_v59  ;;  %v540_v32 = vmul.f32 %v2330_v15, %v2965_v40 }
  0xb3   : > { %v1951_v7 = vsel %vm331_vm0, %v1948_v35, %v1950_v18  ;;  %vm1481_vm11 = vcmp.ne.s32.totalorder %v1181_v37, 0  ;;  %v610_v8 = vmul.f32 %v2332_v16, %v3030_v58  ;;  %v680_v2 = vmul.f32 %v2334_v17, %v2889_v10  ;;  %v317_v37 = vld [vmem:[%s2321_s28 + $0xd0] sm:$0xff] }
  0xb4   : > { %v2028_v62 = vadd.f32 %v1951_v7, %v1672_v52  ;;  %v1513_v4 = vsel %vm1481_vm11, %v815_v53, 0.0  ;;  %v1793_v9 = vrot.slane %v992_v3, 2  ;;  %v573_v11 = vadd.f32 %v540_v32, %v503_v54 }
  0xb5   : > { %v1596_v12 = vrot.slane %v1513_v4, 7  ;;  %v716_v36 = vmul.f32 %v2340_v24, %v2965_v40  ;;  %v784_v27 = vmul.f32 %v2343_v29, %v3030_v58  ;;  %v853_v35 = vmul.f32 %v2347_v33, %v2935_v31 }
  0xb6   : > { %2063 = vst.msk [vmem:[%s2433_s10 + $0x97] sm:$0xff] %vm2044_vm4, %v2028_v62  ;;  %v1794_v28 = vsel %vm1751_vm1, %v1791_v41, %v1793_v9  ;;  %v643_v10 = vadd.f32 %v610_v8, %v573_v11  ;;  %v890_v47 = vmul.f32 %v2379_v49, %v2999_v21  ;;  %v960_v30 = vmul.f32 %v2919_v25, %v3066_v5 }
  0xb7   : > { %v1597_v6 = vsel %vm331_vm0, %v1594_v22, %v1596_v12  ;;  %v1952_v56 = vrot.slane %v1794_v28, 7  ;;  %v748_v60 = vadd.f32 %v716_v36, %v680_v2  ;;  %v1026_v26 = vadd.s32 168, %v2298_v1 }
  0xb8   : > { %v1673_v61 = vadd.f32 %v1597_v6, %v1448_v39  ;;  %v923_v52 = vadd.f32 %v890_v47, %v853_v35  ;;  %v1449_v44 = vadd.f32 %v2929_v20, %v643_v10  ;;  %v419_v48 = vrot.slane %v316_v63, 7 }
  0xb9   : > { %v1953_v41 = vsel %vm331_vm0, %v1950_v18, %v1952_v56  ;;  %v816_v55 = vadd.f32 %v784_v27, %v748_v60  ;;  %v1188_v57 = vand.u32 15, %v1026_v26  ;;  %v504_v0 = vmul.f32 %v2328_v14, %v2935_v31 }
  0xba   : > { %v2029_v43 = vadd.f32 %v1953_v41, %v1673_v61  ;;  %v993_v22 = vadd.f32 %v960_v30, %v923_v52  ;;  %v3096_v50 = vsel %vm331_vm0, %v417_v59, %v419_v48  ;;  %v541_v42 = vmul.f32 %v2330_v15, %v2999_v21 }
  0xbb   : > { %v1598_v45 = vrot.slane %v816_v55, 7  ;;  %vm3100_vm12 = vcmp.ne.s32.totalorder %v1188_v57, 15  ;;  %v611_v34 = vmul.f32 %v2332_v16, %v3066_v5  ;;  %v681_v38 = vmul.f32 %v2334_v17, %v2935_v31  ;;  %v318_v55 = vld [vmem:[%s2321_s28 + $0xd8] sm:$0xff] }
  0xbc   : > { %2064 = vst.msk [vmem:[%s2433_s10 + $0x9f] sm:$0xff] %vm2044_vm4, %v2029_v43  ;;  %v1795_v51 = vrot.slane %v993_v22, 2  ;;  %v574_v19 = vadd.f32 %v541_v42, %v504_v0  ;;  %v717_v59 = vmul.f32 %v2340_v24, %v2999_v21  ;;  %v785_v18 = vmul.f32 %v2343_v29, %v3066_v5 }
  0xbd   : > { %v1599_v39 = vsel %vm331_vm0, %v1596_v12, %v1598_v45  ;;  %v854_v54 = vmul.f32 %v2347_v33, %v2965_v40  ;;  %v891_v53 = vmul.f32 %v2379_v49, %v3030_v58  ;;  %v961_v31 = vmul.f32 %v2919_v25, %v3096_v50 }
  0xbe   : > { %v1674_v3 = vadd.f32 %v1599_v39, %v1449_v44  ;;  %v1796_v32 = vsel %vm1751_vm1, %v1793_v9, %v1795_v51  ;;  %v644_v7 = vadd.f32 %v611_v34, %v574_v19  ;;  %v749_v8 = vadd.f32 %v717_v59, %v681_v38 }
  0xbf   : > { %v1870_v2 = vsel %vm3100_vm12, %v1796_v32, 0.0  ;;  %v924_v62 = vadd.f32 %v891_v53, %v854_v54  ;;  %v1027_v4 = vadd.s32 176, %v2298_v1  ;;  %v421_v11 = vrot.slane %v317_v37, 7 }
  0xc0   : > { %v1954_v12 = vrot.slane %v1870_v2, 7  ;;  %v817_v36 = vadd.f32 %v785_v18, %v749_v8  ;;  %v1450_v27 = vadd.f32 %v2929_v20, %v644_v7  ;;  %v505_v35 = vmul.f32 %v2328_v14, %v2965_v40 }
  0xc1   : > { %v994_v63 = vadd.f32 %v961_v31, %v924_v62  ;;  %v1195_v28 = vand.u32 15, %v1027_v4  ;;  %v3130_v9 = vsel %vm331_vm0, %v419_v48, %v421_v11  ;;  %v542_v10 = vmul.f32 %v2330_v15, %v3030_v58 }
  0xc2   : > { %v1955_v47 = vsel %vm331_vm0, %v1952_v56, %v1954_v12  ;;  %v612_v30 = vmul.f32 %v2332_v16, %v3096_v50  ;;  %v682_v6 = vmul.f32 %v2334_v17, %v2965_v40  ;;  %v718_v60 = vmul.f32 %v2340_v24, %v3030_v58 }
  0xc3   : > { %v2030_v26 = vadd.f32 %v1955_v47, %v1674_v3  ;;  %vm1483_vm13 = vcmp.ne.s32.totalorder %v1195_v28, 0  ;;  %v1797_v61 = vrot.slane %v994_v63, 2  ;;  %v575_v52 = vadd.f32 %v542_v10, %v505_v35 }
  0xc4   : > { %v1515_v44 = vsel %vm1483_vm13, %v817_v36, 0.0  ;;  %v750_v48 = vadd.f32 %v718_v60, %v682_v6  ;;  %v786_v41 = vmul.f32 %v2343_v29, %v3096_v50  ;;  %v855_v56 = vmul.f32 %v2347_v33, %v2999_v21  ;;  %v319_v36 = vld [vmem:[%s2321_s28 + $0xe0] sm:$0xff] }
  0xc5   : > { %2065 = vst.msk [vmem:[%s2433_s10 + $0xa7] sm:$0xff] %vm2044_vm4, %v2030_v26  ;;  %v1600_v57 = vrot.slane %v1515_v44, 7  ;;  %v1798_v40 = vsel %vm1751_vm1, %v1795_v51, %v1797_v61  ;;  %v645_v0 = vadd.f32 %v612_v30, %v575_v52  ;;  %v892_v43 = vmul.f32 %v2379_v49, %v3066_v5 }
  0xc6   : > { %v1956_v22 = vrot.slane %v1798_v40, 7  ;;  %v3151_v42 = vadd.f32 %v786_v41, %v750_v48  ;;  %v962_v46 = vmul.f32 %v2919_v25, %v3130_v9  ;;  %v1028_v34 = vadd.s32 184, %v2298_v1 }
  0xc7   : > { %v1601_v38 = vsel %vm331_vm0, %v1598_v45, %v1600_v57  ;;  %v925_v19 = vadd.f32 %v892_v43, %v855_v56  ;;  %v1451_v59 = vadd.f32 %v2929_v20, %v645_v0  ;;  %v423_v18 = vrot.slane %v318_v55, 7 }
  0xc8   : > { %v1675_v37 = vadd.f32 %v1601_v38, %v1450_v27  ;;  %v1957_v51 = vsel %vm331_vm0, %v1954_v12, %v1956_v22  ;;  %v1202_v39 = vand.u32 15, %v1028_v34  ;;  %v1602_v54 = vrot.slane %v3151_v42, 7 }
  0xc9   : > { %v995_v53 = vadd.f32 %v962_v46, %v925_v19  ;;  %v3161_v31 = vsel %vm331_vm0, %v421_v11, %v423_v18  ;;  %v506_v3 = vmul.f32 %v2328_v14, %v2999_v21  ;;  %v543_v45 = vmul.f32 %v2330_v15, %v3066_v5 }
  0xca   : > { %v2031_v32 = vadd.f32 %v1957_v51, %v1675_v37  ;;  %v1603_v7 = vsel %vm331_vm0, %v1600_v57, %v1602_v54  ;;  %vm3168_vm14 = vcmp.ne.s32.totalorder %v1202_v39, 15  ;;  %v613_v2 = vmul.f32 %v2332_v16, %v3130_v9  ;;  %v320_v51 = vld [vmem:[%s2321_s28 + $0xe8] sm:$0xff] }
  0xcb   : > { %v1676_v62 = vadd.f32 %v1603_v7, %v1451_v59  ;;  %v1799_v4 = vrot.slane %v995_v53, 2  ;;  %v576_v11 = vadd.f32 %v543_v45, %v506_v3  ;;  %v683_v12 = vmul.f32 %v2334_v17, %v2999_v21 }
  0xcc   : > { %2066 = vst.msk [vmem:[%s2433_s10 + $0xaf] sm:$0xff] %vm2044_vm4, %v2031_v32  ;;  %v719_v27 = vmul.f32 %v2340_v24, %v3066_v5  ;;  %v787_v35 = vmul.f32 %v2343_v29, %v3130_v9  ;;  %v856_v63 = vmul.f32 %v2347_v33, %v3030_v58  ;;  %v893_v28 = vmul.f32 %v2379_v49, %v3096_v50 }
  0xcd   : > { %v1800_v10 = vsel %vm1751_vm1, %v1797_v61, %v1799_v4  ;;  %v646_v47 = vadd.f32 %v613_v2, %v576_v11  ;;  %v963_v21 = vmul.f32 %v2919_v25, %v3161_v31  ;;  %v1029_v30 = vadd.s32 192, %v2298_v1 }
  0xce   : > { %v1872_v6 = vsel %vm3168_vm14, %v1800_v10, 0.0  ;;  %v751_v60 = vadd.f32 %v719_v27, %v683_v12  ;;  %v926_v26 = vadd.f32 %v893_v28, %v856_v63  ;;  %v425_v52 = vrot.slane %v319_v36, 7 }
  0xcf   : > { %v1958_v44 = vrot.slane %v1872_v6, 7  ;;  %v1209_v48 = vand.u32 15, %v1029_v30  ;;  %v1452_v41 = vadd.f32 %v2929_v20, %v646_v47  ;;  %v507_v56 = vmul.f32 %v2328_v14, %v3030_v58 }
  0xd0   : > { %v819_v61 = vadd.f32 %v787_v35, %v751_v60  ;;  %v996_v55 = vadd.f32 %v963_v21, %v926_v26  ;;  %v3197_v57 = vsel %vm331_vm0, %v423_v18, %v425_v52  ;;  %v544_v40 = vmul.f32 %v2330_v15, %v3096_v50 }
  0xd1   : > { %v1959_v0 = vsel %vm331_vm0, %v1956_v22, %v1958_v44  ;;  %vm1485_vm15 = vcmp.ne.s32.totalorder %v1209_v48, 0  ;;  %v614_v43 = vmul.f32 %v2332_v16, %v3161_v31  ;;  %v684_v42 = vmul.f32 %v2334_v17, %v3030_v58  ;;  %v321_v48 = vld [vmem:[%s2321_s28 + $0xf0] sm:$0xff] }
  0xd2   : > { %v2032_v46 = vadd.f32 %v1959_v0, %v1676_v62  ;;  %v1517_v34 = vsel %vm1485_vm15, %v819_v61, 0.0  ;;  %v1801_v38 = vrot.slane %v996_v55, 2  ;;  %v577_v19 = vadd.f32 %v544_v40, %v507_v56 }
  0xd3   : > { %v1604_v59 = vrot.slane %v1517_v34, 7  ;;  %v720_v18 = vmul.f32 %v2340_v24, %v3096_v50  ;;  %v788_v37 = vmul.f32 %v2343_v29, %v3161_v31  ;;  %v857_v22 = vmul.f32 %v2347_v33, %v3066_v5 }
  0xd4   : > { %2067 = vst.msk [vmem:[%s2433_s10 + $0xb7] sm:$0xff] %vm2044_vm4, %v2032_v46  ;;  %v1802_v39 = vsel %vm1751_vm1, %v1799_v4, %v1801_v38  ;;  %v647_v58 = vadd.f32 %v614_v43, %v577_v19  ;;  %v894_v53 = vmul.f32 %v2379_v49, %v3130_v9  ;;  %v964_v3 = vmul.f32 %v2919_v25, %v3197_v57 }
  0xd5   : > { %v1605_v45 = vsel %vm331_vm0, %v1602_v54, %v1604_v59  ;;  %v1960_v32 = vrot.slane %v1802_v39, 7  ;;  %v752_v7 = vadd.f32 %v720_v18, %v684_v42  ;;  %v1030_v8 = vadd.s32 200, %v2298_v1 }
  0xd6   : > { %v1677_v2 = vadd.f32 %v1605_v45, %v1452_v41  ;;  %v927_v62 = vadd.f32 %v894_v53, %v857_v22  ;;  %v1453_v11 = vadd.f32 %v2929_v20, %v647_v58  ;;  %v427_v12 = vrot.slane %v320_v51, 7 }
  0xd7   : > { %v1961_v4 = vsel %vm331_vm0, %v1958_v44, %v1960_v32  ;;  %v820_v36 = vadd.f32 %v788_v37, %v752_v7  ;;  %v1216_v27 = vand.u32 15, %v1030_v8  ;;  %v508_v35 = vmul.f32 %v2328_v14, %v3066_v5 }
  0xd8   : > { %v2033_v63 = vadd.f32 %v1961_v4, %v1677_v2  ;;  %v997_v54 = vadd.f32 %v964_v3, %v927_v62  ;;  %v3227_v28 = vsel %vm331_vm0, %v425_v52, %v427_v12  ;;  %v545_v10 = vmul.f32 %v2330_v15, %v3130_v9 }
  0xd9   : > { %v1606_v47 = vrot.slane %v820_v36, 7  ;;  %vm3231_vm2 = vcmp.ne.s32.totalorder %v1216_v27, 15  ;;  %v615_v30 = vmul.f32 %v2332_v16, %v3197_v57  ;;  %v685_v6 = vmul.f32 %v2334_v17, %v3066_v5  ;;  %v322_v36 = vld [vmem:[%s2321_s28 + $0xf8] sm:$0xff] }
  0xda   : > { %2068 = vst.msk [vmem:[%s2433_s10 + $0xbf] sm:$0xff] %vm2044_vm4, %v2033_v63  ;;  %v1803_v60 = vrot.slane %v997_v54, 2  ;;  %v578_v26 = vadd.f32 %v545_v10, %v508_v35  ;;  %v721_v52 = vmul.f32 %v2340_v24, %v3130_v9  ;;  %v789_v44 = vmul.f32 %v2343_v29, %v3197_v57 }
  0xdb   : > { %v1607_v41 = vsel %vm331_vm0, %v1604_v59, %v1606_v47  ;;  %v858_v56 = vmul.f32 %v2347_v33, %v3096_v50  ;;  %v895_v61 = vmul.f32 %v2379_v49, %v3161_v31  ;;  %v965_v5 = vmul.f32 %v2919_v25, %v3227_v28 }
  0xdc   : > { %v1678_v55 = vadd.f32 %v1607_v41, %v1453_v11  ;;  %v1804_v40 = vsel %vm1751_vm1, %v1801_v38, %v1803_v60  ;;  %v648_v0 = vadd.f32 %v615_v30, %v578_v26  ;;  %v753_v43 = vadd.f32 %v721_v52, %v685_v6 }
  0xdd   : > { %v1874_v42 = vsel %vm3231_vm2, %v1804_v40, 0.0  ;;  %v928_v46 = vadd.f32 %v895_v61, %v858_v56  ;;  %v1031_v34 = vadd.s32 208, %v2298_v1  ;;  %v429_v19 = vrot.slane %v321_v48, 7 }
  0xde   : > { %v1962_v59 = vrot.slane %v1874_v42, 7  ;;  %v821_v18 = vadd.f32 %v789_v44, %v753_v43  ;;  %v1454_v37 = vadd.f32 %v2929_v20, %v648_v0  ;;  %v509_v22 = vmul.f32 %v2328_v14, %v3096_v50 }
  0xdf   : > { %v998_v51 = vadd.f32 %v965_v5, %v928_v46  ;;  %v1223_v39 = vand.u32 15, %v1031_v34  ;;  %v3261_v38 = vsel %vm331_vm0, %v427_v12, %v429_v19  ;;  %v546_v58 = vmul.f32 %v2330_v15, %v3161_v31 }
  0xe0   : > { %v1963_v53 = vsel %vm331_vm0, %v1960_v32, %v1962_v59  ;;  %v616_v3 = vmul.f32 %v2332_v16, %v3227_v28  ;;  %v686_v45 = vmul.f32 %v2334_v17, %v3096_v50  ;;  %v722_v7 = vmul.f32 %v2340_v24, %v3161_v31 }
  0xe1   : > { %v2034_v8 = vadd.f32 %v1963_v53, %v1678_v55  ;;  %vm1487_vm3 = vcmp.ne.s32.totalorder %v1223_v39, 0  ;;  %v1805_v2 = vrot.slane %v998_v51, 2  ;;  %v579_v62 = vadd.f32 %v546_v58, %v509_v22 }
  0xe2   : > { %v1519_v11 = vsel %vm1487_vm3, %v821_v18, 0.0  ;;  %v754_v12 = vadd.f32 %v722_v7, %v686_v45  ;;  %v790_v4 = vmul.f32 %v2343_v29, %v3227_v28  ;;  %v859_v32 = vmul.f32 %v2347_v33, %v3130_v9 }
  0xe3   : > { %2069 = vst.msk [vmem:[%s2433_s10 + $0xc7] sm:$0xff] %vm2044_vm4, %v2034_v8  ;;  %v1608_v27 = vrot.slane %v1519_v11, 7  ;;  %v1806_v50 = vsel %vm1751_vm1, %v1803_v60, %v1805_v2  ;;  %v649_v35 = vadd.f32 %v616_v3, %v579_v62  ;;  %v896_v63 = vmul.f32 %v2379_v49, %v3197_v57 }
  0xe4   : > { %v1964_v54 = vrot.slane %v1806_v50, 7  ;;  %v3282_v10 = vadd.f32 %v790_v4, %v754_v12  ;;  %v966_v21 = vmul.f32 %v2919_v25, %v3261_v38  ;;  %v1032_v30 = vadd.s32 216, %v2298_v1 }
  0xe5   : > { %v1609_v6 = vsel %vm331_vm0, %v1606_v47, %v1608_v27  ;;  %v929_v26 = vadd.f32 %v896_v63, %v859_v32  ;;  %v1455_v52 = vadd.f32 %v2929_v20, %v649_v35  ;;  %v431_v44 = vrot.slane %v322_v36, 7 }
  0xe6   : > { %v1679_v48 = vadd.f32 %v1609_v6, %v1454_v37  ;;  %v1965_v60 = vsel %vm331_vm0, %v1962_v59, %v1964_v54  ;;  %v1230_v41 = vand.u32 15, %v1032_v30  ;;  %v1610_v56 = vrot.slane %v3282_v10, 7 }
  0xe7   : > { %v999_v61 = vadd.f32 %v966_v21, %v929_v26  ;;  %v3292_v5 = vsel %vm331_vm0, %v429_v19, %v431_v44  ;;  %v510_v55 = vmul.f32 %v2328_v14, %v3130_v9  ;;  %v547_v47 = vmul.f32 %v2330_v15, %v3197_v57 }
  0xe8   : > { %v2035_v40 = vadd.f32 %v1965_v60, %v1679_v48  ;;  %v1611_v0 = vsel %vm331_vm0, %v1608_v27, %v1610_v56  ;;  %vm3299_vm5 = vcmp.ne.s32.totalorder %v1230_v41, 15  ;;  %v617_v42 = vmul.f32 %v2332_v16, %v3261_v38 }
  0xe9   : > { %v1680_v46 = vadd.f32 %v1611_v0, %v1455_v52  ;;  %v1807_v34 = vrot.slane %v999_v61, 2  ;;  %v580_v19 = vadd.f32 %v547_v47, %v510_v55  ;;  %v687_v59 = vmul.f32 %v2334_v17, %v3130_v9 }
  0xea   : > { %2070 = vst.msk [vmem:[%s2433_s10 + $0xcf] sm:$0xff] %vm2044_vm4, %v2035_v40  ;;  %v723_v18 = vmul.f32 %v2340_v24, %v3197_v57  ;;  %v791_v37 = vmul.f32 %v2343_v29, %v3261_v38  ;;  %v860_v22 = vmul.f32 %v2347_v33, %v3161_v31  ;;  %v897_v51 = vmul.f32 %v2379_v49, %v3227_v28 }
  0xeb   : > { %v1808_v39 = vsel %vm1751_vm1, %v1805_v2, %v1807_v34  ;;  %v650_v58 = vadd.f32 %v617_v42, %v580_v19  ;;  %v967_v9 = vmul.f32 %v2919_v25, %v3292_v5  ;;  %v1033_v53 = vadd.s32 224, %v2298_v1 }
  0xec   : > { %v1876_v3 = vsel %vm3299_vm5, %v1808_v39, 0.0  ;;  %v755_v45 = vadd.f32 %v723_v18, %v687_v59  ;;  %v930_v7 = vadd.f32 %v897_v51, %v860_v22  ;;  %v3326_v8 = vsel %vm331_vm0, %v431_v44, %v468_v23 }
  0xed   : > { %v1966_v62 = vrot.slane %v1876_v3, 7  ;;  %v1237_v11 = vand.u32 15, %v1033_v53  ;;  %v1456_v2 = vadd.f32 %v2929_v20, %v650_v58  ;;  %v511_v12 = vmul.f32 %v2328_v14, %v3161_v31 }
  0xee   : > { %v823_v4 = vadd.f32 %v791_v37, %v755_v45  ;;  %v1000_v32 = vadd.f32 %v967_v9, %v930_v7  ;;  %v548_v36 = vmul.f32 %v2330_v15, %v3227_v28  ;;  %v618_v27 = vmul.f32 %v2332_v16, %v3292_v5 }
  0xef   : > { %v1967_v50 = vsel %vm331_vm0, %v1964_v54, %v1966_v62  ;;  %vm1489_vm6 = vcmp.ne.s32.totalorder %v1237_v11, 0  ;;  %v688_v35 = vmul.f32 %v2334_v17, %v3161_v31  ;;  %v724_v63 = vmul.f32 %v2340_v24, %v3227_v28  ;;  %v326_v54 = vld [vmem:[%s2312_s25 + $0x18] sm:$0xff] }
  0xf0   : > { %v2036_v10 = vadd.f32 %v1967_v50, %v1680_v46  ;;  %v1521_v21 = vsel %vm1489_vm6, %v823_v4, 0.0  ;;  %v1809_v30 = vrot.slane %v1000_v32, 2  ;;  %v581_v6 = vadd.f32 %v548_v36, %v511_v12 }
  0xf1   : > { %v1612_v26 = vrot.slane %v1521_v21, 7  ;;  %v756_v52 = vadd.f32 %v724_v63, %v688_v35  ;;  %v792_v44 = vmul.f32 %v2343_v29, %v3292_v5  ;;  %v861_v48 = vmul.f32 %v2347_v33, %v3197_v57 }
  0xf2   : > { %2071 = vst.msk [vmem:[%s2433_s10 + $0xd7] sm:$0xff] %vm2044_vm4, %v2036_v10  ;;  %v1810_v31 = vsel %vm1751_vm1, %v1807_v34, %v1809_v30  ;;  %v651_v60 = vadd.f32 %v618_v27, %v581_v6  ;;  %v898_v41 = vmul.f32 %v2379_v49, %v3261_v38  ;;  %v968_v61 = vmul.f32 %v2919_v25, %v3326_v8 }
  0xf3   : > { %v1613_v55 = vsel %vm331_vm0, %v1610_v56, %v1612_v26  ;;  %v1968_v47 = vrot.slane %v1810_v31, 7  ;;  %v824_v40 = vadd.f32 %v792_v44, %v756_v52  ;;  %v1034_v0 = vadd.s32 232, %v2298_v1 }
  0xf4   : > { %v1681_v43 = vadd.f32 %v1613_v55, %v1456_v2  ;;  %v931_v42 = vadd.f32 %v898_v41, %v861_v48  ;;  %v1457_v46 = vadd.f32 %v2929_v20, %v651_v60  ;;  %v469_v19 = vrot.slane %v326_v54, 7 }
  0xf5   : > { %v1969_v34 = vsel %vm331_vm0, %v1966_v62, %v1968_v47  ;;  %v1244_v59 = vand.u32 15, %v1034_v0  ;;  %v1614_v18 = vrot.slane %v824_v40, 7  ;;  %v512_v37 = vmul.f32 %v2328_v14, %v3197_v57 }
  0xf6   : > { %v2037_v22 = vadd.f32 %v1969_v34, %v1681_v43  ;;  %v1001_v51 = vadd.f32 %v968_v61, %v931_v42  ;;  %v470_v56 = vsel %vm331_vm0, %v468_v23, %v469_v19  ;;  %v549_v39 = vmul.f32 %v2330_v15, %v3261_v38 }
  0xf7   : > { %v1615_v58 = vsel %vm331_vm0, %v1612_v26, %v1614_v18  ;;  %vm3364_vm7 = vcmp.ne.s32.totalorder %v1244_v59, 15  ;;  %v619_v53 = vmul.f32 %v2332_v16, %v3326_v8  ;;  %v689_v3 = vmul.f32 %v2334_v17, %v3197_v57 }
  0xf8   : > { %2072 = vst.msk [vmem:[%s2433_s10 + $0xdf] sm:$0xff] %vm2044_vm4, %v2037_v22  ;;  %v1682_v13 = vadd.f32 %v1615_v58, %v1457_v46  ;;  %v1811_v45 = vrot.slane %v1001_v51, 2  ;;  %v582_v23 = vadd.f32 %v549_v39, %v512_v37  ;;  %v725_v7 = vmul.f32 %v2340_v24, %v3261_v38 }
  0xf9   : > { %v793_v62 = vmul.f32 %v2343_v29, %v3326_v8  ;;  %v862_v11 = vmul.f32 %v2347_v33, %v3227_v28  ;;  %v899_v2 = vmul.f32 %v2379_v49, %v3292_v5  ;;  %v969_v12 = vmul.f32 %v2919_v25, %v470_v56 }
  0xfa   : > { %v1812_v57 = vsel %vm1751_vm1, %v1809_v30, %v1811_v45  ;;  %v652_v4 = vadd.f32 %v619_v53, %v582_v23  ;;  %v757_v32 = vadd.f32 %v725_v7, %v689_v3  ;;  %v1035_v36 = vadd.s32 240, %v2298_v1 }
  0xfb   : > { %v1878_v27 = vsel %vm3364_vm7, %v1812_v57, 0.0  ;;  %v932_v50 = vadd.f32 %v899_v2, %v862_v11  ;;  %v477_v35 = vsel %vm331_vm0, %v469_v19, 0.0  ;;  %v513_v63 = vmul.f32 %v2328_v14, %v3227_v28 }
  0xfc   : > { %v1970_v10 = vrot.slane %v1878_v27, 7  ;;  %v825_v21 = vadd.f32 %v793_v62, %v757_v32  ;;  %v1251_v6 = vand.u32 15, %v1035_v36  ;;  %v1458_v26 = vadd.f32 %v2929_v20, %v652_v4 }
  0xfd   : > { %v1002_v52 = vadd.f32 %v969_v12, %v932_v50  ;;  %v550_v30 = vmul.f32 %v2330_v15, %v3292_v5  ;;  %v620_v44 = vmul.f32 %v2332_v16, %v470_v56  ;;  %v690_v48 = vmul.f32 %v2334_v17, %v3227_v28 }
  0xfe   : > { %v1971_v54 = vsel %vm331_vm0, %v1968_v47, %v1970_v10  ;;  %vm1491_vm8 = vcmp.ne.s32.totalorder %v1251_v6, 0  ;;  %v726_v31 = vmul.f32 %v2340_v24, %v3292_v5  ;;  %v794_v60 = vmul.f32 %v2343_v29, %v470_v56 }
  0xff   : > { %v2038_v41 = vadd.f32 %v1971_v54, %v1682_v13  ;;  %v1523_v61 = vsel %vm1491_vm8, %v825_v21, 0.0  ;;  %v1813_v55 = vrot.slane %v1002_v52, 2  ;;  %v583_v40 = vadd.f32 %v550_v30, %v513_v63 }
 0x100   : > { %v1616_v0 = vrot.slane %v1523_v61, 7  ;;  %v758_v43 = vadd.f32 %v726_v31, %v690_v48  ;;  %v863_v42 = vmul.f32 %v2347_v33, %v3261_v38  ;;  %v900_v17 = vmul.f32 %v2379_v49, %v3326_v8 }
 0x101   : > { %2073 = vst.msk [vmem:[%s2433_s10 + $0xe7] sm:$0xff] %vm2044_vm4, %v2038_v41  ;;  %v1814_v28 = vsel %vm1751_vm1, %v1811_v45, %v1813_v55  ;;  %v653_v47 = vadd.f32 %v620_v44, %v583_v40  ;;  %v970_v24 = vmul.f32 %v2919_v25, %v477_v35  ;;  %v1036_v29 = vadd.s32 248, %v2298_v1 }
 0x102   : > { %v1617_v5 = vsel %vm331_vm0, %v1614_v18, %v1616_v0  ;;  %v1972_v46 = vrot.slane %v1814_v28, 7  ;;  %v826_v19 = vadd.f32 %v794_v60, %v758_v43  ;;  %v933_v34 = vadd.f32 %v900_v17, %v863_v42 }
 0x103   : > { %v1683_v59 = vadd.f32 %v1617_v5, %v1458_v26  ;;  %v1258_v33 = vand.u32 15, %v1036_v29  ;;  %v514_v49 = vmul.f32 %v2328_v14, %v3261_v38  ;;  %v551_v25 = vmul.f32 %v2330_v15, %v3326_v8 }
 0x104   : > { %v1973_v37 = vsel %vm331_vm0, %v1970_v10, %v1972_v46  ;;  %v1003_v22 = vadd.f32 %v970_v24, %v933_v34  ;;  %v1618_v51 = vrot.slane %v826_v19, 7  ;;  %v1459_v1 = vadd.f32 %v2929_v20, %v653_v47 }
 0x105   : > { %v2039_v56 = vadd.f32 %v1973_v37, %v1683_v59  ;;  %v621_v18 = vmul.f32 %v2332_v16, %v477_v35  ;;  %vm1717_vm9 = vcmp.ne.s32.totalorder %v1258_v33, 15  ;;  %v584_v9 = vadd.f32 %v551_v25, %v514_v49 }
 0x106   : > { %v1619_v39 = vsel %vm331_vm0, %v1616_v0, %v1618_v51  ;;  %v1815_v58 = vrot.slane %v1003_v22, 2  ;;  %vm2076_vm10 = vcmask 57344  }
 0x107   : > { %2074 = vst.msk [vmem:[%s2433_s10 + $0xef] sm:$0xff] %vm2044_vm4, %v2039_v56  ;;  %v654_v38 = vadd.f32 %v621_v18, %v584_v9  ;;  %v1684_v53 = vadd.f32 %v1619_v39, %v1459_v1 }
 0x108   : > { %v1816_v14 = vsel %vm1751_vm1, %v1813_v55, %v1815_v58 }
 0x109   : > { %v1880_v3 = vsel %vm1717_vm9, %v1816_v14, 0.0  ;;  %v1460_v8 = vadd.f32 %v2929_v20, %v654_v38 }
 0x10a   : > { %v1974_v15 = vrot.slane %v1880_v3, 7 }
 0x10b   : > { %v1685_v16 = vadd.f32 %v1618_v51, %v1460_v8 }
 0x10c   : > { %v1975_v13 = vsel %vm331_vm0, %v1972_v46, %v1974_v15 }
 0x10d   : > { %v2040_v45 = vadd.f32 %v1975_v13, %v1684_v53  ;;  %v2041_v23 = vadd.f32 %v1974_v15, %v1685_v16 }
 0x10f   : > { %2075 = vst.msk [vmem:[%s2433_s10 + $0xf7] sm:$0xff] %vm2044_vm4, %v2040_v45 }
 0x110   : > { %2077 = vst.msk [vmem:[%s2433_s10 + $0xff] sm:$0x1] %vm2076_vm10, %v2041_v23 }
 0x111 PF: > { %s14_s17 = sadd.s32 1, %s2251_s17   ;;  %s3470_s15 = smov %s2247_s16 }
 0x112   : > { %p11_p5 = scmp.ge.s32.totalorder %s14_s17, 4   ;;  %s3471_s16 = smov %s3473_s18 }
 0x114   :  { %13 = sbr.rel (!%p11_p5) target bundleno = 2 (0x2), region = 69 }

</bundles_post_ra>
